<compile_context>
chip_gen: v7x
topology: tpu7x:2x2x1
jax: 0.10.0
libtpu: 0.0.40
codegen_flags: <defaults>
</compile_context>

<pallas_src>
import functools

import jax
import jax.numpy as jnp
from jax.experimental import pallas as pl
from jax.experimental.pallas import tpu as pltpu


# ---------------------------------------------------------------------------
# In-kernel helpers (pure value math, f32)
# ---------------------------------------------------------------------------

def _gelu(x):
    # TODO(synk): HF BERT default is the exact erf GELU; tanh approximation is
    # kept for guaranteed Mosaic lowering (difference ~1e-3).
    return 0.5 * x * (1.0 + jnp.tanh(0.7978845608028654 * (x + 0.044715 * x * x * x)))


def _ln(x, g, b, eps):
    mean = jnp.mean(x, axis=-1, keepdims=True)
    var = jnp.mean(jnp.square(x - mean), axis=-1, keepdims=True)
    return (x - mean) * jax.lax.rsqrt(var + eps) * g + b


# ---------------------------------------------------------------------------
# The single fused kernel: embeddings-LN -> L transformer layers -> pooler ->
# classifier -> softmax.  Everything stays in VMEM / vregs.
# ---------------------------------------------------------------------------

def _bert_full_kernel(x_ref, mask_ref, emb_g_ref, emb_b_ref,
                      wqkv_ref, bqkv_ref, wo_ref, bo_ref,
                      ln1g_ref, ln1b_ref,
                      w1_ref, b1_ref, w2_ref, b2_ref,
                      ln2g_ref, ln2b_ref,
                      pw_ref, pb_ref, cw_ref, cb_ref,
                      o_ref, *, num_layers, num_heads, head_dim, batch, seq, eps):
    H = num_heads * head_dim
    scale = 1.0 / (head_dim ** 0.5)

    # --- embedding layernorm on the flattened [B*S, H] slab ---
    xf = _ln(x_ref[...], emb_g_ref[...], emb_b_ref[...], eps)        # [B*S, H] f32
    mask = mask_ref[...]                                             # [B, 1, S] additive

    for l in range(num_layers):                                      # static unroll
        # --- fused Q|K|V projection: one [B*S,H] @ [H,3H] bf16 matmul ---
        qkv = jnp.dot(xf.astype(jnp.bfloat16), wqkv_ref[l],
                      preferred_element_type=jnp.float32) + bqkv_ref[l]
        qkv_b = qkv.astype(jnp.bfloat16)          # single cast for all head slices

        # --- multi-head attention; heads are static lane slices, matmuls
        #     batched over B, context kept in vregs (no scratch) ---
        ctx_heads = []
        for h in range(num_heads):
            lo = h * head_dim
            qh = qkv_b[:, 0 * H + lo:0 * H + lo + head_dim].reshape(batch, seq, head_dim)
            kh = qkv_b[:, 1 * H + lo:1 * H + lo + head_dim].reshape(batch, seq, head_dim)
            vh = qkv_b[:, 2 * H + lo:2 * H + lo + head_dim].reshape(batch, seq, head_dim)
            s = jnp.einsum('bqd,bkd->bqk', qh, kh,
                           preferred_element_type=jnp.float32)       # [B, S, S]
            s = s * scale + mask
            s = s - jnp.max(s, axis=-1, keepdims=True)
            p = jnp.exp(s)
            p = p * pl.reciprocal(jnp.sum(p, axis=-1, keepdims=True), approx=True)
            ctx_heads.append(jnp.einsum('bqk,bkd->bqd', p.astype(jnp.bfloat16), vh,
                                        preferred_element_type=jnp.float32))
        ctx = jnp.concatenate(ctx_heads, axis=-1).reshape(batch * seq, H)

        # --- attention output projection + fused residual + layernorm ---
        attn_out = jnp.dot(ctx.astype(jnp.bfloat16), wo_ref[l],
                           preferred_element_type=jnp.float32) + bo_ref[l]
        y = _ln(xf + attn_out, ln1g_ref[l], ln1b_ref[l], eps)

        # --- feed-forward (gelu) + fused residual + layernorm ---
        h1 = _gelu(jnp.dot(y.astype(jnp.bfloat16), w1_ref[l],
                           preferred_element_type=jnp.float32) + b1_ref[l])
        h2 = jnp.dot(h1.astype(jnp.bfloat16), w2_ref[l],
                     preferred_element_type=jnp.float32) + b2_ref[l]
        xf = _ln(y + h2, ln2g_ref[l], ln2b_ref[l], eps)

    # --- CLS token (sequence position 0 of each batch element) ---
    cls_rows = [xf[b * seq:b * seq + 1, :] for b in range(batch)]    # static slices
    cls_tok = jnp.concatenate(cls_rows, axis=0)                      # [B, H]

    # --- pooler(tanh) + classifier + softmax (lane-dense padded output) ---
    pooled = jnp.tanh(jnp.dot(cls_tok.astype(jnp.bfloat16), pw_ref[...],
                              preferred_element_type=jnp.float32) + pb_ref[...])
    # padded classifier columns carry a -1e30 bias -> exp() == 0 after max-sub
    logits = jnp.dot(pooled.astype(jnp.bfloat16), cw_ref[...],
                     preferred_element_type=jnp.float32) + cb_ref[...]
    logits = logits - jnp.max(logits, axis=-1, keepdims=True)
    e = jnp.exp(logits)
    o_ref[...] = e * pl.reciprocal(jnp.sum(e, axis=-1, keepdims=True))


def bert_fused_pallas(x_flat, add_mask, p, cfg, B, S):
    H, I = cfg["hidden"], cfg["intermediate"]
    L = cfg["num_layers"]
    CP = cfg["cls_pad"]

    kernel = functools.partial(
        _bert_full_kernel,
        num_layers=L, num_heads=cfg["num_heads"], head_dim=cfg["head_dim"],
        batch=B, seq=S, eps=1e-12)

    def spec(shape):
        n = len(shape)
        return pl.BlockSpec(shape, lambda i, _n=n: (0,) * _n)

    return pl.pallas_call(
        kernel,
        out_shape=jax.ShapeDtypeStruct((B, CP), jnp.float32),
        grid=(1,),
        in_specs=[
            spec((B * S, H)),                         # flattened embeddings
            spec((B, 1, S)),                          # additive attention mask
            spec((1, H)), spec((1, H)),               # embedding LN gamma / beta
            spec((L, H, 3 * H)), spec((L, 1, 3 * H)), # wqkv (bf16), bqkv
            spec((L, H, H)), spec((L, 1, H)),         # wo (bf16), bo
            spec((L, 1, H)), spec((L, 1, H)),         # ln1 gamma, beta
            spec((L, H, I)), spec((L, 1, I)),         # w1 (bf16), b1
            spec((L, I, H)), spec((L, 1, H)),         # w2 (bf16), b2
            spec((L, 1, H)), spec((L, 1, H)),         # ln2 gamma, beta
            spec((H, H)), spec((1, H)),               # pooler w (bf16), b
            spec((H, CP)), spec((1, CP)),             # classifier w pad (bf16), b pad
        ],
        out_specs=spec((B, CP)),
        compiler_params=pltpu.CompilerParams(dimension_semantics=("arbitrary",)),
    )(x_flat, add_mask,
      p["emb_ln_g"], p["emb_ln_b"],
      p["wqkv"], p["bqkv"], p["wo"], p["bo"],
      p["ln1_g"], p["ln1_b"],
      p["w1"], p["b1"], p["w2"], p["b2"],
      p["ln2_g"], p["ln2_b"],
      p["pooler_w"], p["pooler_b"], p["cls_w_pad"], p["cls_b_pad"])


# ---------------------------------------------------------------------------
# Synthetic BERT config / parameters (deterministic)
# ---------------------------------------------------------------------------

CFG = dict(
    vocab_size=100,
    hidden=32,
    num_layers=2,
    num_heads=4,
    head_dim=8,
    intermediate=64,
    max_pos=16,
    type_vocab=2,
    max_sentence_id=40,
    cls_pad=128,            # lane-dense padded classifier width
)


def init_params(key, cfg):
    """Raw float32 parameters matching the PyTorch module structure."""
    H, I = cfg["hidden"], cfg["intermediate"]
    std = 0.02

    def nrm(k, shape):
        return std * jax.random.normal(k, shape, dtype=jnp.float32)

    keys = iter(jax.random.split(key, 64))
    params = dict(
        word_emb=nrm(next(keys), (cfg["vocab_size"], H)),
        pos_emb=nrm(next(keys), (cfg["max_pos"], H)),
        type_emb=nrm(next(keys), (cfg["type_vocab"], H)),
        emb_ln_g=jnp.ones((H,), jnp.float32),
        emb_ln_b=jnp.zeros((H,), jnp.float32),
        pooler_w=nrm(next(keys), (H, H)),
        pooler_b=jnp.zeros((H,), jnp.float32),
        cls_w=nrm(next(keys), (H, cfg["max_sentence_id"])),
        cls_b=jnp.zeros((cfg["max_sentence_id"],), jnp.float32),
        layers=[],
    )
    for _ in range(cfg["num_layers"]):
        params["layers"].append(dict(
            wq=nrm(next(keys), (H, H)), bq=jnp.zeros((H,), jnp.float32),
            wk=nrm(next(keys), (H, H)), bk=jnp.zeros((H,), jnp.float32),
            wv=nrm(next(keys), (H, H)), bv=jnp.zeros((H,), jnp.float32),
            wo=nrm(next(keys), (H, H)), bo=jnp.zeros((H,), jnp.float32),
            ln1_g=jnp.ones((H,), jnp.float32), ln1_b=jnp.zeros((H,), jnp.float32),
            w1=nrm(next(keys), (H, I)), b1=jnp.zeros((I,), jnp.float32),
            w2=nrm(next(keys), (I, H)), b2=jnp.zeros((H,), jnp.float32),
            ln2_g=jnp.ones((H,), jnp.float32), ln2_b=jnp.zeros((H,), jnp.float32),
        ))
    return params


def pack_params(raw, cfg):
    """Fuse QKV, stack layers along a leading L axis, cast matmul weights to
    bf16, pad the classifier to a lane-dense width."""
    H, I = cfg["hidden"], cfg["intermediate"]
    C, CP = cfg["max_sentence_id"], cfg["cls_pad"]

    def bf16(a):
        return a.astype(jnp.bfloat16)

    def stack(fn):
        return jnp.stack([fn(lp) for lp in raw["layers"]], axis=0)

    cls_w_pad = jnp.zeros((H, CP), jnp.float32).at[:, :C].set(raw["cls_w"]).astype(jnp.bfloat16)
    cls_b_pad = jnp.full((1, CP), -1e30, jnp.float32).at[0, :C].set(raw["cls_b"])

    return dict(
        word_emb=raw["word_emb"], pos_emb=raw["pos_emb"], type_emb=raw["type_emb"],
        emb_ln_g=raw["emb_ln_g"].reshape(1, H), emb_ln_b=raw["emb_ln_b"].reshape(1, H),
        wqkv=stack(lambda lp: bf16(jnp.concatenate([lp["wq"], lp["wk"], lp["wv"]], axis=1))),
        bqkv=stack(lambda lp: jnp.concatenate([lp["bq"], lp["bk"], lp["bv"]]).reshape(1, 3 * H)),
        wo=stack(lambda lp: bf16(lp["wo"])),
        bo=stack(lambda lp: lp["bo"].reshape(1, H)),
        ln1_g=stack(lambda lp: lp["ln1_g"].reshape(1, H)),
        ln1_b=stack(lambda lp: lp["ln1_b"].reshape(1, H)),
        w1=stack(lambda lp: bf16(lp["w1"])),
        b1=stack(lambda lp: lp["b1"].reshape(1, I)),
        w2=stack(lambda lp: bf16(lp["w2"])),
        b2=stack(lambda lp: lp["b2"].reshape(1, H)),
        ln2_g=stack(lambda lp: lp["ln2_g"].reshape(1, H)),
        ln2_b=stack(lambda lp: lp["ln2_b"].reshape(1, H)),
        pooler_w=bf16(raw["pooler_w"]), pooler_b=raw["pooler_b"].reshape(1, H),
        cls_w_pad=cls_w_pad, cls_b_pad=cls_b_pad,
    )


# ---------------------------------------------------------------------------
# Forward pass (matches BertErrorSentenceDetector.forward semantics)
# ---------------------------------------------------------------------------

def bert_error_sentence_detector_forward(params, input_ids, attention_mask, cfg=CFG):
    B, S = input_ids.shape
    H = cfg["hidden"]
    assert S <= cfg["max_pos"], "sequence length exceeds max position embeddings"

    # --- embeddings (data-dependent gathers stay in XLA glue) ---
    x = (jnp.take(params["word_emb"], input_ids, axis=0)
         + params["pos_emb"][:S][None, :, :]
         + params["type_emb"][0][None, None, :])                     # [B, S, H]
    x_flat = x.reshape(B * S, H)                                     # flattened slab

    # --- extended additive attention mask (HF-BERT convention) ---
    add_mask = ((1.0 - attention_mask.astype(jnp.float32)) * -10000.0).reshape(B, 1, S)

    # --- whole network in one fused Pallas kernel ---
    probs_pad = bert_fused_pallas(x_flat, add_mask, params, cfg, B, S)   # [B, 128]
    return probs_pad[:, :cfg["max_sentence_id"]]                         # [B, 40]


# ---------------------------------------------------------------------------
# Demo
# ---------------------------------------------------------------------------

if __name__ == "__main__":
    key = jax.random.PRNGKey(0)
    pkey, ikey = jax.random.split(key)

    raw_params = init_params(pkey, CFG)
    params = pack_params(raw_params, CFG)

    B, S = 2, 8
    input_ids = jax.random.randint(ikey, (B, S), 0, CFG["vocab_size"], dtype=jnp.int32)
    attention_mask = jnp.array(
        [[1, 1, 1, 1, 1, 1, 1, 1],
         [1, 1, 1, 1, 1, 0, 0, 0]], dtype=jnp.int32)

    fwd = jax.jit(functools.partial(bert_error_sentence_detector_forward, cfg=CFG))
    probs = fwd(params, input_ids, attention_mask)
    probs = jax.block_until_ready(probs)

    assert probs.shape == (B, CFG["max_sentence_id"])
    assert probs.dtype == jnp.float32
    # softmax rows sum to 1 (exact reciprocal used in the classifier softmax)
    assert bool(jnp.allclose(jnp.sum(probs, axis=1), 1.0, atol=1e-4))
    assert bool(jnp.all(probs >= 0.0))

    print("KERNEL_OK")
</pallas_src>

<mosaic_0001>
module attributes {stable_mosaic.version = 11 : i64} {
  func.func @_bert_full_kernel(%arg0: i32, %arg1: memref<16x32xf32, #tpu.memory_space<vmem>>, %arg2: memref<2x1x8xf32, #tpu.memory_space<vmem>>, %arg3: memref<1x32xf32, #tpu.memory_space<vmem>>, %arg4: memref<1x32xf32, #tpu.memory_space<vmem>>, %arg5: memref<2x32x96xbf16, #tpu.memory_space<vmem>>, %arg6: memref<2x1x96xf32, #tpu.memory_space<vmem>>, %arg7: memref<2x32x32xbf16, #tpu.memory_space<vmem>>, %arg8: memref<2x1x32xf32, #tpu.memory_space<vmem>>, %arg9: memref<2x1x32xf32, #tpu.memory_space<vmem>>, %arg10: memref<2x1x32xf32, #tpu.memory_space<vmem>>, %arg11: memref<2x32x64xbf16, #tpu.memory_space<vmem>>, %arg12: memref<2x1x64xf32, #tpu.memory_space<vmem>>, %arg13: memref<2x64x32xbf16, #tpu.memory_space<vmem>>, %arg14: memref<2x1x32xf32, #tpu.memory_space<vmem>>, %arg15: memref<2x1x32xf32, #tpu.memory_space<vmem>>, %arg16: memref<2x1x32xf32, #tpu.memory_space<vmem>>, %arg17: memref<32x32xbf16, #tpu.memory_space<vmem>>, %arg18: memref<1x32xf32, #tpu.memory_space<vmem>>, %arg19: memref<32x128xbf16, #tpu.memory_space<vmem>>, %arg20: memref<1x128xf32, #tpu.memory_space<vmem>>, %arg21: memref<2x128xf32, #tpu.memory_space<vmem>>) attributes {dimension_semantics = [#tpu.dimension_semantics<arbitrary>], iteration_bounds = array<i64: 1>, scalar_prefetch = 0 : i64, scratch_operands = 0 : i64, tpu.core_type = #tpu.core_type<tc>, window_params = [{pipeline_mode = #tpu.pipeline_mode<synchronous>, transform_indices = @transform_0, window_bounds = array<i64: 16, 32>}, {pipeline_mode = #tpu.pipeline_mode<synchronous>, transform_indices = @transform_1, window_bounds = array<i64: 2, 1, 8>}, {pipeline_mode = #tpu.pipeline_mode<synchronous>, transform_indices = @transform_2, window_bounds = array<i64: 1, 32>}, {pipeline_mode = #tpu.pipeline_mode<synchronous>, transform_indices = @transform_3, window_bounds = array<i64: 1, 32>}, {pipeline_mode = #tpu.pipeline_mode<synchronous>, transform_indices = @transform_4, window_bounds = array<i64: 2, 32, 96>}, {pipeline_mode = #tpu.pipeline_mode<synchronous>, transform_indices = @transform_5, window_bounds = array<i64: 2, 1, 96>}, {pipeline_mode = #tpu.pipeline_mode<synchronous>, transform_indices = @transform_6, window_bounds = array<i64: 2, 32, 32>}, {pipeline_mode = #tpu.pipeline_mode<synchronous>, transform_indices = @transform_7, window_bounds = array<i64: 2, 1, 32>}, {pipeline_mode = #tpu.pipeline_mode<synchronous>, transform_indices = @transform_8, window_bounds = array<i64: 2, 1, 32>}, {pipeline_mode = #tpu.pipeline_mode<synchronous>, transform_indices = @transform_9, window_bounds = array<i64: 2, 1, 32>}, {pipeline_mode = #tpu.pipeline_mode<synchronous>, transform_indices = @transform_10, window_bounds = array<i64: 2, 32, 64>}, {pipeline_mode = #tpu.pipeline_mode<synchronous>, transform_indices = @transform_11, window_bounds = array<i64: 2, 1, 64>}, {pipeline_mode = #tpu.pipeline_mode<synchronous>, transform_indices = @transform_12, window_bounds = array<i64: 2, 64, 32>}, {pipeline_mode = #tpu.pipeline_mode<synchronous>, transform_indices = @transform_13, window_bounds = array<i64: 2, 1, 32>}, {pipeline_mode = #tpu.pipeline_mode<synchronous>, transform_indices = @transform_14, window_bounds = array<i64: 2, 1, 32>}, {pipeline_mode = #tpu.pipeline_mode<synchronous>, transform_indices = @transform_15, window_bounds = array<i64: 2, 1, 32>}, {pipeline_mode = #tpu.pipeline_mode<synchronous>, transform_indices = @transform_16, window_bounds = array<i64: 32, 32>}, {pipeline_mode = #tpu.pipeline_mode<synchronous>, transform_indices = @transform_17, window_bounds = array<i64: 1, 32>}, {pipeline_mode = #tpu.pipeline_mode<synchronous>, transform_indices = @transform_18, window_bounds = array<i64: 32, 128>}, {pipeline_mode = #tpu.pipeline_mode<synchronous>, transform_indices = @transform_19, window_bounds = array<i64: 1, 128>}, {pipeline_mode = #tpu.pipeline_mode<synchronous>, transform_indices = @transform_20, window_bounds = array<i64: 2, 128>}]} {
    %c0 = arith.constant 0 : index
    %c0_0 = arith.constant 0 : index
    %0 = vector.load %arg1[%c0, %c0_0] : memref<16x32xf32, #tpu.memory_space<vmem>>, vector<16x32xf32>
    %c0_1 = arith.constant 0 : index
    %c0_2 = arith.constant 0 : index
    %1 = vector.load %arg3[%c0_1, %c0_2] : memref<1x32xf32, #tpu.memory_space<vmem>>, vector<1x32xf32>
    %c0_3 = arith.constant 0 : index
    %c0_4 = arith.constant 0 : index
    %2 = vector.load %arg4[%c0_3, %c0_4] : memref<1x32xf32, #tpu.memory_space<vmem>>, vector<1x32xf32>
    %cst = arith.constant dense<0.000000e+00> : vector<16xf32>
    %3 = vector.multi_reduction <add>, %0, %cst [1] : vector<16x32xf32> to vector<16xf32>
    %4 = vector.shape_cast %3 : vector<16xf32> to vector<16x1xf32>
    %cst_5 = arith.constant 3.200000e+01 : f32
    %5 = vector.broadcast %cst_5 : f32 to vector<16x1xf32>
    %6 = arith.divf %4, %5 : vector<16x1xf32>
    %7 = vector.broadcast %6 : vector<16x1xf32> to vector<16x32xf32>
    %8 = arith.subf %0, %7 : vector<16x32xf32>
    %9 = arith.mulf %8, %8 : vector<16x32xf32>
    %cst_6 = arith.constant dense<0.000000e+00> : vector<16xf32>
    %10 = vector.multi_reduction <add>, %9, %cst_6 [1] : vector<16x32xf32> to vector<16xf32>
    %11 = vector.shape_cast %10 : vector<16xf32> to vector<16x1xf32>
    %cst_7 = arith.constant 3.200000e+01 : f32
    %12 = vector.broadcast %cst_7 : f32 to vector<16x1xf32>
    %13 = arith.divf %11, %12 : vector<16x1xf32>
    %14 = vector.broadcast %6 : vector<16x1xf32> to vector<16x32xf32>
    %15 = arith.subf %0, %14 : vector<16x32xf32>
    %cst_8 = arith.constant 9.99999996E-13 : f32
    %16 = vector.broadcast %cst_8 : f32 to vector<16x1xf32>
    %17 = arith.addf %13, %16 : vector<16x1xf32>
    %18 = math.rsqrt %17 : vector<16x1xf32>
    %19 = vector.broadcast %18 : vector<16x1xf32> to vector<16x32xf32>
    %20 = arith.mulf %15, %19 : vector<16x32xf32>
    %21 = vector.broadcast %1 : vector<1x32xf32> to vector<16x32xf32>
    %22 = arith.mulf %20, %21 : vector<16x32xf32>
    %23 = vector.broadcast %2 : vector<1x32xf32> to vector<16x32xf32>
    %24 = arith.addf %22, %23 : vector<16x32xf32>
    %c0_9 = arith.constant 0 : index
    %c0_10 = arith.constant 0 : index
    %c0_11 = arith.constant 0 : index
    %25 = vector.load %arg2[%c0_9, %c0_10, %c0_11] : memref<2x1x8xf32, #tpu.memory_space<vmem>>, vector<2x1x8xf32>
    %26 = arith.truncf %24 : vector<16x32xf32> to vector<16x32xbf16>
    %c0_12 = arith.constant 0 : index
    %c0_13 = arith.constant 0 : index
    %c0_14 = arith.constant 0 : index
    %27 = vector.load %arg5[%c0_12, %c0_13, %c0_14] : memref<2x32x96xbf16, #tpu.memory_space<vmem>>, vector<1x32x96xbf16>
    %28 = vector.shape_cast %27 : vector<1x32x96xbf16> to vector<32x96xbf16>
    %cst_15 = arith.constant dense<0.000000e+00> : vector<16x96xf32>
    %29 = tpu.matmul %26, %28, %cst_15 {dimension_numbers = #tpu.dot_dimension_numbers<[1], [0], [0], [1], [0, 0, 1, 1], [], []>} : vector<16x32xbf16>, vector<32x96xbf16>, vector<16x96xf32> -> vector<16x96xf32>
    %c0_16 = arith.constant 0 : index
    %c0_17 = arith.constant 0 : index
    %c0_18 = arith.constant 0 : index
    %30 = vector.load %arg6[%c0_16, %c0_17, %c0_18] : memref<2x1x96xf32, #tpu.memory_space<vmem>>, vector<1x1x96xf32>
    %31 = vector.shape_cast %30 : vector<1x1x96xf32> to vector<1x96xf32>
    %32 = vector.broadcast %31 : vector<1x96xf32> to vector<16x96xf32>
    %33 = arith.addf %29, %32 : vector<16x96xf32>
    %34 = arith.truncf %33 : vector<16x96xf32> to vector<16x96xbf16>
    %35 = vector.extract_strided_slice %34 {offsets = [0, 0], sizes = [16, 8], strides = [1, 1]} : vector<16x96xbf16> to vector<16x8xbf16>
    %36 = vector.shape_cast %35 : vector<16x8xbf16> to vector<2x8x8xbf16>
    %37 = vector.extract_strided_slice %34 {offsets = [0, 32], sizes = [16, 8], strides = [1, 1]} : vector<16x96xbf16> to vector<16x8xbf16>
    %38 = vector.shape_cast %37 : vector<16x8xbf16> to vector<2x8x8xbf16>
    %39 = vector.extract_strided_slice %34 {offsets = [0, 64], sizes = [16, 8], strides = [1, 1]} : vector<16x96xbf16> to vector<16x8xbf16>
    %40 = vector.shape_cast %39 : vector<16x8xbf16> to vector<2x8x8xbf16>
    "tpu.trace_start"() <{level = 10 : i32, message = "bqd,bkd->bqk"}> : () -> ()
    %cst_19 = arith.constant dense<0.000000e+00> : vector<2x8x8xf32>
    %41 = tpu.matmul %36, %38, %cst_19 {dimension_numbers = #tpu.dot_dimension_numbers<[2], [2], [1], [1], [0, 0, 0, 1, 1, 1], [0], [0]>} : vector<2x8x8xbf16>, vector<2x8x8xbf16>, vector<2x8x8xf32> -> vector<2x8x8xf32>
    "tpu.trace_stop"() : () -> ()
    %cst_20 = arith.constant 0.353553385 : f32
    %42 = vector.broadcast %cst_20 : f32 to vector<2x8x8xf32>
    %43 = arith.mulf %41, %42 : vector<2x8x8xf32>
    %44 = vector.broadcast %25 : vector<2x1x8xf32> to vector<2x8x8xf32>
    %45 = arith.addf %43, %44 : vector<2x8x8xf32>
    %cst_21 = arith.constant dense<0xFF800000> : vector<2x8xf32>
    %46 = vector.multi_reduction <maximumf>, %45, %cst_21 [2] : vector<2x8x8xf32> to vector<2x8xf32>
    %47 = vector.shape_cast %46 : vector<2x8xf32> to vector<2x8x1xf32>
    %48 = vector.broadcast %47 : vector<2x8x1xf32> to vector<2x8x8xf32>
    %49 = arith.subf %45, %48 : vector<2x8x8xf32>
    %50 = math.exp %49 : vector<2x8x8xf32>
    %cst_22 = arith.constant dense<0.000000e+00> : vector<2x8xf32>
    %51 = vector.multi_reduction <add>, %50, %cst_22 [2] : vector<2x8x8xf32> to vector<2x8xf32>
    %52 = vector.shape_cast %51 : vector<2x8xf32> to vector<2x8x1xf32>
    %53 = tpu.reciprocal %52 {approx = true} : vector<2x8x1xf32> -> vector<2x8x1xf32>
    %54 = vector.broadcast %53 : vector<2x8x1xf32> to vector<2x8x8xf32>
    %55 = arith.mulf %50, %54 : vector<2x8x8xf32>
    %56 = arith.truncf %55 : vector<2x8x8xf32> to vector<2x8x8xbf16>
    "tpu.trace_start"() <{level = 10 : i32, message = "bqk,bkd->bqd"}> : () -> ()
    %cst_23 = arith.constant dense<0.000000e+00> : vector<2x8x8xf32>
    %57 = tpu.matmul %56, %40, %cst_23 {dimension_numbers = #tpu.dot_dimension_numbers<[2], [1], [1], [2], [0, 0, 0, 1, 1, 2], [0], [0]>} : vector<2x8x8xbf16>, vector<2x8x8xbf16>, vector<2x8x8xf32> -> vector<2x8x8xf32>
    "tpu.trace_stop"() : () -> ()
    %58 = vector.extract_strided_slice %34 {offsets = [0, 8], sizes = [16, 8], strides = [1, 1]} : vector<16x96xbf16> to vector<16x8xbf16>
    %59 = vector.shape_cast %58 : vector<16x8xbf16> to vector<2x8x8xbf16>
    %60 = vector.extract_strided_slice %34 {offsets = [0, 40], sizes = [16, 8], strides = [1, 1]} : vector<16x96xbf16> to vector<16x8xbf16>
    %61 = vector.shape_cast %60 : vector<16x8xbf16> to vector<2x8x8xbf16>
    %62 = vector.extract_strided_slice %34 {offsets = [0, 72], sizes = [16, 8], strides = [1, 1]} : vector<16x96xbf16> to vector<16x8xbf16>
    %63 = vector.shape_cast %62 : vector<16x8xbf16> to vector<2x8x8xbf16>
    "tpu.trace_start"() <{level = 10 : i32, message = "bqd,bkd->bqk"}> : () -> ()
    %cst_24 = arith.constant dense<0.000000e+00> : vector<2x8x8xf32>
    %64 = tpu.matmul %59, %61, %cst_24 {dimension_numbers = #tpu.dot_dimension_numbers<[2], [2], [1], [1], [0, 0, 0, 1, 1, 1], [0], [0]>} : vector<2x8x8xbf16>, vector<2x8x8xbf16>, vector<2x8x8xf32> -> vector<2x8x8xf32>
    "tpu.trace_stop"() : () -> ()
    %cst_25 = arith.constant 0.353553385 : f32
    %65 = vector.broadcast %cst_25 : f32 to vector<2x8x8xf32>
    %66 = arith.mulf %64, %65 : vector<2x8x8xf32>
    %67 = vector.broadcast %25 : vector<2x1x8xf32> to vector<2x8x8xf32>
    %68 = arith.addf %66, %67 : vector<2x8x8xf32>
    %cst_26 = arith.constant dense<0xFF800000> : vector<2x8xf32>
    %69 = vector.multi_reduction <maximumf>, %68, %cst_26 [2] : vector<2x8x8xf32> to vector<2x8xf32>
    %70 = vector.shape_cast %69 : vector<2x8xf32> to vector<2x8x1xf32>
    %71 = vector.broadcast %70 : vector<2x8x1xf32> to vector<2x8x8xf32>
    %72 = arith.subf %68, %71 : vector<2x8x8xf32>
    %73 = math.exp %72 : vector<2x8x8xf32>
    %cst_27 = arith.constant dense<0.000000e+00> : vector<2x8xf32>
    %74 = vector.multi_reduction <add>, %73, %cst_27 [2] : vector<2x8x8xf32> to vector<2x8xf32>
    %75 = vector.shape_cast %74 : vector<2x8xf32> to vector<2x8x1xf32>
    %76 = tpu.reciprocal %75 {approx = true} : vector<2x8x1xf32> -> vector<2x8x1xf32>
    %77 = vector.broadcast %76 : vector<2x8x1xf32> to vector<2x8x8xf32>
    %78 = arith.mulf %73, %77 : vector<2x8x8xf32>
    %79 = arith.truncf %78 : vector<2x8x8xf32> to vector<2x8x8xbf16>
    "tpu.trace_start"() <{level = 10 : i32, message = "bqk,bkd->bqd"}> : () -> ()
    %cst_28 = arith.constant dense<0.000000e+00> : vector<2x8x8xf32>
    %80 = tpu.matmul %79, %63, %cst_28 {dimension_numbers = #tpu.dot_dimension_numbers<[2], [1], [1], [2], [0, 0, 0, 1, 1, 2], [0], [0]>} : vector<2x8x8xbf16>, vector<2x8x8xbf16>, vector<2x8x8xf32> -> vector<2x8x8xf32>
    "tpu.trace_stop"() : () -> ()
    %81 = vector.extract_strided_slice %34 {offsets = [0, 16], sizes = [16, 8], strides = [1, 1]} : vector<16x96xbf16> to vector<16x8xbf16>
    %82 = vector.shape_cast %81 : vector<16x8xbf16> to vector<2x8x8xbf16>
    %83 = vector.extract_strided_slice %34 {offsets = [0, 48], sizes = [16, 8], strides = [1, 1]} : vector<16x96xbf16> to vector<16x8xbf16>
    %84 = vector.shape_cast %83 : vector<16x8xbf16> to vector<2x8x8xbf16>
    %85 = vector.extract_strided_slice %34 {offsets = [0, 80], sizes = [16, 8], strides = [1, 1]} : vector<16x96xbf16> to vector<16x8xbf16>
    %86 = vector.shape_cast %85 : vector<16x8xbf16> to vector<2x8x8xbf16>
    "tpu.trace_start"() <{level = 10 : i32, message = "bqd,bkd->bqk"}> : () -> ()
    %cst_29 = arith.constant dense<0.000000e+00> : vector<2x8x8xf32>
    %87 = tpu.matmul %82, %84, %cst_29 {dimension_numbers = #tpu.dot_dimension_numbers<[2], [2], [1], [1], [0, 0, 0, 1, 1, 1], [0], [0]>} : vector<2x8x8xbf16>, vector<2x8x8xbf16>, vector<2x8x8xf32> -> vector<2x8x8xf32>
    "tpu.trace_stop"() : () -> ()
    %cst_30 = arith.constant 0.353553385 : f32
    %88 = vector.broadcast %cst_30 : f32 to vector<2x8x8xf32>
    %89 = arith.mulf %87, %88 : vector<2x8x8xf32>
    %90 = vector.broadcast %25 : vector<2x1x8xf32> to vector<2x8x8xf32>
    %91 = arith.addf %89, %90 : vector<2x8x8xf32>
    %cst_31 = arith.constant dense<0xFF800000> : vector<2x8xf32>
    %92 = vector.multi_reduction <maximumf>, %91, %cst_31 [2] : vector<2x8x8xf32> to vector<2x8xf32>
    %93 = vector.shape_cast %92 : vector<2x8xf32> to vector<2x8x1xf32>
    %94 = vector.broadcast %93 : vector<2x8x1xf32> to vector<2x8x8xf32>
    %95 = arith.subf %91, %94 : vector<2x8x8xf32>
    %96 = math.exp %95 : vector<2x8x8xf32>
    %cst_32 = arith.constant dense<0.000000e+00> : vector<2x8xf32>
    %97 = vector.multi_reduction <add>, %96, %cst_32 [2] : vector<2x8x8xf32> to vector<2x8xf32>
    %98 = vector.shape_cast %97 : vector<2x8xf32> to vector<2x8x1xf32>
    %99 = tpu.reciprocal %98 {approx = true} : vector<2x8x1xf32> -> vector<2x8x1xf32>
    %100 = vector.broadcast %99 : vector<2x8x1xf32> to vector<2x8x8xf32>
    %101 = arith.mulf %96, %100 : vector<2x8x8xf32>
    %102 = arith.truncf %101 : vector<2x8x8xf32> to vector<2x8x8xbf16>
    "tpu.trace_start"() <{level = 10 : i32, message = "bqk,bkd->bqd"}> : () -> ()
    %cst_33 = arith.constant dense<0.000000e+00> : vector<2x8x8xf32>
    %103 = tpu.matmul %102, %86, %cst_33 {dimension_numbers = #tpu.dot_dimension_numbers<[2], [1], [1], [2], [0, 0, 0, 1, 1, 2], [0], [0]>} : vector<2x8x8xbf16>, vector<2x8x8xbf16>, vector<2x8x8xf32> -> vector<2x8x8xf32>
    "tpu.trace_stop"() : () -> ()
    %104 = vector.extract_strided_slice %34 {offsets = [0, 24], sizes = [16, 8], strides = [1, 1]} : vector<16x96xbf16> to vector<16x8xbf16>
    %105 = vector.shape_cast %104 : vector<16x8xbf16> to vector<2x8x8xbf16>
    %106 = vector.extract_strided_slice %34 {offsets = [0, 56], sizes = [16, 8], strides = [1, 1]} : vector<16x96xbf16> to vector<16x8xbf16>
    %107 = vector.shape_cast %106 : vector<16x8xbf16> to vector<2x8x8xbf16>
    %108 = vector.extract_strided_slice %34 {offsets = [0, 88], sizes = [16, 8], strides = [1, 1]} : vector<16x96xbf16> to vector<16x8xbf16>
    %109 = vector.shape_cast %108 : vector<16x8xbf16> to vector<2x8x8xbf16>
    "tpu.trace_start"() <{level = 10 : i32, message = "bqd,bkd->bqk"}> : () -> ()
    %cst_34 = arith.constant dense<0.000000e+00> : vector<2x8x8xf32>
    %110 = tpu.matmul %105, %107, %cst_34 {dimension_numbers = #tpu.dot_dimension_numbers<[2], [2], [1], [1], [0, 0, 0, 1, 1, 1], [0], [0]>} : vector<2x8x8xbf16>, vector<2x8x8xbf16>, vector<2x8x8xf32> -> vector<2x8x8xf32>
    "tpu.trace_stop"() : () -> ()
    %cst_35 = arith.constant 0.353553385 : f32
    %111 = vector.broadcast %cst_35 : f32 to vector<2x8x8xf32>
    %112 = arith.mulf %110, %111 : vector<2x8x8xf32>
    %113 = vector.broadcast %25 : vector<2x1x8xf32> to vector<2x8x8xf32>
    %114 = arith.addf %112, %113 : vector<2x8x8xf32>
    %cst_36 = arith.constant dense<0xFF800000> : vector<2x8xf32>
    %115 = vector.multi_reduction <maximumf>, %114, %cst_36 [2] : vector<2x8x8xf32> to vector<2x8xf32>
    %116 = vector.shape_cast %115 : vector<2x8xf32> to vector<2x8x1xf32>
    %117 = vector.broadcast %116 : vector<2x8x1xf32> to vector<2x8x8xf32>
    %118 = arith.subf %114, %117 : vector<2x8x8xf32>
    %119 = math.exp %118 : vector<2x8x8xf32>
    %cst_37 = arith.constant dense<0.000000e+00> : vector<2x8xf32>
    %120 = vector.multi_reduction <add>, %119, %cst_37 [2] : vector<2x8x8xf32> to vector<2x8xf32>
    %121 = vector.shape_cast %120 : vector<2x8xf32> to vector<2x8x1xf32>
    %122 = tpu.reciprocal %121 {approx = true} : vector<2x8x1xf32> -> vector<2x8x1xf32>
    %123 = vector.broadcast %122 : vector<2x8x1xf32> to vector<2x8x8xf32>
    %124 = arith.mulf %119, %123 : vector<2x8x8xf32>
    %125 = arith.truncf %124 : vector<2x8x8xf32> to vector<2x8x8xbf16>
    "tpu.trace_start"() <{level = 10 : i32, message = "bqk,bkd->bqd"}> : () -> ()
    %cst_38 = arith.constant dense<0.000000e+00> : vector<2x8x8xf32>
    %126 = tpu.matmul %125, %109, %cst_38 {dimension_numbers = #tpu.dot_dimension_numbers<[2], [1], [1], [2], [0, 0, 0, 1, 1, 2], [0], [0]>} : vector<2x8x8xbf16>, vector<2x8x8xbf16>, vector<2x8x8xf32> -> vector<2x8x8xf32>
    "tpu.trace_stop"() : () -> ()
    %127 = tpu.concatenate %57, %80, %103, %126 in 2 : vector<2x8x8xf32>, vector<2x8x8xf32>, vector<2x8x8xf32>, vector<2x8x8xf32> -> vector<2x8x32xf32>
    %128 = vector.shape_cast %127 : vector<2x8x32xf32> to vector<16x32xf32>
    %129 = arith.truncf %128 : vector<16x32xf32> to vector<16x32xbf16>
    %c0_39 = arith.constant 0 : index
    %c0_40 = arith.constant 0 : index
    %c0_41 = arith.constant 0 : index
    %130 = vector.load %arg7[%c0_39, %c0_40, %c0_41] : memref<2x32x32xbf16, #tpu.memory_space<vmem>>, vector<1x32x32xbf16>
    %131 = vector.shape_cast %130 : vector<1x32x32xbf16> to vector<32x32xbf16>
    %cst_42 = arith.constant dense<0.000000e+00> : vector<16x32xf32>
    %132 = tpu.matmul %129, %131, %cst_42 {dimension_numbers = #tpu.dot_dimension_numbers<[1], [0], [0], [1], [0, 0, 1, 1], [], []>} : vector<16x32xbf16>, vector<32x32xbf16>, vector<16x32xf32> -> vector<16x32xf32>
    %c0_43 = arith.constant 0 : index
    %c0_44 = arith.constant 0 : index
    %c0_45 = arith.constant 0 : index
    %133 = vector.load %arg8[%c0_43, %c0_44, %c0_45] : memref<2x1x32xf32, #tpu.memory_space<vmem>>, vector<1x1x32xf32>
    %134 = vector.shape_cast %133 : vector<1x1x32xf32> to vector<1x32xf32>
    %135 = vector.broadcast %134 : vector<1x32xf32> to vector<16x32xf32>
    %136 = arith.addf %132, %135 : vector<16x32xf32>
    %137 = arith.addf %24, %136 : vector<16x32xf32>
    %c0_46 = arith.constant 0 : index
    %c0_47 = arith.constant 0 : index
    %c0_48 = arith.constant 0 : index
    %138 = vector.load %arg9[%c0_46, %c0_47, %c0_48] : memref<2x1x32xf32, #tpu.memory_space<vmem>>, vector<1x1x32xf32>
    %139 = vector.shape_cast %138 : vector<1x1x32xf32> to vector<1x32xf32>
    %c0_49 = arith.constant 0 : index
    %c0_50 = arith.constant 0 : index
    %c0_51 = arith.constant 0 : index
    %140 = vector.load %arg10[%c0_49, %c0_50, %c0_51] : memref<2x1x32xf32, #tpu.memory_space<vmem>>, vector<1x1x32xf32>
    %141 = vector.shape_cast %140 : vector<1x1x32xf32> to vector<1x32xf32>
    %cst_52 = arith.constant dense<0.000000e+00> : vector<16xf32>
    %142 = vector.multi_reduction <add>, %137, %cst_52 [1] : vector<16x32xf32> to vector<16xf32>
    %143 = vector.shape_cast %142 : vector<16xf32> to vector<16x1xf32>
    %cst_53 = arith.constant 3.200000e+01 : f32
    %144 = vector.broadcast %cst_53 : f32 to vector<16x1xf32>
    %145 = arith.divf %143, %144 : vector<16x1xf32>
    %146 = vector.broadcast %145 : vector<16x1xf32> to vector<16x32xf32>
    %147 = arith.subf %137, %146 : vector<16x32xf32>
    %148 = arith.mulf %147, %147 : vector<16x32xf32>
    %cst_54 = arith.constant dense<0.000000e+00> : vector<16xf32>
    %149 = vector.multi_reduction <add>, %148, %cst_54 [1] : vector<16x32xf32> to vector<16xf32>
    %150 = vector.shape_cast %149 : vector<16xf32> to vector<16x1xf32>
    %cst_55 = arith.constant 3.200000e+01 : f32
    %151 = vector.broadcast %cst_55 : f32 to vector<16x1xf32>
    %152 = arith.divf %150, %151 : vector<16x1xf32>
    %153 = vector.broadcast %145 : vector<16x1xf32> to vector<16x32xf32>
    %154 = arith.subf %137, %153 : vector<16x32xf32>
    %cst_56 = arith.constant 9.99999996E-13 : f32
    %155 = vector.broadcast %cst_56 : f32 to vector<16x1xf32>
    %156 = arith.addf %152, %155 : vector<16x1xf32>
    %157 = math.rsqrt %156 : vector<16x1xf32>
    %158 = vector.broadcast %157 : vector<16x1xf32> to vector<16x32xf32>
    %159 = arith.mulf %154, %158 : vector<16x32xf32>
    %160 = vector.broadcast %139 : vector<1x32xf32> to vector<16x32xf32>
    %161 = arith.mulf %159, %160 : vector<16x32xf32>
    %162 = vector.broadcast %141 : vector<1x32xf32> to vector<16x32xf32>
    %163 = arith.addf %161, %162 : vector<16x32xf32>
    %164 = arith.truncf %163 : vector<16x32xf32> to vector<16x32xbf16>
    %c0_57 = arith.constant 0 : index
    %c0_58 = arith.constant 0 : index
    %c0_59 = arith.constant 0 : index
    %165 = vector.load %arg11[%c0_57, %c0_58, %c0_59] : memref<2x32x64xbf16, #tpu.memory_space<vmem>>, vector<1x32x64xbf16>
    %166 = vector.shape_cast %165 : vector<1x32x64xbf16> to vector<32x64xbf16>
    %cst_60 = arith.constant dense<0.000000e+00> : vector<16x64xf32>
    %167 = tpu.matmul %164, %166, %cst_60 {dimension_numbers = #tpu.dot_dimension_numbers<[1], [0], [0], [1], [0, 0, 1, 1], [], []>} : vector<16x32xbf16>, vector<32x64xbf16>, vector<16x64xf32> -> vector<16x64xf32>
    %c0_61 = arith.constant 0 : index
    %c0_62 = arith.constant 0 : index
    %c0_63 = arith.constant 0 : index
    %168 = vector.load %arg12[%c0_61, %c0_62, %c0_63] : memref<2x1x64xf32, #tpu.memory_space<vmem>>, vector<1x1x64xf32>
    %169 = vector.shape_cast %168 : vector<1x1x64xf32> to vector<1x64xf32>
    %170 = vector.broadcast %169 : vector<1x64xf32> to vector<16x64xf32>
    %171 = arith.addf %167, %170 : vector<16x64xf32>
    %cst_64 = arith.constant 5.000000e-01 : f32
    %172 = vector.broadcast %cst_64 : f32 to vector<16x64xf32>
    %173 = arith.mulf %172, %171 : vector<16x64xf32>
    %cst_65 = arith.constant 4.471500e-02 : f32
    %174 = vector.broadcast %cst_65 : f32 to vector<16x64xf32>
    %175 = arith.mulf %174, %171 : vector<16x64xf32>
    %176 = arith.mulf %175, %171 : vector<16x64xf32>
    %177 = arith.mulf %176, %171 : vector<16x64xf32>
    %178 = arith.addf %171, %177 : vector<16x64xf32>
    %cst_66 = arith.constant 0.797884583 : f32
    %179 = vector.broadcast %cst_66 : f32 to vector<16x64xf32>
    %180 = arith.mulf %179, %178 : vector<16x64xf32>
    %181 = math.tanh %180 : vector<16x64xf32>
    %cst_67 = arith.constant 1.000000e+00 : f32
    %182 = vector.broadcast %cst_67 : f32 to vector<16x64xf32>
    %183 = arith.addf %182, %181 : vector<16x64xf32>
    %184 = arith.mulf %173, %183 : vector<16x64xf32>
    %185 = arith.truncf %184 : vector<16x64xf32> to vector<16x64xbf16>
    %c0_68 = arith.constant 0 : index
    %c0_69 = arith.constant 0 : index
    %c0_70 = arith.constant 0 : index
    %186 = vector.load %arg13[%c0_68, %c0_69, %c0_70] : memref<2x64x32xbf16, #tpu.memory_space<vmem>>, vector<1x64x32xbf16>
    %187 = vector.shape_cast %186 : vector<1x64x32xbf16> to vector<64x32xbf16>
    %cst_71 = arith.constant dense<0.000000e+00> : vector<16x32xf32>
    %188 = tpu.matmul %185, %187, %cst_71 {dimension_numbers = #tpu.dot_dimension_numbers<[1], [0], [0], [1], [0, 0, 1, 1], [], []>} : vector<16x64xbf16>, vector<64x32xbf16>, vector<16x32xf32> -> vector<16x32xf32>
    %c0_72 = arith.constant 0 : index
    %c0_73 = arith.constant 0 : index
    %c0_74 = arith.constant 0 : index
    %189 = vector.load %arg14[%c0_72, %c0_73, %c0_74] : memref<2x1x32xf32, #tpu.memory_space<vmem>>, vector<1x1x32xf32>
    %190 = vector.shape_cast %189 : vector<1x1x32xf32> to vector<1x32xf32>
    %191 = vector.broadcast %190 : vector<1x32xf32> to vector<16x32xf32>
    %192 = arith.addf %188, %191 : vector<16x32xf32>
    %193 = arith.addf %163, %192 : vector<16x32xf32>
    %c0_75 = arith.constant 0 : index
    %c0_76 = arith.constant 0 : index
    %c0_77 = arith.constant 0 : index
    %194 = vector.load %arg15[%c0_75, %c0_76, %c0_77] : memref<2x1x32xf32, #tpu.memory_space<vmem>>, vector<1x1x32xf32>
    %195 = vector.shape_cast %194 : vector<1x1x32xf32> to vector<1x32xf32>
    %c0_78 = arith.constant 0 : index
    %c0_79 = arith.constant 0 : index
    %c0_80 = arith.constant 0 : index
    %196 = vector.load %arg16[%c0_78, %c0_79, %c0_80] : memref<2x1x32xf32, #tpu.memory_space<vmem>>, vector<1x1x32xf32>
    %197 = vector.shape_cast %196 : vector<1x1x32xf32> to vector<1x32xf32>
    %cst_81 = arith.constant dense<0.000000e+00> : vector<16xf32>
    %198 = vector.multi_reduction <add>, %193, %cst_81 [1] : vector<16x32xf32> to vector<16xf32>
    %199 = vector.shape_cast %198 : vector<16xf32> to vector<16x1xf32>
    %cst_82 = arith.constant 3.200000e+01 : f32
    %200 = vector.broadcast %cst_82 : f32 to vector<16x1xf32>
    %201 = arith.divf %199, %200 : vector<16x1xf32>
    %202 = vector.broadcast %201 : vector<16x1xf32> to vector<16x32xf32>
    %203 = arith.subf %193, %202 : vector<16x32xf32>
    %204 = arith.mulf %203, %203 : vector<16x32xf32>
    %cst_83 = arith.constant dense<0.000000e+00> : vector<16xf32>
    %205 = vector.multi_reduction <add>, %204, %cst_83 [1] : vector<16x32xf32> to vector<16xf32>
    %206 = vector.shape_cast %205 : vector<16xf32> to vector<16x1xf32>
    %cst_84 = arith.constant 3.200000e+01 : f32
    %207 = vector.broadcast %cst_84 : f32 to vector<16x1xf32>
    %208 = arith.divf %206, %207 : vector<16x1xf32>
    %209 = vector.broadcast %201 : vector<16x1xf32> to vector<16x32xf32>
    %210 = arith.subf %193, %209 : vector<16x32xf32>
    %cst_85 = arith.constant 9.99999996E-13 : f32
    %211 = vector.broadcast %cst_85 : f32 to vector<16x1xf32>
    %212 = arith.addf %208, %211 : vector<16x1xf32>
    %213 = math.rsqrt %212 : vector<16x1xf32>
    %214 = vector.broadcast %213 : vector<16x1xf32> to vector<16x32xf32>
    %215 = arith.mulf %210, %214 : vector<16x32xf32>
    %216 = vector.broadcast %195 : vector<1x32xf32> to vector<16x32xf32>
    %217 = arith.mulf %215, %216 : vector<16x32xf32>
    %218 = vector.broadcast %197 : vector<1x32xf32> to vector<16x32xf32>
    %219 = arith.addf %217, %218 : vector<16x32xf32>
    %220 = arith.truncf %219 : vector<16x32xf32> to vector<16x32xbf16>
    %c1 = arith.constant 1 : index
    %c0_86 = arith.constant 0 : index
    %c0_87 = arith.constant 0 : index
    %221 = vector.load %arg5[%c1, %c0_86, %c0_87] : memref<2x32x96xbf16, #tpu.memory_space<vmem>>, vector<1x32x96xbf16>
    %222 = vector.shape_cast %221 : vector<1x32x96xbf16> to vector<32x96xbf16>
    %cst_88 = arith.constant dense<0.000000e+00> : vector<16x96xf32>
    %223 = tpu.matmul %220, %222, %cst_88 {dimension_numbers = #tpu.dot_dimension_numbers<[1], [0], [0], [1], [0, 0, 1, 1], [], []>} : vector<16x32xbf16>, vector<32x96xbf16>, vector<16x96xf32> -> vector<16x96xf32>
    %c1_89 = arith.constant 1 : index
    %c0_90 = arith.constant 0 : index
    %c0_91 = arith.constant 0 : index
    %224 = vector.load %arg6[%c1_89, %c0_90, %c0_91] : memref<2x1x96xf32, #tpu.memory_space<vmem>>, vector<1x1x96xf32>
    %225 = vector.shape_cast %224 : vector<1x1x96xf32> to vector<1x96xf32>
    %226 = vector.broadcast %225 : vector<1x96xf32> to vector<16x96xf32>
    %227 = arith.addf %223, %226 : vector<16x96xf32>
    %228 = arith.truncf %227 : vector<16x96xf32> to vector<16x96xbf16>
    %229 = vector.extract_strided_slice %228 {offsets = [0, 0], sizes = [16, 8], strides = [1, 1]} : vector<16x96xbf16> to vector<16x8xbf16>
    %230 = vector.shape_cast %229 : vector<16x8xbf16> to vector<2x8x8xbf16>
    %231 = vector.extract_strided_slice %228 {offsets = [0, 32], sizes = [16, 8], strides = [1, 1]} : vector<16x96xbf16> to vector<16x8xbf16>
    %232 = vector.shape_cast %231 : vector<16x8xbf16> to vector<2x8x8xbf16>
    %233 = vector.extract_strided_slice %228 {offsets = [0, 64], sizes = [16, 8], strides = [1, 1]} : vector<16x96xbf16> to vector<16x8xbf16>
    %234 = vector.shape_cast %233 : vector<16x8xbf16> to vector<2x8x8xbf16>
    "tpu.trace_start"() <{level = 10 : i32, message = "bqd,bkd->bqk"}> : () -> ()
    %cst_92 = arith.constant dense<0.000000e+00> : vector<2x8x8xf32>
    %235 = tpu.matmul %230, %232, %cst_92 {dimension_numbers = #tpu.dot_dimension_numbers<[2], [2], [1], [1], [0, 0, 0, 1, 1, 1], [0], [0]>} : vector<2x8x8xbf16>, vector<2x8x8xbf16>, vector<2x8x8xf32> -> vector<2x8x8xf32>
    "tpu.trace_stop"() : () -> ()
    %cst_93 = arith.constant 0.353553385 : f32
    %236 = vector.broadcast %cst_93 : f32 to vector<2x8x8xf32>
    %237 = arith.mulf %235, %236 : vector<2x8x8xf32>
    %238 = vector.broadcast %25 : vector<2x1x8xf32> to vector<2x8x8xf32>
    %239 = arith.addf %237, %238 : vector<2x8x8xf32>
    %cst_94 = arith.constant dense<0xFF800000> : vector<2x8xf32>
    %240 = vector.multi_reduction <maximumf>, %239, %cst_94 [2] : vector<2x8x8xf32> to vector<2x8xf32>
    %241 = vector.shape_cast %240 : vector<2x8xf32> to vector<2x8x1xf32>
    %242 = vector.broadcast %241 : vector<2x8x1xf32> to vector<2x8x8xf32>
    %243 = arith.subf %239, %242 : vector<2x8x8xf32>
    %244 = math.exp %243 : vector<2x8x8xf32>
    %cst_95 = arith.constant dense<0.000000e+00> : vector<2x8xf32>
    %245 = vector.multi_reduction <add>, %244, %cst_95 [2] : vector<2x8x8xf32> to vector<2x8xf32>
    %246 = vector.shape_cast %245 : vector<2x8xf32> to vector<2x8x1xf32>
    %247 = tpu.reciprocal %246 {approx = true} : vector<2x8x1xf32> -> vector<2x8x1xf32>
    %248 = vector.broadcast %247 : vector<2x8x1xf32> to vector<2x8x8xf32>
    %249 = arith.mulf %244, %248 : vector<2x8x8xf32>
    %250 = arith.truncf %249 : vector<2x8x8xf32> to vector<2x8x8xbf16>
    "tpu.trace_start"() <{level = 10 : i32, message = "bqk,bkd->bqd"}> : () -> ()
    %cst_96 = arith.constant dense<0.000000e+00> : vector<2x8x8xf32>
    %251 = tpu.matmul %250, %234, %cst_96 {dimension_numbers = #tpu.dot_dimension_numbers<[2], [1], [1], [2], [0, 0, 0, 1, 1, 2], [0], [0]>} : vector<2x8x8xbf16>, vector<2x8x8xbf16>, vector<2x8x8xf32> -> vector<2x8x8xf32>
    "tpu.trace_stop"() : () -> ()
    %252 = vector.extract_strided_slice %228 {offsets = [0, 8], sizes = [16, 8], strides = [1, 1]} : vector<16x96xbf16> to vector<16x8xbf16>
    %253 = vector.shape_cast %252 : vector<16x8xbf16> to vector<2x8x8xbf16>
    %254 = vector.extract_strided_slice %228 {offsets = [0, 40], sizes = [16, 8], strides = [1, 1]} : vector<16x96xbf16> to vector<16x8xbf16>
    %255 = vector.shape_cast %254 : vector<16x8xbf16> to vector<2x8x8xbf16>
    %256 = vector.extract_strided_slice %228 {offsets = [0, 72], sizes = [16, 8], strides = [1, 1]} : vector<16x96xbf16> to vector<16x8xbf16>
    %257 = vector.shape_cast %256 : vector<16x8xbf16> to vector<2x8x8xbf16>
    "tpu.trace_start"() <{level = 10 : i32, message = "bqd,bkd->bqk"}> : () -> ()
    %cst_97 = arith.constant dense<0.000000e+00> : vector<2x8x8xf32>
    %258 = tpu.matmul %253, %255, %cst_97 {dimension_numbers = #tpu.dot_dimension_numbers<[2], [2], [1], [1], [0, 0, 0, 1, 1, 1], [0], [0]>} : vector<2x8x8xbf16>, vector<2x8x8xbf16>, vector<2x8x8xf32> -> vector<2x8x8xf32>
    "tpu.trace_stop"() : () -> ()
    %cst_98 = arith.constant 0.353553385 : f32
    %259 = vector.broadcast %cst_98 : f32 to vector<2x8x8xf32>
    %260 = arith.mulf %258, %259 : vector<2x8x8xf32>
    %261 = vector.broadcast %25 : vector<2x1x8xf32> to vector<2x8x8xf32>
    %262 = arith.addf %260, %261 : vector<2x8x8xf32>
    %cst_99 = arith.constant dense<0xFF800000> : vector<2x8xf32>
    %263 = vector.multi_reduction <maximumf>, %262, %cst_99 [2] : vector<2x8x8xf32> to vector<2x8xf32>
    %264 = vector.shape_cast %263 : vector<2x8xf32> to vector<2x8x1xf32>
    %265 = vector.broadcast %264 : vector<2x8x1xf32> to vector<2x8x8xf32>
    %266 = arith.subf %262, %265 : vector<2x8x8xf32>
    %267 = math.exp %266 : vector<2x8x8xf32>
    %cst_100 = arith.constant dense<0.000000e+00> : vector<2x8xf32>
    %268 = vector.multi_reduction <add>, %267, %cst_100 [2] : vector<2x8x8xf32> to vector<2x8xf32>
    %269 = vector.shape_cast %268 : vector<2x8xf32> to vector<2x8x1xf32>
    %270 = tpu.reciprocal %269 {approx = true} : vector<2x8x1xf32> -> vector<2x8x1xf32>
    %271 = vector.broadcast %270 : vector<2x8x1xf32> to vector<2x8x8xf32>
    %272 = arith.mulf %267, %271 : vector<2x8x8xf32>
    %273 = arith.truncf %272 : vector<2x8x8xf32> to vector<2x8x8xbf16>
    "tpu.trace_start"() <{level = 10 : i32, message = "bqk,bkd->bqd"}> : () -> ()
    %cst_101 = arith.constant dense<0.000000e+00> : vector<2x8x8xf32>
    %274 = tpu.matmul %273, %257, %cst_101 {dimension_numbers = #tpu.dot_dimension_numbers<[2], [1], [1], [2], [0, 0, 0, 1, 1, 2], [0], [0]>} : vector<2x8x8xbf16>, vector<2x8x8xbf16>, vector<2x8x8xf32> -> vector<2x8x8xf32>
    "tpu.trace_stop"() : () -> ()
    %275 = vector.extract_strided_slice %228 {offsets = [0, 16], sizes = [16, 8], strides = [1, 1]} : vector<16x96xbf16> to vector<16x8xbf16>
    %276 = vector.shape_cast %275 : vector<16x8xbf16> to vector<2x8x8xbf16>
    %277 = vector.extract_strided_slice %228 {offsets = [0, 48], sizes = [16, 8], strides = [1, 1]} : vector<16x96xbf16> to vector<16x8xbf16>
    %278 = vector.shape_cast %277 : vector<16x8xbf16> to vector<2x8x8xbf16>
    %279 = vector.extract_strided_slice %228 {offsets = [0, 80], sizes = [16, 8], strides = [1, 1]} : vector<16x96xbf16> to vector<16x8xbf16>
    %280 = vector.shape_cast %279 : vector<16x8xbf16> to vector<2x8x8xbf16>
    "tpu.trace_start"() <{level = 10 : i32, message = "bqd,bkd->bqk"}> : () -> ()
    %cst_102 = arith.constant dense<0.000000e+00> : vector<2x8x8xf32>
    %281 = tpu.matmul %276, %278, %cst_102 {dimension_numbers = #tpu.dot_dimension_numbers<[2], [2], [1], [1], [0, 0, 0, 1, 1, 1], [0], [0]>} : vector<2x8x8xbf16>, vector<2x8x8xbf16>, vector<2x8x8xf32> -> vector<2x8x8xf32>
    "tpu.trace_stop"() : () -> ()
    %cst_103 = arith.constant 0.353553385 : f32
    %282 = vector.broadcast %cst_103 : f32 to vector<2x8x8xf32>
    %283 = arith.mulf %281, %282 : vector<2x8x8xf32>
    %284 = vector.broadcast %25 : vector<2x1x8xf32> to vector<2x8x8xf32>
    %285 = arith.addf %283, %284 : vector<2x8x8xf32>
    %cst_104 = arith.constant dense<0xFF800000> : vector<2x8xf32>
    %286 = vector.multi_reduction <maximumf>, %285, %cst_104 [2] : vector<2x8x8xf32> to vector<2x8xf32>
    %287 = vector.shape_cast %286 : vector<2x8xf32> to vector<2x8x1xf32>
    %288 = vector.broadcast %287 : vector<2x8x1xf32> to vector<2x8x8xf32>
    %289 = arith.subf %285, %288 : vector<2x8x8xf32>
    %290 = math.exp %289 : vector<2x8x8xf32>
    %cst_105 = arith.constant dense<0.000000e+00> : vector<2x8xf32>
    %291 = vector.multi_reduction <add>, %290, %cst_105 [2] : vector<2x8x8xf32> to vector<2x8xf32>
    %292 = vector.shape_cast %291 : vector<2x8xf32> to vector<2x8x1xf32>
    %293 = tpu.reciprocal %292 {approx = true} : vector<2x8x1xf32> -> vector<2x8x1xf32>
    %294 = vector.broadcast %293 : vector<2x8x1xf32> to vector<2x8x8xf32>
    %295 = arith.mulf %290, %294 : vector<2x8x8xf32>
    %296 = arith.truncf %295 : vector<2x8x8xf32> to vector<2x8x8xbf16>
    "tpu.trace_start"() <{level = 10 : i32, message = "bqk,bkd->bqd"}> : () -> ()
    %cst_106 = arith.constant dense<0.000000e+00> : vector<2x8x8xf32>
    %297 = tpu.matmul %296, %280, %cst_106 {dimension_numbers = #tpu.dot_dimension_numbers<[2], [1], [1], [2], [0, 0, 0, 1, 1, 2], [0], [0]>} : vector<2x8x8xbf16>, vector<2x8x8xbf16>, vector<2x8x8xf32> -> vector<2x8x8xf32>
    "tpu.trace_stop"() : () -> ()
    %298 = vector.extract_strided_slice %228 {offsets = [0, 24], sizes = [16, 8], strides = [1, 1]} : vector<16x96xbf16> to vector<16x8xbf16>
    %299 = vector.shape_cast %298 : vector<16x8xbf16> to vector<2x8x8xbf16>
    %300 = vector.extract_strided_slice %228 {offsets = [0, 56], sizes = [16, 8], strides = [1, 1]} : vector<16x96xbf16> to vector<16x8xbf16>
    %301 = vector.shape_cast %300 : vector<16x8xbf16> to vector<2x8x8xbf16>
    %302 = vector.extract_strided_slice %228 {offsets = [0, 88], sizes = [16, 8], strides = [1, 1]} : vector<16x96xbf16> to vector<16x8xbf16>
    %303 = vector.shape_cast %302 : vector<16x8xbf16> to vector<2x8x8xbf16>
    "tpu.trace_start"() <{level = 10 : i32, message = "bqd,bkd->bqk"}> : () -> ()
    %cst_107 = arith.constant dense<0.000000e+00> : vector<2x8x8xf32>
    %304 = tpu.matmul %299, %301, %cst_107 {dimension_numbers = #tpu.dot_dimension_numbers<[2], [2], [1], [1], [0, 0, 0, 1, 1, 1], [0], [0]>} : vector<2x8x8xbf16>, vector<2x8x8xbf16>, vector<2x8x8xf32> -> vector<2x8x8xf32>
    "tpu.trace_stop"() : () -> ()
    %cst_108 = arith.constant 0.353553385 : f32
    %305 = vector.broadcast %cst_108 : f32 to vector<2x8x8xf32>
    %306 = arith.mulf %304, %305 : vector<2x8x8xf32>
    %307 = vector.broadcast %25 : vector<2x1x8xf32> to vector<2x8x8xf32>
    %308 = arith.addf %306, %307 : vector<2x8x8xf32>
    %cst_109 = arith.constant dense<0xFF800000> : vector<2x8xf32>
    %309 = vector.multi_reduction <maximumf>, %308, %cst_109 [2] : vector<2x8x8xf32> to vector<2x8xf32>
    %310 = vector.shape_cast %309 : vector<2x8xf32> to vector<2x8x1xf32>
    %311 = vector.broadcast %310 : vector<2x8x1xf32> to vector<2x8x8xf32>
    %312 = arith.subf %308, %311 : vector<2x8x8xf32>
    %313 = math.exp %312 : vector<2x8x8xf32>
    %cst_110 = arith.constant dense<0.000000e+00> : vector<2x8xf32>
    %314 = vector.multi_reduction <add>, %313, %cst_110 [2] : vector<2x8x8xf32> to vector<2x8xf32>
    %315 = vector.shape_cast %314 : vector<2x8xf32> to vector<2x8x1xf32>
    %316 = tpu.reciprocal %315 {approx = true} : vector<2x8x1xf32> -> vector<2x8x1xf32>
    %317 = vector.broadcast %316 : vector<2x8x1xf32> to vector<2x8x8xf32>
    %318 = arith.mulf %313, %317 : vector<2x8x8xf32>
    %319 = arith.truncf %318 : vector<2x8x8xf32> to vector<2x8x8xbf16>
    "tpu.trace_start"() <{level = 10 : i32, message = "bqk,bkd->bqd"}> : () -> ()
    %cst_111 = arith.constant dense<0.000000e+00> : vector<2x8x8xf32>
    %320 = tpu.matmul %319, %303, %cst_111 {dimension_numbers = #tpu.dot_dimension_numbers<[2], [1], [1], [2], [0, 0, 0, 1, 1, 2], [0], [0]>} : vector<2x8x8xbf16>, vector<2x8x8xbf16>, vector<2x8x8xf32> -> vector<2x8x8xf32>
    "tpu.trace_stop"() : () -> ()
    %321 = tpu.concatenate %251, %274, %297, %320 in 2 : vector<2x8x8xf32>, vector<2x8x8xf32>, vector<2x8x8xf32>, vector<2x8x8xf32> -> vector<2x8x32xf32>
    %322 = vector.shape_cast %321 : vector<2x8x32xf32> to vector<16x32xf32>
    %323 = arith.truncf %322 : vector<16x32xf32> to vector<16x32xbf16>
    %c1_112 = arith.constant 1 : index
    %c0_113 = arith.constant 0 : index
    %c0_114 = arith.constant 0 : index
    %324 = vector.load %arg7[%c1_112, %c0_113, %c0_114] : memref<2x32x32xbf16, #tpu.memory_space<vmem>>, vector<1x32x32xbf16>
    %325 = vector.shape_cast %324 : vector<1x32x32xbf16> to vector<32x32xbf16>
    %cst_115 = arith.constant dense<0.000000e+00> : vector<16x32xf32>
    %326 = tpu.matmul %323, %325, %cst_115 {dimension_numbers = #tpu.dot_dimension_numbers<[1], [0], [0], [1], [0, 0, 1, 1], [], []>} : vector<16x32xbf16>, vector<32x32xbf16>, vector<16x32xf32> -> vector<16x32xf32>
    %c1_116 = arith.constant 1 : index
    %c0_117 = arith.constant 0 : index
    %c0_118 = arith.constant 0 : index
    %327 = vector.load %arg8[%c1_116, %c0_117, %c0_118] : memref<2x1x32xf32, #tpu.memory_space<vmem>>, vector<1x1x32xf32>
    %328 = vector.shape_cast %327 : vector<1x1x32xf32> to vector<1x32xf32>
    %329 = vector.broadcast %328 : vector<1x32xf32> to vector<16x32xf32>
    %330 = arith.addf %326, %329 : vector<16x32xf32>
    %331 = arith.addf %219, %330 : vector<16x32xf32>
    %c1_119 = arith.constant 1 : index
    %c0_120 = arith.constant 0 : index
    %c0_121 = arith.constant 0 : index
    %332 = vector.load %arg9[%c1_119, %c0_120, %c0_121] : memref<2x1x32xf32, #tpu.memory_space<vmem>>, vector<1x1x32xf32>
    %333 = vector.shape_cast %332 : vector<1x1x32xf32> to vector<1x32xf32>
    %c1_122 = arith.constant 1 : index
    %c0_123 = arith.constant 0 : index
    %c0_124 = arith.constant 0 : index
    %334 = vector.load %arg10[%c1_122, %c0_123, %c0_124] : memref<2x1x32xf32, #tpu.memory_space<vmem>>, vector<1x1x32xf32>
    %335 = vector.shape_cast %334 : vector<1x1x32xf32> to vector<1x32xf32>
    %cst_125 = arith.constant dense<0.000000e+00> : vector<16xf32>
    %336 = vector.multi_reduction <add>, %331, %cst_125 [1] : vector<16x32xf32> to vector<16xf32>
    %337 = vector.shape_cast %336 : vector<16xf32> to vector<16x1xf32>
    %cst_126 = arith.constant 3.200000e+01 : f32
    %338 = vector.broadcast %cst_126 : f32 to vector<16x1xf32>
    %339 = arith.divf %337, %338 : vector<16x1xf32>
    %340 = vector.broadcast %339 : vector<16x1xf32> to vector<16x32xf32>
    %341 = arith.subf %331, %340 : vector<16x32xf32>
    %342 = arith.mulf %341, %341 : vector<16x32xf32>
    %cst_127 = arith.constant dense<0.000000e+00> : vector<16xf32>
    %343 = vector.multi_reduction <add>, %342, %cst_127 [1] : vector<16x32xf32> to vector<16xf32>
    %344 = vector.shape_cast %343 : vector<16xf32> to vector<16x1xf32>
    %cst_128 = arith.constant 3.200000e+01 : f32
    %345 = vector.broadcast %cst_128 : f32 to vector<16x1xf32>
    %346 = arith.divf %344, %345 : vector<16x1xf32>
    %347 = vector.broadcast %339 : vector<16x1xf32> to vector<16x32xf32>
    %348 = arith.subf %331, %347 : vector<16x32xf32>
    %cst_129 = arith.constant 9.99999996E-13 : f32
    %349 = vector.broadcast %cst_129 : f32 to vector<16x1xf32>
    %350 = arith.addf %346, %349 : vector<16x1xf32>
    %351 = math.rsqrt %350 : vector<16x1xf32>
    %352 = vector.broadcast %351 : vector<16x1xf32> to vector<16x32xf32>
    %353 = arith.mulf %348, %352 : vector<16x32xf32>
    %354 = vector.broadcast %333 : vector<1x32xf32> to vector<16x32xf32>
    %355 = arith.mulf %353, %354 : vector<16x32xf32>
    %356 = vector.broadcast %335 : vector<1x32xf32> to vector<16x32xf32>
    %357 = arith.addf %355, %356 : vector<16x32xf32>
    %358 = arith.truncf %357 : vector<16x32xf32> to vector<16x32xbf16>
    %c1_130 = arith.constant 1 : index
    %c0_131 = arith.constant 0 : index
    %c0_132 = arith.constant 0 : index
    %359 = vector.load %arg11[%c1_130, %c0_131, %c0_132] : memref<2x32x64xbf16, #tpu.memory_space<vmem>>, vector<1x32x64xbf16>
    %360 = vector.shape_cast %359 : vector<1x32x64xbf16> to vector<32x64xbf16>
    %cst_133 = arith.constant dense<0.000000e+00> : vector<16x64xf32>
    %361 = tpu.matmul %358, %360, %cst_133 {dimension_numbers = #tpu.dot_dimension_numbers<[1], [0], [0], [1], [0, 0, 1, 1], [], []>} : vector<16x32xbf16>, vector<32x64xbf16>, vector<16x64xf32> -> vector<16x64xf32>
    %c1_134 = arith.constant 1 : index
    %c0_135 = arith.constant 0 : index
    %c0_136 = arith.constant 0 : index
    %362 = vector.load %arg12[%c1_134, %c0_135, %c0_136] : memref<2x1x64xf32, #tpu.memory_space<vmem>>, vector<1x1x64xf32>
    %363 = vector.shape_cast %362 : vector<1x1x64xf32> to vector<1x64xf32>
    %364 = vector.broadcast %363 : vector<1x64xf32> to vector<16x64xf32>
    %365 = arith.addf %361, %364 : vector<16x64xf32>
    %cst_137 = arith.constant 5.000000e-01 : f32
    %366 = vector.broadcast %cst_137 : f32 to vector<16x64xf32>
    %367 = arith.mulf %366, %365 : vector<16x64xf32>
    %cst_138 = arith.constant 4.471500e-02 : f32
    %368 = vector.broadcast %cst_138 : f32 to vector<16x64xf32>
    %369 = arith.mulf %368, %365 : vector<16x64xf32>
    %370 = arith.mulf %369, %365 : vector<16x64xf32>
    %371 = arith.mulf %370, %365 : vector<16x64xf32>
    %372 = arith.addf %365, %371 : vector<16x64xf32>
    %cst_139 = arith.constant 0.797884583 : f32
    %373 = vector.broadcast %cst_139 : f32 to vector<16x64xf32>
    %374 = arith.mulf %373, %372 : vector<16x64xf32>
    %375 = math.tanh %374 : vector<16x64xf32>
    %cst_140 = arith.constant 1.000000e+00 : f32
    %376 = vector.broadcast %cst_140 : f32 to vector<16x64xf32>
    %377 = arith.addf %376, %375 : vector<16x64xf32>
    %378 = arith.mulf %367, %377 : vector<16x64xf32>
    %379 = arith.truncf %378 : vector<16x64xf32> to vector<16x64xbf16>
    %c1_141 = arith.constant 1 : index
    %c0_142 = arith.constant 0 : index
    %c0_143 = arith.constant 0 : index
    %380 = vector.load %arg13[%c1_141, %c0_142, %c0_143] : memref<2x64x32xbf16, #tpu.memory_space<vmem>>, vector<1x64x32xbf16>
    %381 = vector.shape_cast %380 : vector<1x64x32xbf16> to vector<64x32xbf16>
    %cst_144 = arith.constant dense<0.000000e+00> : vector<16x32xf32>
    %382 = tpu.matmul %379, %381, %cst_144 {dimension_numbers = #tpu.dot_dimension_numbers<[1], [0], [0], [1], [0, 0, 1, 1], [], []>} : vector<16x64xbf16>, vector<64x32xbf16>, vector<16x32xf32> -> vector<16x32xf32>
    %c1_145 = arith.constant 1 : index
    %c0_146 = arith.constant 0 : index
    %c0_147 = arith.constant 0 : index
    %383 = vector.load %arg14[%c1_145, %c0_146, %c0_147] : memref<2x1x32xf32, #tpu.memory_space<vmem>>, vector<1x1x32xf32>
    %384 = vector.shape_cast %383 : vector<1x1x32xf32> to vector<1x32xf32>
    %385 = vector.broadcast %384 : vector<1x32xf32> to vector<16x32xf32>
    %386 = arith.addf %382, %385 : vector<16x32xf32>
    %387 = arith.addf %357, %386 : vector<16x32xf32>
    %c1_148 = arith.constant 1 : index
    %c0_149 = arith.constant 0 : index
    %c0_150 = arith.constant 0 : index
    %388 = vector.load %arg15[%c1_148, %c0_149, %c0_150] : memref<2x1x32xf32, #tpu.memory_space<vmem>>, vector<1x1x32xf32>
    %389 = vector.shape_cast %388 : vector<1x1x32xf32> to vector<1x32xf32>
    %c1_151 = arith.constant 1 : index
    %c0_152 = arith.constant 0 : index
    %c0_153 = arith.constant 0 : index
    %390 = vector.load %arg16[%c1_151, %c0_152, %c0_153] : memref<2x1x32xf32, #tpu.memory_space<vmem>>, vector<1x1x32xf32>
    %391 = vector.shape_cast %390 : vector<1x1x32xf32> to vector<1x32xf32>
    %cst_154 = arith.constant dense<0.000000e+00> : vector<16xf32>
    %392 = vector.multi_reduction <add>, %387, %cst_154 [1] : vector<16x32xf32> to vector<16xf32>
    %393 = vector.shape_cast %392 : vector<16xf32> to vector<16x1xf32>
    %cst_155 = arith.constant 3.200000e+01 : f32
    %394 = vector.broadcast %cst_155 : f32 to vector<16x1xf32>
    %395 = arith.divf %393, %394 : vector<16x1xf32>
    %396 = vector.broadcast %395 : vector<16x1xf32> to vector<16x32xf32>
    %397 = arith.subf %387, %396 : vector<16x32xf32>
    %398 = arith.mulf %397, %397 : vector<16x32xf32>
    %cst_156 = arith.constant dense<0.000000e+00> : vector<16xf32>
    %399 = vector.multi_reduction <add>, %398, %cst_156 [1] : vector<16x32xf32> to vector<16xf32>
    %400 = vector.shape_cast %399 : vector<16xf32> to vector<16x1xf32>
    %cst_157 = arith.constant 3.200000e+01 : f32
    %401 = vector.broadcast %cst_157 : f32 to vector<16x1xf32>
    %402 = arith.divf %400, %401 : vector<16x1xf32>
    %403 = vector.broadcast %395 : vector<16x1xf32> to vector<16x32xf32>
    %404 = arith.subf %387, %403 : vector<16x32xf32>
    %cst_158 = arith.constant 9.99999996E-13 : f32
    %405 = vector.broadcast %cst_158 : f32 to vector<16x1xf32>
    %406 = arith.addf %402, %405 : vector<16x1xf32>
    %407 = math.rsqrt %406 : vector<16x1xf32>
    %408 = vector.broadcast %407 : vector<16x1xf32> to vector<16x32xf32>
    %409 = arith.mulf %404, %408 : vector<16x32xf32>
    %410 = vector.broadcast %389 : vector<1x32xf32> to vector<16x32xf32>
    %411 = arith.mulf %409, %410 : vector<16x32xf32>
    %412 = vector.broadcast %391 : vector<1x32xf32> to vector<16x32xf32>
    %413 = arith.addf %411, %412 : vector<16x32xf32>
    %414 = vector.extract_strided_slice %413 {offsets = [0, 0], sizes = [1, 32], strides = [1, 1]} : vector<16x32xf32> to vector<1x32xf32>
    %415 = vector.extract_strided_slice %413 {offsets = [8, 0], sizes = [1, 32], strides = [1, 1]} : vector<16x32xf32> to vector<1x32xf32>
    %416 = tpu.concatenate %414, %415 in 0 : vector<1x32xf32>, vector<1x32xf32> -> vector<2x32xf32>
    %417 = arith.truncf %416 : vector<2x32xf32> to vector<2x32xbf16>
    %c0_159 = arith.constant 0 : index
    %c0_160 = arith.constant 0 : index
    %418 = vector.load %arg17[%c0_159, %c0_160] : memref<32x32xbf16, #tpu.memory_space<vmem>>, vector<32x32xbf16>
    %cst_161 = arith.constant dense<0.000000e+00> : vector<2x32xf32>
    %419 = tpu.matmul %417, %418, %cst_161 {dimension_numbers = #tpu.dot_dimension_numbers<[1], [0], [0], [1], [0, 0, 1, 1], [], []>} : vector<2x32xbf16>, vector<32x32xbf16>, vector<2x32xf32> -> vector<2x32xf32>
    %c0_162 = arith.constant 0 : index
    %c0_163 = arith.constant 0 : index
    %420 = vector.load %arg18[%c0_162, %c0_163] : memref<1x32xf32, #tpu.memory_space<vmem>>, vector<1x32xf32>
    %421 = vector.broadcast %420 : vector<1x32xf32> to vector<2x32xf32>
    %422 = arith.addf %419, %421 : vector<2x32xf32>
    %423 = math.tanh %422 : vector<2x32xf32>
    %424 = arith.truncf %423 : vector<2x32xf32> to vector<2x32xbf16>
    %c0_164 = arith.constant 0 : index
    %c0_165 = arith.constant 0 : index
    %425 = vector.load %arg19[%c0_164, %c0_165] : memref<32x128xbf16, #tpu.memory_space<vmem>>, vector<32x128xbf16>
    %cst_166 = arith.constant dense<0.000000e+00> : vector<2x128xf32>
    %426 = tpu.matmul %424, %425, %cst_166 {dimension_numbers = #tpu.dot_dimension_numbers<[1], [0], [0], [1], [0, 0, 1, 1], [], []>} : vector<2x32xbf16>, vector<32x128xbf16>, vector<2x128xf32> -> vector<2x128xf32>
    %c0_167 = arith.constant 0 : index
    %c0_168 = arith.constant 0 : index
    %427 = vector.load %arg20[%c0_167, %c0_168] : memref<1x128xf32, #tpu.memory_space<vmem>>, vector<1x128xf32>
    %428 = vector.broadcast %427 : vector<1x128xf32> to vector<2x128xf32>
    %429 = arith.addf %426, %428 : vector<2x128xf32>
    %cst_169 = arith.constant dense<0xFF800000> : vector<2xf32>
    %430 = vector.multi_reduction <maximumf>, %429, %cst_169 [1] : vector<2x128xf32> to vector<2xf32>
    %431 = vector.shape_cast %430 : vector<2xf32> to vector<2x1xf32>
    %432 = vector.broadcast %431 : vector<2x1xf32> to vector<2x128xf32>
    %433 = arith.subf %429, %432 : vector<2x128xf32>
    %434 = math.exp %433 : vector<2x128xf32>
    %cst_170 = arith.constant dense<0.000000e+00> : vector<2xf32>
    %435 = vector.multi_reduction <add>, %434, %cst_170 [1] : vector<2x128xf32> to vector<2xf32>
    %436 = vector.shape_cast %435 : vector<2xf32> to vector<2x1xf32>
    %437 = tpu.reciprocal %436 : vector<2x1xf32> -> vector<2x1xf32>
    %438 = vector.broadcast %437 : vector<2x1xf32> to vector<2x128xf32>
    %439 = arith.mulf %434, %438 : vector<2x128xf32>
    %c0_171 = arith.constant 0 : index
    %c0_172 = arith.constant 0 : index
    %440 = vector.load %arg21[%c0_171, %c0_172] : memref<2x128xf32, #tpu.memory_space<vmem>>, vector<2x128xf32>
    tpu.vector_store %arg21[%c0_171, %c0_172], %439 {strides = array<i32>} : memref<2x128xf32, #tpu.memory_space<vmem>>, vector<2x128xf32>,
    return
  }
  func.func @transform_0(%arg0: i32) -> (i32, i32) {
    %c0_i32 = arith.constant 0 : i32
    %c0_i32_0 = arith.constant 0 : i32
    %c0_i32_1 = arith.constant 0 : i32
    return %c0_i32, %c0_i32_0 : i32, i32
  }
  func.func @transform_1(%arg0: i32) -> (i32, i32, i32) {
    %c0_i32 = arith.constant 0 : i32
    %c0_i32_0 = arith.constant 0 : i32
    %c0_i32_1 = arith.constant 0 : i32
    %c0_i32_2 = arith.constant 0 : i32
    return %c0_i32, %c0_i32_0, %c0_i32_1 : i32, i32, i32
  }
  func.func @transform_2(%arg0: i32) -> (i32, i32) {
    %c0_i32 = arith.constant 0 : i32
    %c0_i32_0 = arith.constant 0 : i32
    %c0_i32_1 = arith.constant 0 : i32
    return %c0_i32, %c0_i32_0 : i32, i32
  }
  func.func @transform_3(%arg0: i32) -> (i32, i32) {
    %c0_i32 = arith.constant 0 : i32
    %c0_i32_0 = arith.constant 0 : i32
    %c0_i32_1 = arith.constant 0 : i32
    return %c0_i32, %c0_i32_0 : i32, i32
  }
  func.func @transform_4(%arg0: i32) -> (i32, i32, i32) {
    %c0_i32 = arith.constant 0 : i32
    %c0_i32_0 = arith.constant 0 : i32
    %c0_i32_1 = arith.constant 0 : i32
    %c0_i32_2 = arith.constant 0 : i32
    return %c0_i32, %c0_i32_0, %c0_i32_1 : i32, i32, i32
  }
  func.func @transform_5(%arg0: i32) -> (i32, i32, i32) {
    %c0_i32 = arith.constant 0 : i32
    %c0_i32_0 = arith.constant 0 : i32
    %c0_i32_1 = arith.constant 0 : i32
    %c0_i32_2 = arith.constant 0 : i32
    return %c0_i32, %c0_i32_0, %c0_i32_1 : i32, i32, i32
  }
  func.func @transform_6(%arg0: i32) -> (i32, i32, i32) {
    %c0_i32 = arith.constant 0 : i32
    %c0_i32_0 = arith.constant 0 : i32
    %c0_i32_1 = arith.constant 0 : i32
    %c0_i32_2 = arith.constant 0 : i32
    return %c0_i32, %c0_i32_0, %c0_i32_1 : i32, i32, i32
  }
  func.func @transform_7(%arg0: i32) -> (i32, i32, i32) {
    %c0_i32 = arith.constant 0 : i32
    %c0_i32_0 = arith.constant 0 : i32
    %c0_i32_1 = arith.constant 0 : i32
    %c0_i32_2 = arith.constant 0 : i32
    return %c0_i32, %c0_i32_0, %c0_i32_1 : i32, i32, i32
  }
  func.func @transform_8(%arg0: i32) -> (i32, i32, i32) {
    %c0_i32 = arith.constant 0 : i32
    %c0_i32_0 = arith.constant 0 : i32
    %c0_i32_1 = arith.constant 0 : i32
    %c0_i32_2 = arith.constant 0 : i32
    return %c0_i32, %c0_i32_0, %c0_i32_1 : i32, i32, i32
  }
  func.func @transform_9(%arg0: i32) -> (i32, i32, i32) {
    %c0_i32 = arith.constant 0 : i32
    %c0_i32_0 = arith.constant 0 : i32
    %c0_i32_1 = arith.constant 0 : i32
    %c0_i32_2 = arith.constant 0 : i32
    return %c0_i32, %c0_i32_0, %c0_i32_1 : i32, i32, i32
  }
  func.func @transform_10(%arg0: i32) -> (i32, i32, i32) {
    %c0_i32 = arith.constant 0 : i32
    %c0_i32_0 = arith.constant 0 : i32
    %c0_i32_1 = arith.constant 0 : i32
    %c0_i32_2 = arith.constant 0 : i32
    return %c0_i32, %c0_i32_0, %c0_i32_1 : i32, i32, i32
  }
  func.func @transform_11(%arg0: i32) -> (i32, i32, i32) {
    %c0_i32 = arith.constant 0 : i32
    %c0_i32_0 = arith.constant 0 : i32
    %c0_i32_1 = arith.constant 0 : i32
    %c0_i32_2 = arith.constant 0 : i32
    return %c0_i32, %c0_i32_0, %c0_i32_1 : i32, i32, i32
  }
  func.func @transform_12(%arg0: i32) -> (i32, i32, i32) {
    %c0_i32 = arith.constant 0 : i32
    %c0_i32_0 = arith.constant 0 : i32
    %c0_i32_1 = arith.constant 0 : i32
    %c0_i32_2 = arith.constant 0 : i32
    return %c0_i32, %c0_i32_0, %c0_i32_1 : i32, i32, i32
  }
  func.func @transform_13(%arg0: i32) -> (i32, i32, i32) {
    %c0_i32 = arith.constant 0 : i32
    %c0_i32_0 = arith.constant 0 : i32
    %c0_i32_1 = arith.constant 0 : i32
    %c0_i32_2 = arith.constant 0 : i32
    return %c0_i32, %c0_i32_0, %c0_i32_1 : i32, i32, i32
  }
  func.func @transform_14(%arg0: i32) -> (i32, i32, i32) {
    %c0_i32 = arith.constant 0 : i32
    %c0_i32_0 = arith.constant 0 : i32
    %c0_i32_1 = arith.constant 0 : i32
    %c0_i32_2 = arith.constant 0 : i32
    return %c0_i32, %c0_i32_0, %c0_i32_1 : i32, i32, i32
  }
  func.func @transform_15(%arg0: i32) -> (i32, i32, i32) {
    %c0_i32 = arith.constant 0 : i32
    %c0_i32_0 = arith.constant 0 : i32
    %c0_i32_1 = arith.constant 0 : i32
    %c0_i32_2 = arith.constant 0 : i32
    return %c0_i32, %c0_i32_0, %c0_i32_1 : i32, i32, i32
  }
  func.func @transform_16(%arg0: i32) -> (i32, i32) {
    %c0_i32 = arith.constant 0 : i32
    %c0_i32_0 = arith.constant 0 : i32
    %c0_i32_1 = arith.constant 0 : i32
    return %c0_i32, %c0_i32_0 : i32, i32
  }
  func.func @transform_17(%arg0: i32) -> (i32, i32) {
    %c0_i32 = arith.constant 0 : i32
    %c0_i32_0 = arith.constant 0 : i32
    %c0_i32_1 = arith.constant 0 : i32
    return %c0_i32, %c0_i32_0 : i32, i32
  }
  func.func @transform_18(%arg0: i32) -> (i32, i32) {
    %c0_i32 = arith.constant 0 : i32
    %c0_i32_0 = arith.constant 0 : i32
    %c0_i32_1 = arith.constant 0 : i32
    return %c0_i32, %c0_i32_0 : i32, i32
  }
  func.func @transform_19(%arg0: i32) -> (i32, i32) {
    %c0_i32 = arith.constant 0 : i32
    %c0_i32_0 = arith.constant 0 : i32
    %c0_i32_1 = arith.constant 0 : i32
    return %c0_i32, %c0_i32_0 : i32, i32
  }
  func.func @transform_20(%arg0: i32) -> (i32, i32) {
    %c0_i32 = arith.constant 0 : i32
    %c0_i32_0 = arith.constant 0 : i32
    %c0_i32_1 = arith.constant 0 : i32
    return %c0_i32, %c0_i32_0 : i32, i32
  }
}

</mosaic_0001>

<bundles_post_ra>
// kernel: bert_error_sentence_detector_forward.1
= control target key start
LH: loop header
LB: loop body
LE: loop exit
PB: predicated region body
PF: predicated region fallthrough
CT: control target
= control target key end

     0   :  { %s4400_s0 = inlined_call_operand.vmem [shape: f32[16,32], index: 0, kind: input, shape index: {}]   ;;  %s4401_s1 = inlined_call_operand.vmem [shape: f32[2,1,8], index: 1, kind: input, shape index: {}]   ;;  %s4402_s2 = inlined_call_operand.vmem [shape: f32[1,32], index: 2, kind: input, shape index: {}]   ;;  %s4403_s3 = inlined_call_operand.vmem [shape: f32[1,32], index: 3, kind: input, shape index: {}]   ;;  %s4404_s4 = inlined_call_operand.vmem [shape: bf16[2,32,96], index: 4, kind: input, shape index: {}]   ;;  %s4405_s5 = inlined_call_operand.vmem [shape: f32[2,1,96], index: 5, kind: input, shape index: {}]   ;;  %s4406_s6 = inlined_call_operand.vmem [shape: bf16[2,32,32], index: 6, kind: input, shape index: {}]   ;;  %s4407_s7 = inlined_call_operand.vmem [shape: f32[2,1,32], index: 7, kind: input, shape index: {}]   ;;  %s4408_s8 = inlined_call_operand.vmem [shape: f32[2,1,32], index: 8, kind: input, shape index: {}]   ;;  %s4409_s9 = inlined_call_operand.vmem [shape: f32[2,1,32], index: 9, kind: input, shape index: {}]   ;;  %s4410_s10 = inlined_call_operand.vmem [shape: bf16[2,32,64], index: 10, kind: input, shape index: {}]   ;;  %s4411_s11 = inlined_call_operand.vmem [shape: f32[2,1,64], index: 11, kind: input, shape index: {}]   ;;  %s4412_s12 = inlined_call_operand.vmem [shape: bf16[2,64,32], index: 12, kind: input, shape index: {}]   ;;  %s4413_s13 = inlined_call_operand.vmem [shape: f32[2,1,32], index: 13, kind: input, shape index: {}]   ;;  %s4414_s14 = inlined_call_operand.vmem [shape: f32[2,1,32], index: 14, kind: input, shape index: {}]   ;;  %s4415_s15 = inlined_call_operand.vmem [shape: f32[2,1,32], index: 15, kind: input, shape index: {}]   ;;  %s4416_s16 = inlined_call_operand.vmem [shape: bf16[32,32], index: 16, kind: input, shape index: {}]   ;;  %s4417_s17 = inlined_call_operand.vmem [shape: f32[1,32], index: 17, kind: input, shape index: {}]   ;;  %s4418_s18 = inlined_call_operand.vmem [shape: bf16[32,128], index: 18, kind: input, shape index: {}]   ;;  %s4419_s19 = inlined_call_operand.vmem [shape: f32[1,128], index: 19, kind: input, shape index: {}]   ;;  %s4420_s20 = inlined_call_operand.hbm [shape: f32[2,128], index: 20, kind: output, shape index: {}]  }
   0x1   :  { %4439 = sst [smem:[#allocation5_spill]] %s4400_s0 }
   0x2   :  { %4440 = sst [smem:[#allocation6_spill]] %s4401_s1 }
   0x3   :  { %4441 = sst [smem:[#allocation7_spill]] %s4402_s2 }
   0x4   :  { %4442 = sst [smem:[#allocation8_spill]] %s4403_s3 }
   0x5   :  { %4443 = sst [smem:[#allocation9_spill]] %s4404_s4 }
   0x6   :  { %s4444_s23 = sld [smem:[#allocation5_spill]]  ;;  %vm71_vm0 = vcmask 261120  }
   0xc   :  { %v67_v0 = vld [vmem:[%s4444_s23] sm:$0xff]  ;;  %v68_v1 = vld [vmem:[%s4444_s23 + $0x8] sm:$0xff] }
   0xd   :  { %v72_v2 = vsel %vm71_vm0, %v67_v0, 0.0  ;;  %v75_v3 = vsel %vm71_vm0, %v68_v1, 0.0 }
   0xe   :  { %73 = vadd.xlane.f32.xlu0 %v72_v2 }
  0x12   :  { %76 = vadd.xlane.f32.xlu0 %v75_v3 }
  0x13   :  { %25 = vsyncpa [#allocation3], 0  ;;  %s4445_s26 = sld [smem:[#allocation9_spill]]  ;;  %v3662_v15 = vmov 0.0   ;;  %vm3663_vm1 = vmmov 0   ;;  %s4446_s30 = sld [smem:[#allocation7_spill]] }
  0x14   :  { %3187 = vmatprep.subr.bf16.mxu0 %v3662_v15  ;;  %3191 = vmatprep.mubr.msk.bf16.mxu0 %vm3663_vm1, %v3662_v15  ;;  %s4447_s1 = sld [smem:[#allocation8_spill]]  ;;  %v2967_v34 = vld [vmem:[%s4405_s5] ss:$0 sm:$0xff]  ;;  %s3664_s24 = smov 96   ;;  %vm193_vm2 = vcmask 64512   ;;  %vm333_vm3 = vcmask 1043456  }
  0x15   :  { %3195 = vmatprep.subr.bf16.mxu1 %v3662_v15  ;;  %3197 = vmatprep.mubr.msk.bf16.mxu1 %vm3663_vm1, %v3662_v15  ;;  %s4448_s3 = sld [smem:[#allocation6_spill]]  ;;  %s3665_s4 = smov 64   ;;  %vm1123_vm4 = vcmask 130048   ;;  %vm1126_vm5 = vcmask 195584   ;;  %vm1369_vm6 = vcmask 523264   ;;  %vm2801_vm7 = vcmask 1040384  }
  0x16   :  { %s3666_s29 = smov 88   ;;  %s3668_s0 = smov 56   ;;  %vm2938_vm8 = vcmask 1041408  }
  0x17   :  { %s4437_s21 = smov 80   ;;  %s4433_s22 = smov 48  }
  0x18   :  { %s4431_s23 = smov 72   ;;  %s4428_s2 = smov 104  }
  0x19   :  { %v3514_v14 = vld [vmem:[%s4445_s26] sm:$0xff]   ;;  %v3515_v16 = vld [vmem:[%s4445_s26 + $0x8] sm:$0xff]   ;;  %s4426_s25 = smov 40   ;;  %s4425_s27 = smov 8  }
  0x1a   :  { %3188 = vmatpush3.bf16.msra.mxu0 %v3514_v14  ;;  %v2965_v25 = vld [vmem:[%s4446_s30] ss:$0 sm:$0xff]  ;;  %s3667_s30 = smov 120   ;;  %s4424_s28 = smov 16  }
  0x1b   :  { %3189 = vmatprep.subr.bf16.mxu0 %v3662_v15  ;;  %v2966_v29 = vld [vmem:[%s4447_s1] ss:$0 sm:$0xff]  ;;  %v3854_v53 = vld [vmem:[%s4448_s3 + $0x1] ss:$0 sm:$0xff]  ;;  %s4435_s1 = smov 112  }
  0x1c   :  { %v3849_v48 = vld [vmem:[%s4448_s3] ss:$0 sm:$0xff] }
  0x1e   :  { %3190 = vmatpush3.bf16.msra.mxu0 %v3515_v16 }
  0x1f   :  { %3201 = vmatprep.subr.bf16.mxu0 %v3662_v15 }
  0x9b   :  { %v74_v4 = vpop.xlane.xlu0 %73 }
  0x9c   :  { %v79_v5 = vmul.f32 0.03125, %v74_v4 }
  0x9e   :  { %v81_v6 = vsub.f32 %v67_v0, %v79_v5 }
  0x9f   :  { %v77_v7 = vpop.xlane.xlu0 %76 }
  0xa0   :  { %v80_v8 = vmul.f32 0.03125, %v77_v7  ;;  %v83_v9 = vmul.f32 %v81_v6, %v81_v6 }
  0xa2   :  { %v82_v10 = vsub.f32 %v68_v1, %v80_v8  ;;  %v85_v11 = vsel %vm71_vm0, %v83_v9, 0.0 }
  0xa3   :  { %86 = vadd.xlane.f32.xlu1 %v85_v11 }
  0xa4   :  { %v84_v12 = vmul.f32 %v82_v10, %v82_v10 }
  0xa6   :  { %v88_v13 = vsel %vm71_vm0, %v84_v12, 0.0 }
  0xa7   :  { %89 = vadd.xlane.f32.xlu1 %v88_v13 }
 0x130   :  { %v87_v17 = vpop.xlane.xlu1 %86 }
 0x131   :  { %v91_v18 = vmul.f32 0.03125, %v87_v17 }
 0x133   :  { %v93_v19 = vadd.f32 1e-12, %v91_v18 }
 0x134   :  { %v90_v20 = vpop.xlane.xlu1 %89 }
 0x135   :  { %3538 = vrsqrt.f32 %v93_v19  ;;  %v92_v21 = vmul.f32 0.03125, %v90_v20 }
 0x137   :  { %v94_v22 = vadd.f32 1e-12, %v92_v21 }
 0x139   :  { %3540 = vrsqrt.f32 %v94_v22 }
 0x13f   :  { %v3539_v23 = vpop.eup %3538 }
 0x140   :  { %v97_v24 = vmul.f32 %v3539_v23, %v81_v6 }
 0x142   :  { %v105_v28 = vmul.f32 %v2965_v25, %v97_v24 }
 0x143   :  { %v3541_v26 = vpop.eup %3540 }
 0x144   :  { %v98_v27 = vmul.f32 %v3541_v26, %v82_v10  ;;  %v3814_v31 = vadd.f32 %v2966_v29, %v105_v28 }
 0x146   :  { %v106_v30 = vmul.f32 %v2965_v25, %v98_v27 }
 0x148   :  { %v3816_v32 = vadd.f32 %v2966_v29, %v106_v30 }
 0x14a   :  { %v117_v33 = vpack.c.bf16 %v3816_v32, %v3814_v31 }
 0x14c   :  { %3192 = vmatmul.mubr.msk.bf16.vlgmr.msra.gmra.mrb[0].mxu0 %vm71_vm0, %v117_v33 }
 0x14d   :  { %3203 = vmatprep.mubr.msk.bf16.mxu0 %vm3663_vm1, %v3662_v15 }
 0x21f   :  { %v178_v35 = vpop.f32.mrb[0].mxu0 }
 0x220   :  { %v179_v36 = vadd.f32 %v2967_v34, %v178_v35  ;;  %v3193_v37 = vpop.f32.mrb[1].mxu0 }
 0x221   :  { %v181_v38 = vpop.f32.mrb[2].mxu0 }
 0x222   :  { %v3826_v39 = vpack.c.bf16 %v179_v36, %v179_v36  ;;  %v182_v40 = vadd.f32 %v2967_v34, %v181_v38  ;;  %v3194_v41 = vpop.f32.mrb[3].mxu0 }
 0x224   :  { %v3828_v42 = vpack.c.bf16 %v182_v40, %v182_v40  ;;  %191 = vrot.lane.b32.xlu0 %v3826_v39, %s3664_s24 }
 0x226   :  { %240 = vrot.lane.b32.xlu1 %v3828_v42, %s3664_s24 }
 0x296   :  { %v192_v43 = vpop.permute.xlu0 %191 }
 0x297   :  { %v198_v44 = vsel %vm193_vm2, %v192_v43, 0 }
 0x298   :  { %3196 = vmatpush3.bf16.xpose.msra.mxu1 %v198_v44  ;;  %v241_v45 = vpop.permute.xlu1 %240 }
 0x299   :  { %v246_v46 = vsel %vm193_vm2, %v241_v45, 0  ;;  %3207 = vmatprep.subr.bf16.mxu1 %v3662_v15 }
 0x29a   :  { %3202 = vmatpush3.bf16.xpose.msra.mxu0 %v246_v46 }
 0x29b   :  { %3213 = vmatprep.subr.bf16.mxu0 %v3662_v15 }
 0x29f   :  { %3198 = vmatmul.mubr.msk.bf16.vlgmr.msra.gmra.mrb[0].mxu1 %vm193_vm2, %v3826_v39 }
 0x2a0   :  { %3209 = vmatprep.mubr.msk.bf16.mxu1 %vm3663_vm1, %v3662_v15 }
 0x2a1   :  { %3204 = vmatmul.mubr.msk.bf16.vlgmr.msra.gmra.mrb[4].mxu0 %vm193_vm2, %v3828_v42 }
 0x2a2   :  { %3215 = vmatprep.mubr.msk.bf16.mxu0 %vm3663_vm1, %v3662_v15 }
 0x372   :  { %v234_v47 = vpop.f32.mrb[0].mxu1 }
 0x373   :  { %v288_v49 = vmul.f32 0.35355338, %v234_v47  ;;  %v3199_v50 = vpop.f32.mrb[1].mxu1 }
 0x374   :  { %v237_v51 = vpop.f32.mrb[2].mxu1  ;;  %v282_v52 = vpop.f32.mrb[4].mxu0 }
 0x375   :  { %v289_v54 = vmul.f32 0.35355338, %v282_v52  ;;  %v3200_v55 = vpop.f32.mrb[3].mxu1  ;;  %v3205_v56 = vpop.f32.mrb[5].mxu0  ;;  %v302_v57 = vadd.f32 %v3849_v48, %v288_v49 }
 0x376   :  { %v285_v58 = vpop.f32.mrb[6].mxu0 }
 0x377   :  { %v3206_v59 = vpop.f32.mrb[7].mxu0  ;;  %v304_v60 = vsel %vm193_vm2, %v302_v57, -inf  ;;  %v303_v61 = vadd.f32 %v3854_v53, %v289_v54 }
 0x378   :  { %305 = vmax.xlane.f32.xlu1 %v304_v60 }
 0x379   :  { %v307_v62 = vsel %vm193_vm2, %v303_v61, -inf }
 0x37a   :  { %308 = vmax.xlane.f32.xlu0 %v307_v62 }
 0x389   :  { %377 = vrot.lane.b32.xlu1 %v3828_v42, %s3665_s4 }
 0x38d   :  { %427 = vrot.lane.b32.xlu1 %v3826_v39, %s3666_s29 }
 0x405   :  { %v306_v63 = vpop.xlane.xlu1 %305 }
 0x406   :  { %v310_v0 = vsub.f32 %v302_v57, %v306_v63 }
 0x407   :  { %v309_v1 = vpop.xlane.xlu0 %308 }
 0x408   :  { %v312_v2 = vmul.f32 1.442695, %v310_v0  ;;  %v311_v3 = vsub.f32 %v303_v61, %v309_v1 }
 0x409   :  { %v378_v4 = vpop.permute.xlu1 %377 }
 0x40a   :  { %3542 = vpow2.f32 %v312_v2  ;;  %v314_v5 = vmul.f32 1.442695, %v311_v3  ;;  %v383_v6 = vsel %vm333_vm3, %v378_v4, 0 }
 0x40b   :  { %3214 = vmatpush3.bf16.msra.mxu0 %v383_v6 }
 0x40c   :  { %3544 = vpow2.f32 %v314_v5  ;;  %3225 = vmatprep.subr.bf16.mxu0 %v3662_v15 }
 0x40d   :  { %v428_v11 = vpop.permute.xlu1 %427 }
 0x40e   :  { %v433_v23 = vsel %vm193_vm2, %v428_v11, 0 }
 0x414   :  { %v3543_v7 = vpop.eup %3542 }
 0x415   :  { %v316_v8 = vsel %vm193_vm2, %v3543_v7, 0.0 }
 0x416   :  { %v3545_v9 = vpop.eup %3544  ;;  %317 = vadd.xlane.f32.xlu0 %v316_v8 }
 0x417   :  { %v319_v10 = vsel %vm193_vm2, %v3545_v9, 0.0 }
 0x418   :  { %320 = vadd.xlane.f32.xlu1 %v319_v10 }
 0x429   :  { %477 = vrot.lane.b32.xlu1 %v3828_v42, %s3666_s29 }
 0x42c   :  { %328 = vrot.lane.b32.xlu0 %v3826_v39, %s3665_s4 }
 0x42d   :  { %475 = vrot.lane.b32.xlu1 %v3828_v42, %s3667_s30 }
 0x430   :  { %425 = vrot.lane.b32.xlu0 %v3826_v39, %s3667_s30 }
 0x4a3   :  { %v318_v12 = vpop.xlane.xlu0 %317 }
 0x4a4   :  { %3546 = vrcp.f32 %v318_v12 }
 0x4a5   :  { %v321_v13 = vpop.xlane.xlu1 %320 }
 0x4a6   :  { %3548 = vrcp.f32 %v321_v13 }
 0x4a7   :  { %v329_v14 = vpop.permute.xlu0 %328 }
 0x4a8   :  { %v335_v16 = vsel %vm333_vm3, %v329_v14, 0 }
 0x4a9   :  { %3208 = vmatpush3.bf16.msra.mxu1 %v335_v16  ;;  %v478_v22 = vpop.permute.xlu1 %477 }
 0x4aa   :  { %3219 = vmatprep.subr.bf16.mxu1 %v3662_v15  ;;  %v483_v25 = vsel %vm193_vm2, %v478_v22, 0 }
 0x4ab   :  { %v426_v26 = vpop.permute.xlu0 %425 }
 0x4ad   :  { %v476_v27 = vpop.permute.xlu1 %475 }
 0x4ae   :  { %v3547_v17 = vpop.eup %3546 }
 0x4af   :  { %v324_v18 = vmul.f32 %v3547_v17, %v3543_v7 }
 0x4b0   :  { %v3549_v19 = vpop.eup %3548 }
 0x4b1   :  { %v325_v20 = vmul.f32 %v3549_v19, %v3545_v9  ;;  %v326_v21 = vpack.c.bf16 %v324_v18, %v324_v18 }
 0x4b3   :  { %3210 = vmatmul.mubr.msk.bf16.vlgmr.msra.gmra.mrb[4].mxu1 %vm193_vm2, %v326_v21  ;;  %v327_v24 = vpack.c.bf16 %v325_v20, %v325_v20 }
 0x4b4   :  { %3220 = vmatpush3.bf16.xpose.msra.mxu1 %v433_v23  ;;  %3221 = vmatprep.mubr.msk.bf16.mxu1 %vm3663_vm1, %v3662_v15 }
 0x4b5   :  { %3216 = vmatmul.mubr.msk.bf16.vlgmr.msra.gmra.mrb[8].mxu0 %vm193_vm2, %v327_v24  ;;  %3231 = vmatprep.subr.bf16.mxu1 %v3662_v15 }
 0x4b6   :  { %3226 = vmatpush3.bf16.xpose.msra.mxu0 %v483_v25  ;;  %3227 = vmatprep.mubr.msk.bf16.mxu0 %vm3663_vm1, %v3662_v15 }
 0x4b7   :  { %3237 = vmatprep.subr.bf16.mxu0 %v3662_v15 }
 0x4bb   :  { %3222 = vmatmul.mubr.msk.bf16.vlgmr.msra.gmra.mrb[8].mxu1 %vm193_vm2, %v426_v26 }
 0x4bc   :  { %3233 = vmatprep.mubr.msk.bf16.mxu1 %vm3663_vm1, %v3662_v15 }
 0x4bd   :  { %3228 = vmatmul.mubr.msk.bf16.vlgmr.msra.gmra.mrb[12].mxu0 %vm193_vm2, %v476_v27 }
 0x4be   :  { %3239 = vmatprep.mubr.msk.bf16.mxu0 %vm3663_vm1, %v3662_v15 }
 0x586   :  { %v3894_v28 = vpop.f32.mrb[4].mxu1 }
 0x587   :  { %v3211_v29 = vpop.f32.mrb[5].mxu1 }
 0x588   :  { %v374_v30 = vpop.f32.mrb[6].mxu1  ;;  %v3896_v33 = vpop.f32.mrb[8].mxu0 }
 0x589   :  { %v3212_v34 = vpop.f32.mrb[7].mxu1  ;;  %v3217_v35 = vpop.f32.mrb[9].mxu0 }
 0x58a   :  { %v422_v36 = vpop.f32.mrb[10].mxu0 }
 0x58b   :  { %v3218_v37 = vpop.f32.mrb[11].mxu0 }
 0x58e   :  { %v469_v38 = vpop.f32.mrb[8].mxu1 }
 0x58f   :  { %v525_v40 = vmul.f32 0.35355338, %v469_v38  ;;  %v3223_v41 = vpop.f32.mrb[9].mxu1 }
 0x590   :  { %v472_v43 = vpop.f32.mrb[10].mxu1  ;;  %v519_v44 = vpop.f32.mrb[12].mxu0 }
 0x591   :  { %v526_v45 = vmul.f32 0.35355338, %v519_v44  ;;  %v3224_v46 = vpop.f32.mrb[11].mxu1  ;;  %v3229_v47 = vpop.f32.mrb[13].mxu0  ;;  %v527_v49 = vadd.f32 %v3849_v48, %v525_v40 }
 0x592   :  { %v522_v50 = vpop.f32.mrb[14].mxu0 }
 0x593   :  { %v3230_v51 = vpop.f32.mrb[15].mxu0  ;;  %v529_v52 = vsel %vm193_vm2, %v527_v49, -inf  ;;  %v528_v54 = vadd.f32 %v3854_v53, %v526_v45 }
 0x594   :  { %530 = vmax.xlane.f32.xlu0 %v529_v52 }
 0x595   :  { %v532_v55 = vsel %vm193_vm2, %v528_v54, -inf }
 0x596   :  { %533 = vmax.xlane.f32.xlu1 %v532_v55 }
 0x5a7   :  { %601 = vrot.lane.b32.xlu1 %v3828_v42, %s3668_s0 }
 0x5ab   :  { %651 = vrot.lane.b32.xlu1 %v3826_v39, %s4437_s21 }
 0x5af   :  { %701 = vrot.lane.b32.xlu1 %v3828_v42, %s4437_s21 }
 0x5b3   :  { %699 = vrot.lane.b32.xlu1 %v3828_v42, %s4435_s1 }
 0x621   :  { %v531_v56 = vpop.xlane.xlu0 %530 }
 0x622   :  { %v535_v57 = vsub.f32 %v527_v49, %v531_v56 }
 0x623   :  { %v534_v58 = vpop.xlane.xlu1 %533 }
 0x624   :  { %v537_v59 = vmul.f32 1.442695, %v535_v57  ;;  %v536_v60 = vsub.f32 %v528_v54, %v534_v58 }
 0x626   :  { %3550 = vpow2.f32 %v537_v59  ;;  %v539_v61 = vmul.f32 1.442695, %v536_v60 }
 0x627   :  { %v602_v62 = vpop.permute.xlu1 %601 }
 0x628   :  { %3552 = vpow2.f32 %v539_v61  ;;  %v607_v63 = vsel %vm333_vm3, %v602_v62, 0 }
 0x629   :  { %3238 = vmatpush3.bf16.msra.mxu0 %v607_v63 }
 0x62a   :  { %3249 = vmatprep.subr.bf16.mxu0 %v3662_v15 }
 0x62b   :  { %v652_v9 = vpop.permute.xlu1 %651 }
 0x62c   :  { %v657_v16 = vsel %vm193_vm2, %v652_v9, 0 }
 0x62f   :  { %v702_v14 = vpop.permute.xlu1 %701 }
 0x630   :  { %v3551_v0 = vpop.eup %3550  ;;  %v707_v18 = vsel %vm193_vm2, %v702_v14, 0 }
 0x631   :  { %v541_v1 = vsel %vm193_vm2, %v3551_v0, 0.0 }
 0x632   :  { %v3553_v2 = vpop.eup %3552  ;;  %542 = vadd.xlane.f32.xlu0 %v541_v1 }
 0x633   :  { %v544_v3 = vsel %vm193_vm2, %v3553_v2, 0.0  ;;  %v700_v20 = vpop.permute.xlu1 %699 }
 0x636   :  { %545 = vadd.xlane.f32.xlu0 %v544_v3 }
 0x64c   :  { %553 = vrot.lane.b32.xlu0 %v3826_v39, %s3668_s0 }
 0x650   :  { %649 = vrot.lane.b32.xlu0 %v3826_v39, %s4435_s1 }
 0x6bf   :  { %v543_v4 = vpop.xlane.xlu0 %542 }
 0x6c0   :  { %3554 = vrcp.f32 %v543_v4 }
 0x6c3   :  { %v546_v5 = vpop.xlane.xlu0 %545 }
 0x6c4   :  { %3556 = vrcp.f32 %v546_v5 }
 0x6c7   :  { %v554_v6 = vpop.permute.xlu0 %553 }
 0x6c8   :  { %v559_v7 = vsel %vm333_vm3, %v554_v6, 0 }
 0x6c9   :  { %3232 = vmatpush3.bf16.msra.mxu1 %v559_v7 }
 0x6ca   :  { %v3555_v8 = vpop.eup %3554  ;;  %3243 = vmatprep.subr.bf16.mxu1 %v3662_v15 }
 0x6cb   :  { %v549_v10 = vmul.f32 %v3555_v8, %v3551_v0  ;;  %v650_v19 = vpop.permute.xlu0 %649 }
 0x6cd   :  { %v551_v11 = vpack.c.bf16 %v549_v10, %v549_v10 }
 0x6ce   :  { %v3557_v12 = vpop.eup %3556 }
 0x6cf   :  { %v550_v13 = vmul.f32 %v3557_v12, %v3553_v2  ;;  %3234 = vmatmul.mubr.msk.bf16.vlgmr.msra.gmra.mrb[12].mxu1 %vm193_vm2, %v551_v11 }
 0x6d0   :  { %3245 = vmatprep.mubr.msk.bf16.mxu1 %vm3663_vm1, %v3662_v15 }
 0x6d1   :  { %v552_v17 = vpack.c.bf16 %v550_v13, %v550_v13 }
 0x6d2   :  { %3244 = vmatpush3.bf16.xpose.msra.mxu1 %v657_v16 }
 0x6d3   :  { %3240 = vmatmul.mubr.msk.bf16.vlgmr.msra.gmra.mrb[16].mxu0 %vm193_vm2, %v552_v17  ;;  %3255 = vmatprep.subr.bf16.mxu1 %v3662_v15 }
 0x6d4   :  { %3250 = vmatpush3.bf16.xpose.msra.mxu0 %v707_v18  ;;  %3251 = vmatprep.mubr.msk.bf16.mxu0 %vm3663_vm1, %v3662_v15 }
 0x6d5   :  { %3261 = vmatprep.subr.bf16.mxu0 %v3662_v15 }
 0x6d9   :  { %3246 = vmatmul.mubr.msk.bf16.vlgmr.msra.gmra.mrb[16].mxu1 %vm193_vm2, %v650_v19 }
 0x6da   :  { %3257 = vmatprep.mubr.msk.bf16.mxu1 %vm3663_vm1, %v3662_v15 }
 0x6db   :  { %3252 = vmatmul.mubr.msk.bf16.vlgmr.msra.gmra.mrb[20].mxu0 %vm193_vm2, %v700_v20 }
 0x6dc   :  { %3263 = vmatprep.mubr.msk.bf16.mxu0 %vm3663_vm1, %v3662_v15 }
 0x7a2   :  { %v3936_v21 = vpop.f32.mrb[12].mxu1 }
 0x7a3   :  { %v3235_v22 = vpop.f32.mrb[13].mxu1 }
 0x7a4   :  { %v598_v23 = vpop.f32.mrb[14].mxu1 }
 0x7a5   :  { %v3236_v24 = vpop.f32.mrb[15].mxu1 }
 0x7a6   :  { %v3938_v25 = vpop.f32.mrb[16].mxu0 }
 0x7a7   :  { %v3484_v26 = vpack.i.bf16 %v3938_v25, %v3936_v21  ;;  %v3241_v27 = vpop.f32.mrb[17].mxu0 }
 0x7a8   :  { %v646_v29 = vpop.f32.mrb[18].mxu0 }
 0x7a9   :  { %v3242_v30 = vpop.f32.mrb[19].mxu0 }
 0x7ac   :  { %v693_v34 = vpop.f32.mrb[16].mxu1 }
 0x7ad   :  { %v749_v35 = vmul.f32 0.35355338, %v693_v34  ;;  %v3247_v36 = vpop.f32.mrb[17].mxu1 }
 0x7ae   :  { %v696_v37 = vpop.f32.mrb[18].mxu1  ;;  %v743_v38 = vpop.f32.mrb[20].mxu0 }
 0x7af   :  { %v750_v40 = vmul.f32 0.35355338, %v743_v38  ;;  %v3248_v41 = vpop.f32.mrb[19].mxu1  ;;  %v3253_v43 = vpop.f32.mrb[21].mxu0  ;;  %v751_v44 = vadd.f32 %v3849_v48, %v749_v35 }
 0x7b0   :  { %v746_v45 = vpop.f32.mrb[22].mxu0 }
 0x7b1   :  { %v3254_v46 = vpop.f32.mrb[23].mxu0  ;;  %v753_v47 = vsel %vm193_vm2, %v751_v44, -inf  ;;  %v752_v49 = vadd.f32 %v3854_v53, %v750_v40 }
 0x7b2   :  { %754 = vmax.xlane.f32.xlu0 %v753_v47 }
 0x7b3   :  { %v756_v50 = vsel %vm193_vm2, %v752_v49, -inf }
 0x7b4   :  { %757 = vmax.xlane.f32.xlu1 %v756_v50 }
 0x7c5   :  { %825 = vrot.lane.b32.xlu1 %v3828_v42, %s4433_s22 }
 0x7c9   :  { %875 = vrot.lane.b32.xlu1 %v3826_v39, %s4431_s23 }
 0x7cd   :  { %925 = vrot.lane.b32.xlu1 %v3828_v42, %s4431_s23  ;;  %s4456_s23 = smov 16  }
 0x7d1   :  { %923 = vrot.lane.b32.xlu1 %v3828_v42, %s4428_s2 }
 0x83f   :  { %v755_v51 = vpop.xlane.xlu0 %754 }
 0x840   :  { %v759_v52 = vsub.f32 %v751_v44, %v755_v51 }
 0x841   :  { %v758_v54 = vpop.xlane.xlu1 %757 }
 0x842   :  { %v761_v55 = vmul.f32 1.442695, %v759_v52  ;;  %v760_v56 = vsub.f32 %v752_v49, %v758_v54 }
 0x844   :  { %3558 = vpow2.f32 %v761_v55  ;;  %v763_v57 = vmul.f32 1.442695, %v760_v56 }
 0x845   :  { %v826_v58 = vpop.permute.xlu1 %825 }
 0x846   :  { %3560 = vpow2.f32 %v763_v57  ;;  %v831_v59 = vsel %vm333_vm3, %v826_v58, 0 }
 0x847   :  { %3262 = vmatpush3.bf16.msra.mxu0 %v831_v59 }
 0x848   :  { %3273 = vmatprep.subr.bf16.mxu0 %v3662_v15 }
 0x849   :  { %v876_v5 = vpop.permute.xlu1 %875 }
 0x84a   :  { %v881_v11 = vsel %vm193_vm2, %v876_v5, 0 }
 0x84d   :  { %v926_v10 = vpop.permute.xlu1 %925 }
 0x84e   :  { %v3559_v60 = vpop.eup %3558  ;;  %v931_v13 = vsel %vm193_vm2, %v926_v10, 0 }
 0x84f   :  { %v765_v61 = vsel %vm193_vm2, %v3559_v60, 0.0 }
 0x850   :  { %v3561_v62 = vpop.eup %3560  ;;  %766 = vadd.xlane.f32.xlu0 %v765_v61 }
 0x851   :  { %v768_v63 = vsel %vm193_vm2, %v3561_v62, 0.0  ;;  %v924_v16 = vpop.permute.xlu1 %923 }
 0x854   :  { %769 = vadd.xlane.f32.xlu0 %v768_v63 }
 0x86a   :  { %777 = vrot.lane.b32.xlu0 %v3826_v39, %s4433_s22  ;;  %s4455_s22 = smov 8  }
 0x86e   :  { %873 = vrot.lane.b32.xlu0 %v3826_v39, %s4428_s2 }
 0x8dd   :  { %v767_v0 = vpop.xlane.xlu0 %766 }
 0x8de   :  { %3562 = vrcp.f32 %v767_v0 }
 0x8e1   :  { %v770_v1 = vpop.xlane.xlu0 %769 }
 0x8e2   :  { %3564 = vrcp.f32 %v770_v1 }
 0x8e5   :  { %v778_v2 = vpop.permute.xlu0 %777 }
 0x8e6   :  { %v783_v3 = vsel %vm333_vm3, %v778_v2, 0  ;;  %v3516_v2 = vld [vmem:[%s4406_s6] sm:$0xff]  }
 0x8e7   :  { %3256 = vmatpush3.bf16.msra.mxu1 %v783_v3  ;;  %v3517_v3 = vld [vmem:[%s4406_s6 + $0x8] sm:$0xff]  }
 0x8e8   :  { %v3563_v4 = vpop.eup %3562  ;;  %3267 = vmatprep.subr.bf16.mxu1 %v3662_v15 }
 0x8e9   :  { %v773_v6 = vmul.f32 %v3563_v4, %v3559_v60  ;;  %v874_v14 = vpop.permute.xlu0 %873 }
 0x8eb   :  { %v775_v7 = vpack.c.bf16 %v773_v6, %v773_v6 }
 0x8ec   :  { %v3565_v8 = vpop.eup %3564 }
 0x8ed   :  { %v774_v9 = vmul.f32 %v3565_v8, %v3561_v62  ;;  %3258 = vmatmul.mubr.msk.bf16.vlgmr.msra.gmra.mrb[20].mxu1 %vm193_vm2, %v775_v7 }
 0x8ee   :  { %3269 = vmatprep.mubr.msk.bf16.mxu1 %vm3663_vm1, %v3662_v15 }
 0x8ef   :  { %v776_v12 = vpack.c.bf16 %v774_v9, %v774_v9 }
 0x8f0   :  { %3268 = vmatpush3.bf16.xpose.msra.mxu1 %v881_v11 }
 0x8f1   :  { %3264 = vmatmul.mubr.msk.bf16.vlgmr.msra.gmra.mrb[24].mxu0 %vm193_vm2, %v776_v12  ;;  %3279 = vmatprep.subr.bf16.mxu1 %v3662_v15 }
 0x8f2   :  { %3274 = vmatpush3.bf16.xpose.msra.mxu0 %v931_v13  ;;  %3275 = vmatprep.mubr.msk.bf16.mxu0 %vm3663_vm1, %v3662_v15 }
 0x8f3   :  { %3285 = vmatprep.subr.bf16.mxu0 %v3662_v15 }
 0x8f7   :  { %3270 = vmatmul.mubr.msk.bf16.vlgmr.msra.gmra.mrb[24].mxu1 %vm193_vm2, %v874_v14 }
 0x8f8   :  { %3281 = vmatprep.mubr.msk.bf16.mxu1 %vm3663_vm1, %v3662_v15 }
 0x8f9   :  { %3276 = vmatmul.mubr.msk.bf16.vlgmr.msra.gmra.mrb[28].mxu0 %vm193_vm2, %v924_v16 }
 0x8fa   :  { %3287 = vmatprep.mubr.msk.bf16.mxu0 %vm3663_vm1, %v3662_v15 }
 0x9c0   :  { %v819_v17 = vpop.f32.mrb[20].mxu1 }
 0x9c1   :  { %v3259_v18 = vpop.f32.mrb[21].mxu1 }
 0x9c2   :  { %v822_v19 = vpop.f32.mrb[22].mxu1 }
 0x9c3   :  { %v3260_v20 = vpop.f32.mrb[23].mxu1 }
 0x9c4   :  { %v867_v22 = vpop.f32.mrb[24].mxu0 }
 0x9c5   :  { %v3489_v23 = vpack.i.bf16 %v867_v22, %v819_v17  ;;  %v3265_v24 = vpop.f32.mrb[25].mxu0 }
 0x9c6   :  { %v870_v27 = vpop.f32.mrb[26].mxu0 }
 0x9c7   :  { %v3266_v29 = vpop.f32.mrb[27].mxu0 }
 0x9ca   :  { %v917_v30 = vpop.f32.mrb[24].mxu1 }
 0x9cb   :  { %v973_v34 = vmul.f32 0.35355338, %v917_v30  ;;  %v3271_v35 = vpop.f32.mrb[25].mxu1 }
 0x9cc   :  { %v920_v36 = vpop.f32.mrb[26].mxu1  ;;  %v967_v37 = vpop.f32.mrb[28].mxu0 }
 0x9cd   :  { %v974_v38 = vmul.f32 0.35355338, %v967_v37  ;;  %v3272_v40 = vpop.f32.mrb[27].mxu1  ;;  %v3277_v41 = vpop.f32.mrb[29].mxu0  ;;  %v975_v43 = vadd.f32 %v3849_v48, %v973_v34 }
 0x9ce   :  { %v970_v44 = vpop.f32.mrb[30].mxu0 }
 0x9cf   :  { %v3278_v45 = vpop.f32.mrb[31].mxu0  ;;  %v977_v46 = vsel %vm193_vm2, %v975_v43, -inf  ;;  %v976_v47 = vadd.f32 %v3854_v53, %v974_v38 }
 0x9d0   :  { %978 = vmax.xlane.f32.xlu0 %v977_v46 }
 0x9d1   :  { %v980_v49 = vsel %vm193_vm2, %v976_v47, -inf }
 0x9d2   :  { %981 = vmax.xlane.f32.xlu1 %v980_v49 }
 0x9e3   :  { %1049 = vrot.lane.b32.xlu1 %v3828_v42, %s4426_s25 }
 0x9e7   :  { %3485 = vrot.lane.b32.xlu1 %v3484_v26, %s4425_s27  ;;  %s4430_s27 = smov 24  }
 0x9eb   :  { %3490 = vrot.lane.b32.xlu1 %v3489_v23, %s4424_s28 }
 0xa5d   :  { %v979_v48 = vpop.xlane.xlu0 %978 }
 0xa5e   :  { %v983_v50 = vsub.f32 %v975_v43, %v979_v48 }
 0xa5f   :  { %v982_v53 = vpop.xlane.xlu1 %981 }
 0xa60   :  { %v985_v51 = vmul.f32 1.442695, %v983_v50  ;;  %v984_v52 = vsub.f32 %v976_v47, %v982_v53 }
 0xa62   :  { %3566 = vpow2.f32 %v985_v51  ;;  %v987_v54 = vmul.f32 1.442695, %v984_v52 }
 0xa63   :  { %v1050_v55 = vpop.permute.xlu1 %1049 }
 0xa64   :  { %3568 = vpow2.f32 %v987_v54  ;;  %v1055_v42 = vsel %vm333_vm3, %v1050_v55, 0 }
 0xa65   :  { %3286 = vmatpush3.bf16.msra.mxu0 %v1055_v42 }
 0xa66   :  { %3299 = vmatprep.subr.bf16.mxu0 %v3662_v15 }
 0xa67   :  { %v3486_v13 = vpop.permute.xlu1 %3485 }
 0xa68   :  { %v3488_v16 = vunpack.i.h.bf16 %v3486_v13  ;;  %v3487_v17 = vunpack.i.l.bf16 %v3486_v13 }
 0xa6a   :  { %v1122_v22 = vsel %vm193_vm2, %v3896_v33, %v3488_v16  ;;  %v1121_v23 = vsel %vm193_vm2, %v3894_v28, %v3487_v17  ;;  %v2991_v28 = vld [vmem:[%s4407_s7] ss:$0 sm:$0xff] }
 0xa6b   :  { %v3491_v14 = vpop.permute.xlu1 %3490 }
 0xa6c   :  { %v3567_v56 = vpop.eup %3566  ;;  %v3493_v18 = vunpack.i.h.bf16 %v3491_v14  ;;  %v3492_v19 = vunpack.i.l.bf16 %v3491_v14 }
 0xa6d   :  { %v989_v21 = vsel %vm193_vm2, %v3567_v56, 0.0 }
 0xa6e   :  { %v3569_v25 = vpop.eup %3568  ;;  %990 = vadd.xlane.f32.xlu0 %v989_v21  ;;  %v1124_v29 = vsel %vm1123_vm4, %v1121_v23, %v3492_v19  ;;  %v1125_v30 = vsel %vm1123_vm4, %v1122_v22, %v3493_v18 }
 0xa6f   :  { %v992_v26 = vsel %vm193_vm2, %v3569_v25, 0.0 }
 0xa72   :  { %993 = vadd.xlane.f32.xlu0 %v992_v26 }
 0xa88   :  { %1001 = vrot.lane.b32.xlu0 %v3826_v39, %s4426_s25  ;;  %s4454_s25 = smov 40  }
 0xafb   :  { %v991_v57 = vpop.xlane.xlu0 %990 }
 0xafc   :  { %3570 = vrcp.f32 %v991_v57 }
 0xaff   :  { %v994_v58 = vpop.xlane.xlu0 %993 }
 0xb00   :  { %3572 = vrcp.f32 %v994_v58 }
 0xb03   :  { %v1002_v59 = vpop.permute.xlu0 %1001 }
 0xb04   :  { %v1007_v60 = vsel %vm333_vm3, %v1002_v59, 0 }
 0xb05   :  { %3280 = vmatpush3.bf16.msra.mxu1 %v1007_v60 }
 0xb06   :  { %v3571_v61 = vpop.eup %3570  ;;  %3291 = vmatprep.subr.bf16.mxu1 %v3662_v15 }
 0xb07   :  { %v997_v62 = vmul.f32 %v3571_v61, %v3567_v56  ;;  %v3519_v56 = vld [vmem:[%s4410_s10 + $0x8] sm:$0xff]  }
 0xb09   :  { %v999_v63 = vpack.c.bf16 %v997_v62, %v997_v62  ;;  %v2995_v62 = vld [vmem:[%s4408_s8] ss:$0 sm:$0xff] }
 0xb0a   :  { %v3573_v0 = vpop.eup %3572 }
 0xb0b   :  { %v998_v1 = vmul.f32 %v3573_v0, %v3569_v25  ;;  %3282 = vmatmul.mubr.msk.bf16.vlgmr.msra.gmra.mrb[28].mxu1 %vm193_vm2, %v999_v63 }
 0xb0c   :  { %3295 = vmatprep.mubr.msk.bf16.mxu1 %vm3663_vm1, %v3662_v15  ;;  %3292 = vmatpush3.bf16.msra.mxu1 %v3516_v2 }
 0xb0d   :  { %v1000_v39 = vpack.c.bf16 %v998_v1, %v998_v1  ;;  %3293 = vmatprep.subr.bf16.mxu1 %v3662_v15 }
 0xb0f   :  { %3288 = vmatmul.mubr.msk.bf16.vlgmr.msra.gmra.mrb[32].mxu0 %vm193_vm2, %v1000_v39  ;;  %v2996_v39 = vld [vmem:[%s4409_s9] ss:$0 sm:$0xff] }
 0xb10   :  { %3303 = vmatprep.mubr.msk.bf16.mxu0 %vm3663_vm1, %v3662_v15  ;;  %3294 = vmatpush3.bf16.msra.mxu1 %v3517_v3 }
 0xb11   :  { %3307 = vmatprep.subr.bf16.mxu1 %v3662_v15 }
 0xbde   :  { %v1043_v4 = vpop.f32.mrb[28].mxu1 }
 0xbdf   :  { %v3283_v5 = vpop.f32.mrb[29].mxu1 }
 0xbe0   :  { %v1046_v6 = vpop.f32.mrb[30].mxu1 }
 0xbe1   :  { %v3284_v7 = vpop.f32.mrb[31].mxu1  ;;  %v3520_v6 = vld [vmem:[%s4412_s12] sm:$0xff]  }
 0xbe2   :  { %v1091_v8 = vpop.f32.mrb[32].mxu0  ;;  %v3521_v7 = vld [vmem:[%s4412_s12 + $0x8] sm:$0xff]  }
 0xbe3   :  { %v3494_v9 = vpack.i.bf16 %v1091_v8, %v1043_v4  ;;  %v3289_v10 = vpop.f32.mrb[33].mxu0  ;;  %v3522_v8 = vld [vmem:[%s4412_s12 + $0x10] sm:$0xff]  }
 0xbe4   :  { %v1094_v11 = vpop.f32.mrb[34].mxu0  ;;  %v2997_v10 = vld [vmem:[%s4411_s11] ss:$0 sm:$0xff] }
 0xbe5   :  { %3495 = vrot.lane.b32.xlu0 %v3494_v9, %s4430_s27  ;;  %v3290_v12 = vpop.f32.mrb[35].mxu0  ;;  %v3523_v9 = vld [vmem:[%s4412_s12 + $0x18] sm:$0xff]  }
 0xc57   :  { %v3496_v20 = vpop.permute.xlu0 %3495 }
 0xc58   :  { %v3498_v24 = vunpack.i.h.bf16 %v3496_v20  ;;  %v3497_v27 = vunpack.i.l.bf16 %v3496_v20 }
 0xc5a   :  { %v1128_v34 = vsel %vm1126_vm5, %v1125_v30, %v3498_v24  ;;  %v1127_v35 = vsel %vm1126_vm5, %v1124_v29, %v3497_v27 }
 0xc5b   :  { %v1129_v36 = vpack.c.bf16 %v1128_v34, %v1127_v35 }
 0xc5d   :  { %3296 = vmatmul.mubr.msk.bf16.vlgmr.msra.gmra.mrb[32].mxu1 %vm71_vm0, %v1129_v36 }
 0xc5e   :  { %3315 = vmatprep.mubr.msk.bf16.mxu1 %vm3663_vm1, %v3662_v15  ;;  %3308 = vmatpush3.bf16.msra.mxu1 %v3520_v6 }
 0xc5f   :  { %3309 = vmatprep.subr.bf16.mxu1 %v3662_v15 }
 0xc62   :  { %3310 = vmatpush3.bf16.msra.mxu1 %v3521_v7 }
 0xc63   :  { %3311 = vmatprep.subr.bf16.mxu1 %v3662_v15 }
 0xc66   :  { %3312 = vmatpush3.bf16.msra.mxu1 %v3522_v8  ;;  %v3008_v8 = vld [vmem:[%s4415_s15] ss:$0 sm:$0xff] }
 0xc67   :  { %3313 = vmatprep.subr.bf16.mxu1 %v3662_v15 }
 0xc6a   :  { %3314 = vmatpush3.bf16.msra.mxu1 %v3523_v9 }
 0xc6b   :  { %3333 = vmatprep.subr.bf16.mxu1 %v3662_v15 }
 0xd30   :  { %v1190_v33 = vpop.f32.mrb[32].mxu1 }
 0xd31   :  { %v1191_v37 = vadd.f32 %v2991_v28, %v1190_v33  ;;  %v3297_v38 = vpop.f32.mrb[33].mxu1 }
 0xd32   :  { %v1193_v40 = vpop.f32.mrb[34].mxu1 }
 0xd33   :  { %v1194_v41 = vadd.f32 %v2991_v28, %v1193_v40  ;;  %v3298_v43 = vpop.f32.mrb[35].mxu1  ;;  %v1197_v44 = vadd.f32 %v1191_v37, %v3814_v31 }
 0xd35   :  { %v1201_v45 = vsel %vm71_vm0, %v1197_v44, 0.0  ;;  %v1198_v46 = vadd.f32 %v1194_v41, %v3816_v32  ;;  %v3518_v32 = vld [vmem:[%s4410_s10] sm:$0xff]  }
 0xd36   :  { %1202 = vadd.xlane.f32.xlu1 %v1201_v45  ;;  %3300 = vmatpush3.bf16.msra.mxu0 %v3518_v32 }
 0xd37   :  { %v1204_v47 = vsel %vm71_vm0, %v1198_v46, 0.0  ;;  %3301 = vmatprep.subr.bf16.mxu0 %v3662_v15 }
 0xd38   :  { %1205 = vadd.xlane.f32.xlu0 %v1204_v47 }
 0xd3a   :  { %3302 = vmatpush3.bf16.msra.mxu0 %v3519_v56 }
 0xd3b   :  { %3319 = vmatprep.subr.bf16.mxu0 %v3662_v15 }
 0xdc3   :  { %v1203_v49 = vpop.xlane.xlu1 %1202 }
 0xdc4   :  { %v1207_v48 = vmul.f32 0.03125, %v1203_v49 }
 0xdc5   :  { %v1206_v50 = vpop.xlane.xlu0 %1205 }
 0xdc6   :  { %v1209_v53 = vsub.f32 %v1197_v44, %v1207_v48  ;;  %v1208_v51 = vmul.f32 0.03125, %v1206_v50  ;;  %v3001_v44 = vld [vmem:[%s4413_s13] ss:$0 sm:$0xff] }
 0xdc8   :  { %v1210_v52 = vsub.f32 %v1198_v46, %v1208_v51  ;;  %v1211_v54 = vmul.f32 %v1209_v53, %v1209_v53 }
 0xdca   :  { %v1213_v55 = vsel %vm71_vm0, %v1211_v54, 0.0  ;;  %v1212_v42 = vmul.f32 %v1210_v52, %v1210_v52 }
 0xdcb   :  { %1214 = vadd.xlane.f32.xlu0 %v1213_v55 }
 0xdcc   :  { %v1216_v31 = vsel %vm71_vm0, %v1212_v42, 0.0 }
 0xdcf   :  { %1217 = vadd.xlane.f32.xlu0 %v1216_v31 }
 0xe58   :  { %v1215_v21 = vpop.xlane.xlu0 %1214 }
 0xe59   :  { %v1219_v25 = vmul.f32 0.03125, %v1215_v21 }
 0xe5b   :  { %v1221_v26 = vadd.f32 1e-12, %v1219_v25 }
 0xe5c   :  { %v1218_v57 = vpop.xlane.xlu0 %1217 }
 0xe5d   :  { %3574 = vrsqrt.f32 %v1221_v26  ;;  %v1220_v58 = vmul.f32 0.03125, %v1218_v57 }
 0xe5f   :  { %v1222_v59 = vadd.f32 1e-12, %v1220_v58 }
 0xe61   :  { %3576 = vrsqrt.f32 %v1222_v59  ;;  %v3524_v59 = vld [vmem:[%s4445_s26 + $0x10] sm:$0xff]  }
 0xe67   :  { %v3575_v60 = vpop.eup %3574 }
 0xe68   :  { %v1225_v61 = vmul.f32 %v3575_v60, %v1209_v53  ;;  %v3525_v60 = vld [vmem:[%s4445_s26 + $0x18] sm:$0xff]  }
 0xe6a   :  { %v1233_v0 = vmul.f32 %v2995_v62, %v1225_v61 }
 0xe6b   :  { %v3577_v63 = vpop.eup %3576 }
 0xe6c   :  { %v1226_v1 = vmul.f32 %v3577_v63, %v1210_v52  ;;  %v1241_v3 = vadd.f32 %v2996_v39, %v1233_v0 }
 0xe6e   :  { %v1234_v2 = vmul.f32 %v2995_v62, %v1226_v1 }
 0xe70   :  { %v1242_v4 = vadd.f32 %v2996_v39, %v1234_v2 }
 0xe72   :  { %v1243_v5 = vpack.c.bf16 %v1242_v4, %v1241_v3 }
 0xe74   :  { %3304 = vmatmul.mubr.msk.bf16.vlgmr.msra.gmra.mrb[36].mxu0 %vm71_vm0, %v1243_v5 }
 0xe75   :  { %3323 = vmatprep.mubr.msk.bf16.mxu0 %vm3663_vm1, %v3662_v15  ;;  %3320 = vmatpush3.bf16.msra.mxu0 %v3524_v59 }
 0xe76   :  { %3321 = vmatprep.subr.bf16.mxu0 %v3662_v15 }
 0xe79   :  { %3322 = vmatpush3.bf16.msra.mxu0 %v3525_v60 }
 0xe7a   :  { %3327 = vmatprep.subr.bf16.mxu0 %v3662_v15 }
 0xf47   :  { %v1304_v11 = vpop.f32.mrb[36].mxu0 }
 0xf48   :  { %v1305_v12 = vadd.f32 %v2997_v10, %v1304_v11  ;;  %v3305_v13 = vpop.f32.mrb[37].mxu0 }
 0xf49   :  { %v1307_v14 = vpop.f32.mrb[38].mxu0  ;;  %v3014_v13 = vld [vmem:[%s4405_s5 + $0x1] ss:$0 sm:$0xff]  ;;  %s4457_s5 = smov 24  }
 0xf4a   :  { %v1313_v16 = vmul.f32 0.044715, %v1305_v12  ;;  %v1308_v17 = vadd.f32 %v2997_v10, %v1307_v14  ;;  %v3306_v18 = vpop.f32.mrb[39].mxu0  ;;  %v1311_v33 = vmul.f32 0.5, %v1305_v12 }
 0xf4c   :  { %v1315_v19 = vmul.f32 %v1313_v16, %v1305_v12  ;;  %v1314_v20 = vmul.f32 0.044715, %v1308_v17  ;;  %v1312_v37 = vmul.f32 0.5, %v1308_v17 }
 0xf4e   :  { %v1317_v22 = vmul.f32 %v1315_v19, %v1305_v12  ;;  %v1316_v23 = vmul.f32 %v1314_v20, %v1308_v17 }
 0xf50   :  { %v1319_v24 = vadd.f32 %v1317_v22, %v1305_v12  ;;  %v1318_v27 = vmul.f32 %v1316_v23, %v1308_v17 }
 0xf52   :  { %v1321_v29 = vmul.f32 0.7978846, %v1319_v24  ;;  %v1320_v30 = vadd.f32 %v1318_v27, %v1308_v17 }
 0xf54   :  { %3578 = vtanh.f32 %v1321_v29  ;;  %v1322_v34 = vmul.f32 0.7978846, %v1320_v30 }
 0xf56   :  { %3580 = vtanh.f32 %v1322_v34 }
 0xf5e   :  { %v3579_v35 = vpop.eup %3578 }
 0xf5f   :  { %v1325_v36 = vadd.f32 1.0, %v3579_v35 }
 0xf60   :  { %v3581_v28 = vpop.eup %3580 }
 0xf61   :  { %v1326_v38 = vadd.f32 1.0, %v3581_v28  ;;  %v1327_v40 = vmul.f32 %v1325_v36, %v1311_v33 }
 0xf63   :  { %v1328_v41 = vmul.f32 %v1326_v38, %v1312_v37 }
 0xf65   :  { %v1329_v43 = vpack.c.bf16 %v1328_v41, %v1327_v40  ;;  %v4129_v41 = vld [vmem:[%s4448_s3] ss:$0 sm:$0xff] }
 0xf67   :  { %3316 = vmatmul.mubr.msk.bf16.vlgmr.msra.gmra.mrb[36].mxu1 %vm1369_vm6, %v1329_v43 }
 0xf68   :  { %3335 = vmatprep.mubr.msk.bf16.mxu1 %vm3663_vm1, %v3662_v15 }
0x103a   :  { %v1407_v45 = vpop.f32.mrb[36].mxu1 }
0x103b   :  { %v1408_v46 = vadd.f32 %v3001_v44, %v1407_v45  ;;  %v3317_v47 = vpop.f32.mrb[37].mxu1 }
0x103c   :  { %v1410_v49 = vpop.f32.mrb[38].mxu1  ;;  %v4136_v47 = vld [vmem:[%s4448_s3 + $0x1] ss:$0 sm:$0xff]  ;;  %s4449_s3 = smov 80  }
0x103d   :  { %v1411_v48 = vadd.f32 %v3001_v44, %v1410_v49  ;;  %v3318_v50 = vpop.f32.mrb[39].mxu1  ;;  %v1414_v53 = vadd.f32 %v1408_v46, %v1241_v3  ;;  %v3007_v3 = vld [vmem:[%s4414_s14] ss:$0 sm:$0xff] }
0x103f   :  { %v1418_v51 = vsel %vm71_vm0, %v1414_v53, 0.0  ;;  %v1415_v52 = vadd.f32 %v1411_v48, %v1242_v4 }
0x1040   :  { %1419 = vadd.xlane.f32.xlu1 %v1418_v51 }
0x1041   :  { %v1421_v54 = vsel %vm71_vm0, %v1415_v52, 0.0 }
0x1042   :  { %1422 = vadd.xlane.f32.xlu0 %v1421_v54 }
0x10cd   :  { %v1420_v55 = vpop.xlane.xlu1 %1419 }
0x10ce   :  { %v1424_v42 = vmul.f32 0.03125, %v1420_v55 }
0x10cf   :  { %v1423_v31 = vpop.xlane.xlu0 %1422 }
0x10d0   :  { %v1426_v32 = vsub.f32 %v1414_v53, %v1424_v42  ;;  %v1425_v56 = vmul.f32 0.03125, %v1423_v31 }
0x10d2   :  { %v1427_v21 = vsub.f32 %v1415_v52, %v1425_v56  ;;  %v1428_v25 = vmul.f32 %v1426_v32, %v1426_v32 }
0x10d4   :  { %v1430_v26 = vsel %vm71_vm0, %v1428_v25, 0.0  ;;  %v1429_v57 = vmul.f32 %v1427_v21, %v1427_v21 }
0x10d5   :  { %1431 = vadd.xlane.f32.xlu1 %v1430_v26 }
0x10d6   :  { %v1433_v58 = vsel %vm71_vm0, %v1429_v57, 0.0 }
0x10d7   :  { %1434 = vadd.xlane.f32.xlu0 %v1433_v58 }
0x1162   :  { %v1432_v61 = vpop.xlane.xlu1 %1431 }
0x1163   :  { %v1436_v62 = vmul.f32 0.03125, %v1432_v61 }
0x1164   :  { %v1435_v63 = vpop.xlane.xlu0 %1434 }
0x1165   :  { %v1438_v0 = vadd.f32 1e-12, %v1436_v62  ;;  %v1437_v1 = vmul.f32 0.03125, %v1435_v63 }
0x1167   :  { %3582 = vrsqrt.f32 %v1438_v0  ;;  %v1439_v39 = vadd.f32 1e-12, %v1437_v1 }
0x1169   :  { %3584 = vrsqrt.f32 %v1439_v39 }
0x1171   :  { %v3583_v2 = vpop.eup %3582 }
0x1172   :  { %v1442_v4 = vmul.f32 %v3583_v2, %v1426_v32 }
0x1173   :  { %v3585_v5 = vpop.eup %3584 }
0x1174   :  { %v1450_v6 = vmul.f32 %v3007_v3, %v1442_v4  ;;  %v1443_v7 = vmul.f32 %v3585_v5, %v1427_v21 }
0x1176   :  { %v1451_v9 = vmul.f32 %v3007_v3, %v1443_v7  ;;  %v4094_v10 = vadd.f32 %v3008_v8, %v1450_v6 }
0x1178   :  { %v4096_v11 = vadd.f32 %v3008_v8, %v1451_v9 }
0x117a   :  { %v1460_v12 = vpack.c.bf16 %v4096_v11, %v4094_v10 }
0x117c   :  { %3324 = vmatmul.mubr.msk.bf16.vlgmr.msra.gmra.mrb[40].mxu0 %vm71_vm0, %v1460_v12 }
0x117d   :  { %3329 = vmatprep.mubr.msk.bf16.mxu0 %vm3663_vm1, %v3662_v15 }
0x124f   :  { %v1523_v14 = vpop.f32.mrb[40].mxu0 }
0x1250   :  { %v1524_v16 = vadd.f32 %v3014_v13, %v1523_v14  ;;  %v3325_v17 = vpop.f32.mrb[41].mxu0 }
0x1251   :  { %v1526_v18 = vpop.f32.mrb[42].mxu0 }
0x1252   :  { %v4106_v19 = vpack.c.bf16 %v1524_v16, %v1524_v16  ;;  %v1527_v20 = vadd.f32 %v3014_v13, %v1526_v18  ;;  %v3326_v22 = vpop.f32.mrb[43].mxu0 }
0x1254   :  { %v4108_v23 = vpack.c.bf16 %v1527_v20, %v1527_v20  ;;  %1536 = vrot.lane.b32.xlu1 %v4106_v19, %s3664_s24 }
0x1256   :  { %1584 = vrot.lane.b32.xlu0 %v4108_v23, %s3664_s24 }
0x12c6   :  { %v1537_v24 = vpop.permute.xlu1 %1536 }
0x12c7   :  { %v1542_v27 = vsel %vm193_vm2, %v1537_v24, 0 }
0x12c8   :  { %3328 = vmatpush3.bf16.xpose.msra.mxu0 %v1542_v27  ;;  %v1585_v29 = vpop.permute.xlu0 %1584 }
0x12c9   :  { %v1590_v30 = vsel %vm193_vm2, %v1585_v29, 0  ;;  %3339 = vmatprep.subr.bf16.mxu0 %v3662_v15 }
0x12ca   :  { %3334 = vmatpush3.bf16.xpose.msra.mxu1 %v1590_v30 }
0x12cb   :  { %3345 = vmatprep.subr.bf16.mxu1 %v3662_v15 }
0x12cf   :  { %3330 = vmatmul.mubr.msk.bf16.vlgmr.msra.gmra.mrb[44].mxu0 %vm193_vm2, %v4106_v19 }
0x12d0   :  { %3341 = vmatprep.mubr.msk.bf16.mxu0 %vm3663_vm1, %v3662_v15 }
0x12d1   :  { %3336 = vmatmul.mubr.msk.bf16.vlgmr.msra.gmra.mrb[40].mxu1 %vm193_vm2, %v4108_v23 }
0x12d2   :  { %3347 = vmatprep.mubr.msk.bf16.mxu1 %vm3663_vm1, %v3662_v15 }
0x13a2   :  { %v1578_v34 = vpop.f32.mrb[44].mxu0 }
0x13a3   :  { %v1632_v35 = vmul.f32 0.35355338, %v1578_v34  ;;  %v3331_v36 = vpop.f32.mrb[45].mxu0 }
0x13a4   :  { %v1581_v28 = vpop.f32.mrb[46].mxu0  ;;  %v1626_v33 = vpop.f32.mrb[40].mxu1 }
0x13a5   :  { %v1633_v37 = vmul.f32 0.35355338, %v1626_v33  ;;  %v3332_v38 = vpop.f32.mrb[47].mxu0  ;;  %v3337_v40 = vpop.f32.mrb[41].mxu1  ;;  %v1634_v43 = vadd.f32 %v4129_v41, %v1632_v35 }
0x13a6   :  { %v1629_v44 = vpop.f32.mrb[42].mxu1 }
0x13a7   :  { %v3338_v45 = vpop.f32.mrb[43].mxu1  ;;  %v1636_v46 = vsel %vm193_vm2, %v1634_v43, -inf  ;;  %v1635_v49 = vadd.f32 %v4136_v47, %v1633_v37 }
0x13a8   :  { %1637 = vmax.xlane.f32.xlu1 %v1636_v46 }
0x13a9   :  { %v1639_v48 = vsel %vm193_vm2, %v1635_v49, -inf }
0x13aa   :  { %1640 = vmax.xlane.f32.xlu0 %v1639_v48 }
0x13b9   :  { %1660 = vrot.lane.b32.xlu1 %v4106_v19, %s3665_s4 }
0x1435   :  { %v1638_v50 = vpop.xlane.xlu1 %1637 }
0x1436   :  { %v1642_v53 = vsub.f32 %v1634_v43, %v1638_v50 }
0x1437   :  { %v1641_v51 = vpop.xlane.xlu0 %1640 }
0x1438   :  { %v1644_v52 = vmul.f32 1.442695, %v1642_v53  ;;  %v1643_v54 = vsub.f32 %v1635_v49, %v1641_v51 }
0x1439   :  { %v1661_v55 = vpop.permute.xlu1 %1660 }
0x143a   :  { %3586 = vpow2.f32 %v1644_v52  ;;  %v1646_v42 = vmul.f32 1.442695, %v1643_v54  ;;  %v1666_v31 = vsel %vm333_vm3, %v1661_v55, 0 }
0x143b   :  { %3340 = vmatpush3.bf16.msra.mxu0 %v1666_v31 }
0x143c   :  { %3588 = vpow2.f32 %v1646_v42  ;;  %3351 = vmatprep.subr.bf16.mxu0 %v3662_v15 }
0x1444   :  { %v3587_v32 = vpop.eup %3586 }
0x1445   :  { %v1648_v56 = vsel %vm193_vm2, %v3587_v32, 0.0 }
0x1446   :  { %v3589_v21 = vpop.eup %3588  ;;  %1649 = vadd.xlane.f32.xlu1 %v1648_v56 }
0x1447   :  { %v1651_v25 = vsel %vm193_vm2, %v3589_v21, 0.0 }
0x1448   :  { %1652 = vadd.xlane.f32.xlu0 %v1651_v25 }
0x1457   :  { %1758 = vrot.lane.b32.xlu1 %v4106_v19, %s3666_s29 }
0x145b   :  { %1808 = vrot.lane.b32.xlu1 %v4108_v23, %s3666_s29  ;;  %s4451_s29 = smov 48  }
0x145e   :  { %1708 = vrot.lane.b32.xlu0 %v4108_v23, %s3665_s4  ;;  %s4450_s4 = smov 112  }
0x145f   :  { %1756 = vrot.lane.b32.xlu1 %v4106_v19, %s3667_s30 }
0x1462   :  { %1806 = vrot.lane.b32.xlu0 %v4108_v23, %s3667_s30  ;;  %s4452_s30 = smov 72  }
0x14d3   :  { %v1650_v26 = vpop.xlane.xlu1 %1649 }
0x14d4   :  { %3590 = vrcp.f32 %v1650_v26 }
0x14d5   :  { %v1653_v57 = vpop.xlane.xlu0 %1652 }
0x14d6   :  { %3592 = vrcp.f32 %v1653_v57 }
0x14d7   :  { %v1759_v60 = vpop.permute.xlu1 %1758 }
0x14d8   :  { %v1764_v2 = vsel %vm193_vm2, %v1759_v60, 0 }
0x14d9   :  { %v1709_v58 = vpop.permute.xlu0 %1708 }
0x14da   :  { %v1714_v59 = vsel %vm333_vm3, %v1709_v58, 0 }
0x14db   :  { %3346 = vmatpush3.bf16.msra.mxu1 %v1714_v59  ;;  %v1809_v39 = vpop.permute.xlu1 %1808 }
0x14dc   :  { %3357 = vmatprep.subr.bf16.mxu1 %v3662_v15  ;;  %v1814_v4 = vsel %vm193_vm2, %v1809_v39, 0 }
0x14dd   :  { %v1807_v6 = vpop.permute.xlu0 %1806 }
0x14de   :  { %v3591_v61 = vpop.eup %3590 }
0x14df   :  { %v1656_v62 = vmul.f32 %v3591_v61, %v3587_v32  ;;  %v1757_v5 = vpop.permute.xlu1 %1756 }
0x14e0   :  { %v3593_v63 = vpop.eup %3592 }
0x14e1   :  { %v1657_v0 = vmul.f32 %v3593_v63, %v3589_v21  ;;  %v1658_v1 = vpack.c.bf16 %v1656_v62, %v1656_v62 }
0x14e3   :  { %3342 = vmatmul.mubr.msk.bf16.vlgmr.msra.gmra.mrb[48].mxu0 %vm193_vm2, %v1658_v1  ;;  %v1659_v3 = vpack.c.bf16 %v1657_v0, %v1657_v0 }
0x14e4   :  { %3352 = vmatpush3.bf16.xpose.msra.mxu0 %v1764_v2  ;;  %3353 = vmatprep.mubr.msk.bf16.mxu0 %vm3663_vm1, %v3662_v15 }
0x14e5   :  { %3348 = vmatmul.mubr.msk.bf16.vlgmr.msra.gmra.mrb[44].mxu1 %vm193_vm2, %v1659_v3  ;;  %3363 = vmatprep.subr.bf16.mxu0 %v3662_v15 }
0x14e6   :  { %3358 = vmatpush3.bf16.xpose.msra.mxu1 %v1814_v4  ;;  %3359 = vmatprep.mubr.msk.bf16.mxu1 %vm3663_vm1, %v3662_v15 }
0x14e7   :  { %3369 = vmatprep.subr.bf16.mxu1 %v3662_v15 }
0x14eb   :  { %3354 = vmatmul.mubr.msk.bf16.vlgmr.msra.gmra.mrb[52].mxu0 %vm193_vm2, %v1757_v5 }
0x14ec   :  { %3365 = vmatprep.mubr.msk.bf16.mxu0 %vm3663_vm1, %v3662_v15 }
0x14ed   :  { %3360 = vmatmul.mubr.msk.bf16.vlgmr.msra.gmra.mrb[48].mxu1 %vm193_vm2, %v1807_v6 }
0x14ee   :  { %3371 = vmatprep.mubr.msk.bf16.mxu1 %vm3663_vm1, %v3662_v15 }
0x15b6   :  { %v4174_v7 = vpop.f32.mrb[48].mxu0 }
0x15b7   :  { %v3343_v8 = vpop.f32.mrb[49].mxu0 }
0x15b8   :  { %v1705_v9 = vpop.f32.mrb[50].mxu0  ;;  %v4176_v12 = vpop.f32.mrb[44].mxu1 }
0x15b9   :  { %v3344_v13 = vpop.f32.mrb[51].mxu0  ;;  %v3349_v14 = vpop.f32.mrb[45].mxu1 }
0x15ba   :  { %v1753_v16 = vpop.f32.mrb[46].mxu1 }
0x15bb   :  { %v3350_v17 = vpop.f32.mrb[47].mxu1 }
0x15be   :  { %v1800_v18 = vpop.f32.mrb[52].mxu0 }
0x15bf   :  { %v1856_v20 = vmul.f32 0.35355338, %v1800_v18  ;;  %v3355_v22 = vpop.f32.mrb[53].mxu0 }
0x15c0   :  { %v1803_v24 = vpop.f32.mrb[54].mxu0  ;;  %v1850_v27 = vpop.f32.mrb[48].mxu1 }
0x15c1   :  { %v1857_v29 = vmul.f32 0.35355338, %v1850_v27  ;;  %v3356_v30 = vpop.f32.mrb[55].mxu0  ;;  %v3361_v34 = vpop.f32.mrb[49].mxu1  ;;  %v1858_v35 = vadd.f32 %v4129_v41, %v1856_v20 }
0x15c2   :  { %v1853_v36 = vpop.f32.mrb[50].mxu1 }
0x15c3   :  { %v3362_v28 = vpop.f32.mrb[51].mxu1  ;;  %v1860_v33 = vsel %vm193_vm2, %v1858_v35, -inf  ;;  %v1859_v37 = vadd.f32 %v4136_v47, %v1857_v29 }
0x15c4   :  { %1861 = vmax.xlane.f32.xlu1 %v1860_v33 }
0x15c5   :  { %v1863_v38 = vsel %vm193_vm2, %v1859_v37, -inf }
0x15c6   :  { %1864 = vmax.xlane.f32.xlu0 %v1863_v38 }
0x15d5   :  { %1884 = vrot.lane.b32.xlu1 %v4106_v19, %s3668_s0 }
0x15d9   :  { %1982 = vrot.lane.b32.xlu1 %v4106_v19, %s4449_s3 }
0x15dd   :  { %2032 = vrot.lane.b32.xlu1 %v4108_v23, %s4449_s3 }
0x15e1   :  { %1980 = vrot.lane.b32.xlu1 %v4106_v19, %s4450_s4 }
0x1651   :  { %v1862_v40 = vpop.xlane.xlu1 %1861 }
0x1652   :  { %v1866_v43 = vsub.f32 %v1858_v35, %v1862_v40 }
0x1653   :  { %v1865_v44 = vpop.xlane.xlu0 %1864 }
0x1654   :  { %v1868_v45 = vmul.f32 1.442695, %v1866_v43  ;;  %v1867_v46 = vsub.f32 %v1859_v37, %v1865_v44 }
0x1655   :  { %v1885_v49 = vpop.permute.xlu1 %1884 }
0x1656   :  { %3594 = vpow2.f32 %v1868_v45  ;;  %v1870_v48 = vmul.f32 1.442695, %v1867_v46  ;;  %v1890_v50 = vsel %vm333_vm3, %v1885_v49, 0 }
0x1657   :  { %3364 = vmatpush3.bf16.msra.mxu0 %v1890_v50 }
0x1658   :  { %3596 = vpow2.f32 %v1870_v48  ;;  %3375 = vmatprep.subr.bf16.mxu0 %v3662_v15 }
0x1659   :  { %v1983_v21 = vpop.permute.xlu1 %1982 }
0x165a   :  { %v1988_v58 = vsel %vm193_vm2, %v1983_v21, 0 }
0x165d   :  { %v2033_v60 = vpop.permute.xlu1 %2032 }
0x165e   :  { %v2038_v62 = vsel %vm193_vm2, %v2033_v60, 0 }
0x1660   :  { %v3595_v53 = vpop.eup %3594 }
0x1661   :  { %v1872_v51 = vsel %vm193_vm2, %v3595_v53, 0.0  ;;  %v1981_v63 = vpop.permute.xlu1 %1980 }
0x1662   :  { %v3597_v52 = vpop.eup %3596  ;;  %1873 = vadd.xlane.f32.xlu0 %v1872_v51 }
0x1663   :  { %v1875_v54 = vsel %vm193_vm2, %v3597_v52, 0.0 }
0x1666   :  { %1876 = vadd.xlane.f32.xlu0 %v1875_v54 }
0x167c   :  { %1932 = vrot.lane.b32.xlu0 %v4108_v23, %s3668_s0  ;;  %s4453_s0 = smov 104  }
0x1680   :  { %2030 = vrot.lane.b32.xlu0 %v4108_v23, %s4450_s4 }
0x16ef   :  { %v1874_v55 = vpop.xlane.xlu0 %1873 }
0x16f0   :  { %3598 = vrcp.f32 %v1874_v55 }
0x16f3   :  { %v1877_v42 = vpop.xlane.xlu0 %1876 }
0x16f4   :  { %3600 = vrcp.f32 %v1877_v42 }
0x16f7   :  { %v1933_v31 = vpop.permute.xlu0 %1932 }
0x16f8   :  { %v1938_v32 = vsel %vm333_vm3, %v1933_v31, 0 }
0x16f9   :  { %3370 = vmatpush3.bf16.msra.mxu1 %v1938_v32 }
0x16fa   :  { %v3599_v56 = vpop.eup %3598  ;;  %3381 = vmatprep.subr.bf16.mxu1 %v3662_v15 }
0x16fb   :  { %v1880_v25 = vmul.f32 %v3599_v56, %v3595_v53  ;;  %v2031_v0 = vpop.permute.xlu0 %2030 }
0x16fd   :  { %v1882_v26 = vpack.c.bf16 %v1880_v25, %v1880_v25 }
0x16fe   :  { %v3601_v57 = vpop.eup %3600 }
0x16ff   :  { %v1881_v59 = vmul.f32 %v3601_v57, %v3597_v52  ;;  %3366 = vmatmul.mubr.msk.bf16.vlgmr.msra.gmra.mrb[56].mxu0 %vm193_vm2, %v1882_v26 }
0x1700   :  { %3376 = vmatpush3.bf16.xpose.msra.mxu0 %v1988_v58  ;;  %3377 = vmatprep.mubr.msk.bf16.mxu0 %vm3663_vm1, %v3662_v15 }
0x1701   :  { %v1883_v61 = vpack.c.bf16 %v1881_v59, %v1881_v59  ;;  %3387 = vmatprep.subr.bf16.mxu0 %v3662_v15 }
0x1703   :  { %3372 = vmatmul.mubr.msk.bf16.vlgmr.msra.gmra.mrb[52].mxu1 %vm193_vm2, %v1883_v61 }
0x1704   :  { %3382 = vmatpush3.bf16.xpose.msra.mxu1 %v2038_v62  ;;  %3383 = vmatprep.mubr.msk.bf16.mxu1 %vm3663_vm1, %v3662_v15 }
0x1705   :  { %3393 = vmatprep.subr.bf16.mxu1 %v3662_v15 }
0x1707   :  { %3378 = vmatmul.mubr.msk.bf16.vlgmr.msra.gmra.mrb[60].mxu0 %vm193_vm2, %v1981_v63 }
0x1708   :  { %3389 = vmatprep.mubr.msk.bf16.mxu0 %vm3663_vm1, %v3662_v15 }
0x170b   :  { %3384 = vmatmul.mubr.msk.bf16.vlgmr.msra.gmra.mrb[56].mxu1 %vm193_vm2, %v2031_v0 }
0x170c   :  { %3395 = vmatprep.mubr.msk.bf16.mxu1 %vm3663_vm1, %v3662_v15 }
0x17d2   :  { %v4216_v1 = vpop.f32.mrb[56].mxu0 }
0x17d3   :  { %v3367_v39 = vpop.f32.mrb[57].mxu0 }
0x17d4   :  { %v1929_v2 = vpop.f32.mrb[58].mxu0 }
0x17d5   :  { %v3368_v3 = vpop.f32.mrb[59].mxu0 }
0x17d6   :  { %v4218_v4 = vpop.f32.mrb[52].mxu1 }
0x17d7   :  { %v3499_v5 = vpack.i.bf16 %v4218_v4, %v4216_v1  ;;  %v3373_v6 = vpop.f32.mrb[53].mxu1 }
0x17d8   :  { %v1977_v8 = vpop.f32.mrb[54].mxu1 }
0x17d9   :  { %v3374_v9 = vpop.f32.mrb[55].mxu1 }
0x17da   :  { %v2024_v13 = vpop.f32.mrb[60].mxu0 }
0x17db   :  { %v2080_v14 = vmul.f32 0.35355338, %v2024_v13  ;;  %v3379_v16 = vpop.f32.mrb[61].mxu0 }
0x17dc   :  { %v2027_v17 = vpop.f32.mrb[62].mxu0 }
0x17dd   :  { %v3380_v18 = vpop.f32.mrb[63].mxu0  ;;  %v2082_v20 = vadd.f32 %v4129_v41, %v2080_v14 }
0x17de   :  { %v2074_v22 = vpop.f32.mrb[56].mxu1 }
0x17df   :  { %v2081_v24 = vmul.f32 0.35355338, %v2074_v22  ;;  %v3385_v27 = vpop.f32.mrb[57].mxu1  ;;  %v2084_v29 = vsel %vm193_vm2, %v2082_v20, -inf }
0x17e0   :  { %v2077_v30 = vpop.f32.mrb[58].mxu1  ;;  %2085 = vmax.xlane.f32.xlu1 %v2084_v29 }
0x17e1   :  { %v3386_v34 = vpop.f32.mrb[59].mxu1  ;;  %v2083_v35 = vadd.f32 %v4136_v47, %v2081_v24 }
0x17e3   :  { %v2087_v36 = vsel %vm193_vm2, %v2083_v35, -inf }
0x17e4   :  { %2088 = vmax.xlane.f32.xlu0 %v2087_v36 }
0x17f1   :  { %2108 = vrot.lane.b32.xlu1 %v4106_v19, %s4451_s29 }
0x17f5   :  { %2206 = vrot.lane.b32.xlu1 %v4106_v19, %s4452_s30 }
0x17f9   :  { %2256 = vrot.lane.b32.xlu1 %v4108_v23, %s4452_s30 }
0x17fd   :  { %2204 = vrot.lane.b32.xlu1 %v4106_v19, %s4453_s0 }
0x186d   :  { %v2086_v28 = vpop.xlane.xlu1 %2085 }
0x186e   :  { %v2090_v33 = vsub.f32 %v2082_v20, %v2086_v28 }
0x1870   :  { %v2092_v37 = vmul.f32 1.442695, %v2090_v33 }
0x1871   :  { %v2089_v38 = vpop.xlane.xlu0 %2088  ;;  %v2109_v40 = vpop.permute.xlu1 %2108 }
0x1872   :  { %3602 = vpow2.f32 %v2092_v37  ;;  %v2091_v43 = vsub.f32 %v2083_v35, %v2089_v38  ;;  %v2114_v44 = vsel %vm333_vm3, %v2109_v40, 0 }
0x1873   :  { %3388 = vmatpush3.bf16.msra.mxu0 %v2114_v44 }
0x1874   :  { %v2094_v45 = vmul.f32 1.442695, %v2091_v43  ;;  %3399 = vmatprep.subr.bf16.mxu0 %v3662_v15 }
0x1875   :  { %v2207_v42 = vpop.permute.xlu1 %2206 }
0x1876   :  { %3604 = vpow2.f32 %v2094_v45  ;;  %v2212_v21 = vsel %vm193_vm2, %v2207_v42, 0 }
0x1879   :  { %v2257_v26 = vpop.permute.xlu1 %2256 }
0x187a   :  { %v2262_v58 = vsel %vm193_vm2, %v2257_v26, 0 }
0x187c   :  { %v3603_v46 = vpop.eup %3602 }
0x187d   :  { %v2096_v49 = vsel %vm193_vm2, %v3603_v46, 0.0  ;;  %v2205_v59 = vpop.permute.xlu1 %2204 }
0x187e   :  { %2097 = vadd.xlane.f32.xlu0 %v2096_v49 }
0x1880   :  { %v3605_v48 = vpop.eup %3604 }
0x1881   :  { %v2099_v50 = vsel %vm193_vm2, %v3605_v48, 0.0 }
0x1882   :  { %2100 = vadd.xlane.f32.xlu0 %v2099_v50 }
0x1898   :  { %2156 = vrot.lane.b32.xlu0 %v4108_v23, %s4451_s29 }
0x189c   :  { %2254 = vrot.lane.b32.xlu0 %v4108_v23, %s4453_s0 }
0x190b   :  { %v2098_v53 = vpop.xlane.xlu0 %2097 }
0x190c   :  { %3606 = vrcp.f32 %v2098_v53 }
0x190f   :  { %v2101_v51 = vpop.xlane.xlu0 %2100 }
0x1910   :  { %3608 = vrcp.f32 %v2101_v51 }
0x1913   :  { %v2157_v52 = vpop.permute.xlu0 %2156 }
0x1914   :  { %v2162_v54 = vsel %vm333_vm3, %v2157_v52, 0  ;;  %v3526_v52 = vld [vmem:[%s4406_s6 + $0x10] sm:$0xff]  }
0x1915   :  { %3394 = vmatpush3.bf16.msra.mxu1 %v2162_v54  ;;  %v3527_v54 = vld [vmem:[%s4406_s6 + $0x18] sm:$0xff]  }
0x1916   :  { %v3607_v55 = vpop.eup %3606  ;;  %3405 = vmatprep.subr.bf16.mxu1 %v3662_v15 }
0x1917   :  { %v2104_v31 = vmul.f32 %v3607_v55, %v3603_v46  ;;  %v2255_v60 = vpop.permute.xlu0 %2254 }
0x1919   :  { %v2106_v32 = vpack.c.bf16 %v2104_v31, %v2104_v31 }
0x191a   :  { %v3609_v56 = vpop.eup %3608 }
0x191b   :  { %v2105_v25 = vmul.f32 %v3609_v56, %v3605_v48  ;;  %3390 = vmatmul.mubr.msk.bf16.vlgmr.msra.gmra.mrb[64].mxu0 %vm193_vm2, %v2106_v32 }
0x191c   :  { %3400 = vmatpush3.bf16.xpose.msra.mxu0 %v2212_v21  ;;  %3401 = vmatprep.mubr.msk.bf16.mxu0 %vm3663_vm1, %v3662_v15 }
0x191d   :  { %v2107_v57 = vpack.c.bf16 %v2105_v25, %v2105_v25  ;;  %3411 = vmatprep.subr.bf16.mxu0 %v3662_v15 }
0x191f   :  { %3396 = vmatmul.mubr.msk.bf16.vlgmr.msra.gmra.mrb[60].mxu1 %vm193_vm2, %v2107_v57 }
0x1920   :  { %3406 = vmatpush3.bf16.xpose.msra.mxu1 %v2262_v58  ;;  %3407 = vmatprep.mubr.msk.bf16.mxu1 %vm3663_vm1, %v3662_v15 }
0x1921   :  { %3417 = vmatprep.subr.bf16.mxu1 %v3662_v15 }
0x1923   :  { %3402 = vmatmul.mubr.msk.bf16.vlgmr.msra.gmra.mrb[68].mxu0 %vm193_vm2, %v2205_v59 }
0x1924   :  { %3413 = vmatprep.mubr.msk.bf16.mxu0 %vm3663_vm1, %v3662_v15 }
0x1927   :  { %3408 = vmatmul.mubr.msk.bf16.vlgmr.msra.gmra.mrb[64].mxu1 %vm193_vm2, %v2255_v60 }
0x1928   :  { %3419 = vmatprep.mubr.msk.bf16.mxu1 %vm3663_vm1, %v3662_v15 }
0x19ee   :  { %v2150_v61 = vpop.f32.mrb[64].mxu0 }
0x19ef   :  { %v3391_v62 = vpop.f32.mrb[65].mxu0 }
0x19f0   :  { %v2153_v63 = vpop.f32.mrb[66].mxu0 }
0x19f1   :  { %v3392_v0 = vpop.f32.mrb[67].mxu0 }
0x19f2   :  { %v2198_v39 = vpop.f32.mrb[60].mxu1 }
0x19f3   :  { %v3504_v2 = vpack.i.bf16 %v2198_v39, %v2150_v61  ;;  %v3397_v3 = vpop.f32.mrb[61].mxu1 }
0x19f4   :  { %v2201_v6 = vpop.f32.mrb[62].mxu1 }
0x19f5   :  { %v3398_v8 = vpop.f32.mrb[63].mxu1 }
0x19f6   :  { %v2248_v9 = vpop.f32.mrb[68].mxu0 }
0x19f7   :  { %v2304_v13 = vmul.f32 0.35355338, %v2248_v9  ;;  %v3403_v14 = vpop.f32.mrb[69].mxu0 }
0x19f8   :  { %v2251_v16 = vpop.f32.mrb[70].mxu0 }
0x19f9   :  { %v3404_v17 = vpop.f32.mrb[71].mxu0  ;;  %v2306_v18 = vadd.f32 %v4129_v41, %v2304_v13 }
0x19fa   :  { %v2298_v20 = vpop.f32.mrb[64].mxu1 }
0x19fb   :  { %v2305_v22 = vmul.f32 0.35355338, %v2298_v20  ;;  %v3409_v24 = vpop.f32.mrb[65].mxu1  ;;  %v2308_v27 = vsel %vm193_vm2, %v2306_v18, -inf }
0x19fc   :  { %v2301_v29 = vpop.f32.mrb[66].mxu1  ;;  %2309 = vmax.xlane.f32.xlu1 %v2308_v27 }
0x19fd   :  { %v3410_v30 = vpop.f32.mrb[67].mxu1  ;;  %v2307_v34 = vadd.f32 %v4136_v47, %v2305_v22 }
0x19ff   :  { %v2311_v35 = vsel %vm193_vm2, %v2307_v34, -inf }
0x1a00   :  { %2312 = vmax.xlane.f32.xlu0 %v2311_v35 }
0x1a0d   :  { %2332 = vrot.lane.b32.xlu1 %v4106_v19, %s4454_s25 }
0x1a11   :  { %3500 = vrot.lane.b32.xlu1 %v3499_v5, %s4455_s22 }
0x1a15   :  { %3505 = vrot.lane.b32.xlu1 %v3504_v2, %s4456_s23 }
0x1a89   :  { %v2310_v41 = vpop.xlane.xlu1 %2309 }
0x1a8a   :  { %v2314_v36 = vsub.f32 %v2306_v18, %v2310_v41 }
0x1a8c   :  { %v2316_v28 = vmul.f32 1.442695, %v2314_v36 }
0x1a8d   :  { %v2313_v33 = vpop.xlane.xlu0 %2312  ;;  %v2333_v37 = vpop.permute.xlu1 %2332 }
0x1a8e   :  { %3610 = vpow2.f32 %v2316_v28  ;;  %v2315_v47 = vsub.f32 %v2307_v34, %v2313_v33  ;;  %v2338_v38 = vsel %vm333_vm3, %v2333_v37, 0 }
0x1a8f   :  { %3412 = vmatpush3.bf16.msra.mxu0 %v2338_v38 }
0x1a90   :  { %v2318_v40 = vmul.f32 1.442695, %v2315_v47  ;;  %3423 = vmatprep.subr.bf16.mxu0 %v3662_v15 }
0x1a91   :  { %v3501_v58 = vpop.permute.xlu1 %3500 }
0x1a92   :  { %3612 = vpow2.f32 %v2318_v40  ;;  %v3503_v60 = vunpack.i.h.bf16 %v3501_v58  ;;  %v3502_v61 = vunpack.i.l.bf16 %v3501_v58 }
0x1a94   :  { %v2453_v39 = vsel %vm193_vm2, %v4176_v12, %v3503_v60  ;;  %v2452_v2 = vsel %vm193_vm2, %v4174_v7, %v3502_v61  ;;  %v3041_v7 = vld [vmem:[%s4407_s7 + $0x1] ss:$0 sm:$0xff] }
0x1a95   :  { %v3506_v59 = vpop.permute.xlu1 %3505 }
0x1a96   :  { %v3508_v62 = vunpack.i.h.bf16 %v3506_v59  ;;  %v3507_v63 = vunpack.i.l.bf16 %v3506_v59 }
0x1a98   :  { %v3611_v19 = vpop.eup %3610  ;;  %v2454_v8 = vsel %vm1123_vm4, %v2452_v2, %v3507_v63  ;;  %v2455_v9 = vsel %vm1123_vm4, %v2453_v39, %v3508_v62 }
0x1a99   :  { %v2320_v1 = vsel %vm193_vm2, %v3611_v19, 0.0 }
0x1a9a   :  { %2321 = vadd.xlane.f32.xlu0 %v2320_v1 }
0x1a9c   :  { %v3613_v4 = vpop.eup %3612 }
0x1a9d   :  { %v2323_v5 = vsel %vm193_vm2, %v3613_v4, 0.0 }
0x1a9e   :  { %2324 = vadd.xlane.f32.xlu0 %v2323_v5 }
0x1ab4   :  { %2380 = vrot.lane.b32.xlu0 %v4108_v23, %s4454_s25 }
0x1b27   :  { %v2322_v43 = vpop.xlane.xlu0 %2321 }
0x1b28   :  { %3614 = vrcp.f32 %v2322_v43 }
0x1b2b   :  { %v2325_v44 = vpop.xlane.xlu0 %2324 }
0x1b2c   :  { %3616 = vrcp.f32 %v2325_v44 }
0x1b2f   :  { %v2381_v45 = vpop.permute.xlu0 %2380 }
0x1b30   :  { %v2386_v46 = vsel %vm333_vm3, %v2381_v45, 0 }
0x1b31   :  { %3418 = vmatpush3.bf16.msra.mxu1 %v2386_v46 }
0x1b32   :  { %v3615_v49 = vpop.eup %3614  ;;  %3431 = vmatprep.subr.bf16.mxu1 %v3662_v15 }
0x1b33   :  { %v2328_v48 = vmul.f32 %v3615_v49, %v3611_v19  ;;  %v3529_v19 = vld [vmem:[%s4410_s10 + $0x18] sm:$0xff]  }
0x1b35   :  { %v2330_v50 = vpack.c.bf16 %v2328_v48, %v2328_v48  ;;  %v3047_v48 = vld [vmem:[%s4408_s8 + $0x1] ss:$0 sm:$0xff] }
0x1b36   :  { %v3617_v53 = vpop.eup %3616 }
0x1b37   :  { %v2329_v51 = vmul.f32 %v3617_v53, %v3613_v4  ;;  %3414 = vmatmul.mubr.msk.bf16.vlgmr.msra.gmra.mrb[72].mxu0 %vm193_vm2, %v2330_v50 }
0x1b38   :  { %3427 = vmatprep.mubr.msk.bf16.mxu0 %vm3663_vm1, %v3662_v15  ;;  %3424 = vmatpush3.bf16.msra.mxu0 %v3526_v52 }
0x1b39   :  { %v2331_v23 = vpack.c.bf16 %v2329_v51, %v2329_v51  ;;  %3425 = vmatprep.subr.bf16.mxu0 %v3662_v15 }
0x1b3b   :  { %3420 = vmatmul.mubr.msk.bf16.vlgmr.msra.gmra.mrb[68].mxu1 %vm193_vm2, %v2331_v23  ;;  %v3048_v23 = vld [vmem:[%s4409_s9 + $0x1] ss:$0 sm:$0xff] }
0x1b3c   :  { %3435 = vmatprep.mubr.msk.bf16.mxu1 %vm3663_vm1, %v3662_v15  ;;  %3426 = vmatpush3.bf16.msra.mxu0 %v3527_v54 }
0x1b3d   :  { %3439 = vmatprep.subr.bf16.mxu0 %v3662_v15 }
0x1c0a   :  { %v2374_v55 = vpop.f32.mrb[72].mxu0 }
0x1c0b   :  { %v3415_v42 = vpop.f32.mrb[73].mxu0 }
0x1c0c   :  { %v2377_v31 = vpop.f32.mrb[74].mxu0 }
0x1c0d   :  { %v3416_v32 = vpop.f32.mrb[75].mxu0  ;;  %v3530_v31 = vld [vmem:[%s4412_s12 + $0x20] sm:$0xff]  }
0x1c0e   :  { %v2422_v56 = vpop.f32.mrb[68].mxu1  ;;  %v3531_v32 = vld [vmem:[%s4412_s12 + $0x28] sm:$0xff]  }
0x1c0f   :  { %v3509_v21 = vpack.i.bf16 %v2422_v56, %v2374_v55  ;;  %v3421_v25 = vpop.f32.mrb[69].mxu1  ;;  %v3532_v56 = vld [vmem:[%s4412_s12 + $0x30] sm:$0xff]  }
0x1c10   :  { %v2425_v26 = vpop.f32.mrb[70].mxu1  ;;  %v3054_v25 = vld [vmem:[%s4411_s11 + $0x1] ss:$0 sm:$0xff] }
0x1c11   :  { %v3422_v57 = vpop.f32.mrb[71].mxu1  ;;  %3510 = vrot.lane.b32.xlu1 %v3509_v21, %s4457_s5  ;;  %v3533_v21 = vld [vmem:[%s4412_s12 + $0x38] sm:$0xff]  }
0x1c83   :  { %v3511_v0 = vpop.permute.xlu1 %3510 }
0x1c84   :  { %v3513_v3 = vunpack.i.h.bf16 %v3511_v0  ;;  %v3512_v6 = vunpack.i.l.bf16 %v3511_v0 }
0x1c86   :  { %v2457_v13 = vsel %vm1126_vm5, %v2455_v9, %v3513_v3  ;;  %v2456_v14 = vsel %vm1126_vm5, %v2454_v8, %v3512_v6 }
0x1c87   :  { %v2458_v16 = vpack.c.bf16 %v2457_v13, %v2456_v14 }
0x1c89   :  { %3428 = vmatmul.mubr.msk.bf16.vlgmr.msra.gmra.mrb[76].mxu0 %vm71_vm0, %v2458_v16 }
0x1c8a   :  { %3447 = vmatprep.mubr.msk.bf16.mxu0 %vm3663_vm1, %v3662_v15  ;;  %3440 = vmatpush3.bf16.msra.mxu0 %v3530_v31 }
0x1c8b   :  { %3441 = vmatprep.subr.bf16.mxu0 %v3662_v15 }
0x1c8e   :  { %3442 = vmatpush3.bf16.msra.mxu0 %v3531_v32 }
0x1c8f   :  { %3443 = vmatprep.subr.bf16.mxu0 %v3662_v15 }
0x1c92   :  { %3444 = vmatpush3.bf16.msra.mxu0 %v3532_v56 }
0x1c93   :  { %3445 = vmatprep.subr.bf16.mxu0 %v3662_v15 }
0x1c96   :  { %3446 = vmatpush3.bf16.msra.mxu0 %v3533_v21  ;;  %v3076_v21 = vld [vmem:[%s4415_s15 + $0x1] ss:$0 sm:$0xff] }
0x1d5c   :  { %v2521_v12 = vpop.f32.mrb[76].mxu0 }
0x1d5d   :  { %v2522_v17 = vadd.f32 %v3041_v7, %v2521_v12  ;;  %v3429_v18 = vpop.f32.mrb[77].mxu0 }
0x1d5e   :  { %v2524_v20 = vpop.f32.mrb[78].mxu0 }
0x1d5f   :  { %v2525_v22 = vadd.f32 %v3041_v7, %v2524_v20  ;;  %v3430_v24 = vpop.f32.mrb[79].mxu0  ;;  %v2528_v27 = vadd.f32 %v2522_v17, %v4094_v10 }
0x1d61   :  { %v2534_v29 = vsel %vm71_vm0, %v2528_v27, 0.0  ;;  %v2529_v30 = vadd.f32 %v2525_v22, %v4096_v11  ;;  %v3528_v11 = vld [vmem:[%s4410_s10 + $0x10] sm:$0xff]  }
0x1d62   :  { %2535 = vadd.xlane.f32.xlu0 %v2534_v29  ;;  %3432 = vmatpush3.bf16.msra.mxu1 %v3528_v11 }
0x1d63   :  { %v2537_v34 = vsel %vm71_vm0, %v2529_v30, 0.0  ;;  %3433 = vmatprep.subr.bf16.mxu1 %v3662_v15 }
0x1d64   :  { %2538 = vadd.xlane.f32.xlu1 %v2537_v34 }
0x1d66   :  { %3434 = vmatpush3.bf16.msra.mxu1 %v3529_v19 }
0x1d67   :  { %3451 = vmatprep.subr.bf16.mxu1 %v3662_v15 }
0x1def   :  { %v2536_v35 = vpop.xlane.xlu0 %2535 }
0x1df0   :  { %v2540_v41 = vmul.f32 0.03125, %v2536_v35 }
0x1df1   :  { %v2539_v36 = vpop.xlane.xlu1 %2538 }
0x1df2   :  { %v2542_v28 = vsub.f32 %v2528_v27, %v2540_v41  ;;  %v2541_v33 = vmul.f32 0.03125, %v2539_v36  ;;  %v3067_v27 = vld [vmem:[%s4413_s13 + $0x1] ss:$0 sm:$0xff] }
0x1df4   :  { %v2543_v37 = vsub.f32 %v2529_v30, %v2541_v33  ;;  %v2544_v47 = vmul.f32 %v2542_v28, %v2542_v28 }
0x1df6   :  { %v2546_v38 = vsel %vm71_vm0, %v2544_v47, 0.0  ;;  %v2545_v40 = vmul.f32 %v2543_v37, %v2543_v37 }
0x1df7   :  { %2547 = vadd.xlane.f32.xlu0 %v2546_v38 }
0x1df8   :  { %v2549_v10 = vsel %vm71_vm0, %v2545_v40, 0.0 }
0x1dfb   :  { %2550 = vadd.xlane.f32.xlu0 %v2549_v10 }
0x1e84   :  { %v2548_v1 = vpop.xlane.xlu0 %2547 }
0x1e85   :  { %v2552_v4 = vmul.f32 0.03125, %v2548_v1 }
0x1e87   :  { %v2554_v5 = vadd.f32 1e-12, %v2552_v4 }
0x1e88   :  { %v2551_v43 = vpop.xlane.xlu0 %2550 }
0x1e89   :  { %3618 = vrsqrt.f32 %v2554_v5  ;;  %v2553_v44 = vmul.f32 0.03125, %v2551_v43 }
0x1e8b   :  { %v2555_v45 = vadd.f32 1e-12, %v2553_v44 }
0x1e8d   :  { %3620 = vrsqrt.f32 %v2555_v45  ;;  %v3534_v45 = vld [vmem:[%s4416_s16] sm:$0xff]  }
0x1e93   :  { %v3619_v46 = vpop.eup %3618 }
0x1e94   :  { %v2558_v49 = vmul.f32 %v3619_v46, %v2542_v28  ;;  %v3535_v46 = vld [vmem:[%s4416_s16 + $0x8] sm:$0xff]  }
0x1e96   :  { %v2566_v53 = vmul.f32 %v3047_v48, %v2558_v49 }
0x1e97   :  { %v3621_v50 = vpop.eup %3620 }
0x1e98   :  { %v2559_v51 = vmul.f32 %v3621_v50, %v2543_v37  ;;  %v2574_v54 = vadd.f32 %v3048_v23, %v2566_v53 }
0x1e9a   :  { %v2567_v52 = vmul.f32 %v3047_v48, %v2559_v51 }
0x1e9c   :  { %v2575_v55 = vadd.f32 %v3048_v23, %v2567_v52 }
0x1e9e   :  { %v2576_v42 = vpack.c.bf16 %v2575_v55, %v2574_v54 }
0x1ea0   :  { %3436 = vmatmul.mubr.msk.bf16.vlgmr.msra.gmra.mrb[72].mxu1 %vm71_vm0, %v2576_v42  ;;  %v3075_v42 = vld [vmem:[%s4414_s14 + $0x1] ss:$0 sm:$0xff] }
0x1ea1   :  { %3455 = vmatprep.mubr.msk.bf16.mxu1 %vm3663_vm1, %v3662_v15  ;;  %3452 = vmatpush3.bf16.msra.mxu1 %v3534_v45 }
0x1ea2   :  { %3453 = vmatprep.subr.bf16.mxu1 %v3662_v15 }
0x1ea5   :  { %3454 = vmatpush3.bf16.msra.mxu1 %v3535_v46 }
0x1ea6   :  { %3459 = vmatprep.subr.bf16.mxu1 %v3662_v15 }
0x1f73   :  { %v2639_v26 = vpop.f32.mrb[72].mxu1 }
0x1f74   :  { %v2640_v57 = vadd.f32 %v3054_v25, %v2639_v26  ;;  %v3437_v58 = vpop.f32.mrb[73].mxu1 }
0x1f75   :  { %v2642_v59 = vpop.f32.mrb[74].mxu1 }
0x1f76   :  { %v2648_v60 = vmul.f32 0.044715, %v2640_v57  ;;  %v2643_v61 = vadd.f32 %v3054_v25, %v2642_v59  ;;  %v3438_v62 = vpop.f32.mrb[75].mxu1  ;;  %v2646_v12 = vmul.f32 0.5, %v2640_v57 }
0x1f77   :  { %v3077_v62 = vld [vmem:[%s4417_s17] ss:$0 sm:$0xff]  ;;  %s3678_s17 = smov [#allocation2]  }
0x1f78   :  { %v2650_v63 = vmul.f32 %v2648_v60, %v2640_v57  ;;  %v2649_v0 = vmul.f32 0.044715, %v2643_v61  ;;  %v2647_v17 = vmul.f32 0.5, %v2643_v61  ;;  %v3536_v60 = vld [vmem:[%s4418_s18] sm:$0xff]  }
0x1f7a   :  { %v2652_v39 = vmul.f32 %v2650_v63, %v2640_v57  ;;  %v2651_v2 = vmul.f32 %v2649_v0, %v2643_v61 }
0x1f7c   :  { %v2654_v3 = vadd.f32 %v2652_v39, %v2640_v57  ;;  %v2653_v6 = vmul.f32 %v2651_v2, %v2643_v61 }
0x1f7e   :  { %v2656_v8 = vmul.f32 0.7978846, %v2654_v3  ;;  %v2655_v9 = vadd.f32 %v2653_v6, %v2643_v61  ;;  %v3537_v61 = vld [vmem:[%s4418_s18 + $0x8] sm:$0xff]   ;;  %s2957_s18 = sshll.u32 %s3678_s17, 4  ;;  %s2958_s18 = int_to_ptr.vmem [resolvable:$true] %s2957_s18 }
0x1f7f   :  { %p3643_p1 = scmp.lt.s32.totalorder %s2958_s18, %s2958_s18 }
0x1f80   :  { %3622 = vtanh.f32 %v2656_v8  ;;  %v2657_v13 = vmul.f32 0.7978846, %v2655_v9 }
0x1f82   :  { %3624 = vtanh.f32 %v2657_v13 }
0x1f8a   :  { %v3623_v14 = vpop.eup %3622 }
0x1f8b   :  { %v2660_v16 = vadd.f32 1.0, %v3623_v14 }
0x1f8c   :  { %v3625_v7 = vpop.eup %3624 }
0x1f8d   :  { %v2661_v18 = vadd.f32 1.0, %v3625_v7  ;;  %v2662_v20 = vmul.f32 %v2660_v16, %v2646_v12 }
0x1f8f   :  { %v2663_v22 = vmul.f32 %v2661_v18, %v2647_v17 }
0x1f91   :  { %v2664_v24 = vpack.c.bf16 %v2663_v22, %v2662_v20 }
0x1f93   :  { %3448 = vmatmul.mubr.msk.bf16.vlgmr.msra.gmra.mrb[80].mxu0 %vm1369_vm6, %v2664_v24 }
0x2066   :  { %v2743_v29 = vpop.f32.mrb[80].mxu0 }
0x2067   :  { %v2744_v30 = vadd.f32 %v3067_v27, %v2743_v29  ;;  %v3449_v34 = vpop.f32.mrb[81].mxu0 }
0x2068   :  { %v2746_v35 = vpop.f32.mrb[82].mxu0 }
0x2069   :  { %v2750_v41 = vadd.f32 %v2744_v30, %v2574_v54  ;;  %v2747_v36 = vadd.f32 %v3067_v27, %v2746_v35  ;;  %v3450_v28 = vpop.f32.mrb[83].mxu0 }
0x206b   :  { %v2751_v33 = vadd.f32 %v2747_v36, %v2575_v55  ;;  %v2756_v37 = vsel %vm71_vm0, %v2750_v41, 0.0 }
0x206c   :  { %2757 = vadd.xlane.f32.xlu1 %v2756_v37 }
0x206d   :  { %v2759_v47 = vsel %vm71_vm0, %v2751_v33, 0.0 }
0x206e   :  { %2760 = vadd.xlane.f32.xlu0 %v2759_v47 }
0x20f9   :  { %v2758_v38 = vpop.xlane.xlu1 %2757 }
0x20fa   :  { %v2762_v40 = vmul.f32 0.03125, %v2758_v38 }
0x20fb   :  { %v2761_v10 = vpop.xlane.xlu0 %2760 }
0x20fc   :  { %v2764_v11 = vsub.f32 %v2750_v41, %v2762_v40  ;;  %v2763_v19 = vmul.f32 0.03125, %v2761_v10 }
0x20fe   :  { %v2765_v1 = vsub.f32 %v2751_v33, %v2763_v19  ;;  %v2766_v4 = vmul.f32 %v2764_v11, %v2764_v11 }
0x2100   :  { %v2768_v5 = vsel %vm71_vm0, %v2766_v4, 0.0  ;;  %v2767_v43 = vmul.f32 %v2765_v1, %v2765_v1 }
0x2101   :  { %2769 = vadd.xlane.f32.xlu1 %v2768_v5 }
0x2102   :  { %v2771_v44 = vsel %vm71_vm0, %v2767_v43, 0.0 }
0x2103   :  { %2772 = vadd.xlane.f32.xlu0 %v2771_v44 }
0x218e   :  { %v2770_v49 = vpop.xlane.xlu1 %2769 }
0x218f   :  { %v2774_v48 = vmul.f32 0.03125, %v2770_v49 }
0x2190   :  { %v2773_v50 = vpop.xlane.xlu0 %2772 }
0x2191   :  { %v2776_v53 = vadd.f32 1e-12, %v2774_v48  ;;  %v2775_v51 = vmul.f32 0.03125, %v2773_v50 }
0x2193   :  { %3626 = vrsqrt.f32 %v2776_v53  ;;  %v2777_v23 = vadd.f32 1e-12, %v2775_v51 }
0x2195   :  { %3628 = vrsqrt.f32 %v2777_v23 }
0x219d   :  { %v3627_v52 = vpop.eup %3626 }
0x219e   :  { %v2780_v54 = vmul.f32 %v3627_v52, %v2764_v11 }
0x219f   :  { %v3629_v55 = vpop.eup %3628 }
0x21a0   :  { %v2781_v31 = vmul.f32 %v3629_v55, %v2765_v1  ;;  %v2788_v32 = vmul.f32 %v3075_v42, %v2780_v54 }
0x21a2   :  { %v2789_v56 = vmul.f32 %v3075_v42, %v2781_v31  ;;  %v2796_v26 = vadd.f32 %v3076_v21, %v2788_v32 }
0x21a4   :  { %v2797_v25 = vadd.f32 %v3076_v21, %v2789_v56 }
0x21a6   :  { %v2799_v57 = vrot.slane %v2797_v25, 7 }
0x21a8   :  { %v2802_v58 = vsel %vm2801_vm7, %v2796_v26, %v2799_v57 }
0x21a9   :  { %v2803_v59 = vpack.c.bf16 %v2802_v58, %v2802_v58 }
0x21ab   :  { %3456 = vmatmul.mubr.msk.bf16.vlgmr.msra.gmra.mrb[76].mxu1 %vm71_vm0, %v2803_v59 }
0x21ac   :  { %3463 = vmatprep.mubr.msk.bf16.mxu1 %vm3663_vm1, %v3662_v15  ;;  %3460 = vmatpush3.bf16.msra.mxu1 %v3536_v60 }
0x21ad   :  { %3461 = vmatprep.subr.bf16.mxu1 %v3662_v15  ;;  %v3081_v15 = vld [vmem:[%s4419_s19] ss:$0 sm:$0xff]  ;;  %s3638_s19 = scalar_lea.vmem %s2958_s18, 32 }
0x21ae   :  { %p3639_p0 = scmp.ne.s32.totalorder %s2958_s18, %s3638_s19  ;;  %p3644_p2 = scmp.lt.s32.totalorder %s3638_s19, %s3638_s19 }
0x21b0   :  { %3462 = vmatpush3.bf16.msra.mxu1 %v3537_v61  ;;  %p3645_p3 = por %p3644_p2, %p3643_p1 }
0x21b2   :  { %p3646_p4 = pnand %p3645_p3, %p3639_p0 }
0x227e   :  { %v2864_v63 = vpop.f32.mrb[76].mxu1 }
0x227f   :  { %v2865_v0 = vadd.f32 %v3077_v62, %v2864_v63  ;;  %v3457_v39 = vpop.f32.mrb[77].mxu1 }
0x2280   :  { %v2867_v2 = vpop.f32.mrb[78].mxu1 }
0x2281   :  { %3630 = vtanh.f32 %v2865_v0  ;;  %v3458_v3 = vpop.f32.mrb[79].mxu1 }
0x228b   :  { %v3631_v6 = vpop.eup %3630 }
0x228c   :  { %v2871_v8 = vpack.c.bf16 %v3631_v6, %v3631_v6 }
0x228e   :  { %3464 = vmatmul.mubr.msk.bf16.vlgmr.msra.gmra.mrb[80].mxu1 %vm71_vm0, %v2871_v8 }
0x2361   :  { %v2932_v9 = vpop.f32.mrb[80].mxu1 }
0x2362   :  { %v2933_v13 = vadd.f32 %v3081_v15, %v2932_v9  ;;  %v3465_v14 = vpop.f32.mrb[81].mxu1 }
0x2363   :  { %v2935_v16 = vpop.f32.mrb[82].mxu1 }
0x2364   :  { %v3466_v7 = vpop.f32.mrb[83].mxu1  ;;  %v2939_v12 = vsel %vm2938_vm8, %v2933_v13, -inf }
0x2365   :  { %2940 = vmax.xlane.f32.xlu0 %v2939_v12 }
0x23f2   :  { %v2941_v17 = vpop.xlane.xlu0 %2940 }
0x23f3   :  { %v2942_v18 = vsub.f32 %v2933_v13, %v2941_v17 }
0x23f5   :  { %v2943_v20 = vmul.f32 1.442695, %v2942_v18 }
0x23f7   :  { %3632 = vpow2.f32 %v2943_v20 }
0x2401   :  { %v3633_v22 = vpop.eup %3632 }
0x2402   :  { %v2945_v24 = vsel %vm2938_vm8, %v3633_v22, 0.0 }
0x2403   :  { %2946 = vadd.xlane.f32.xlu1 %v2945_v24 }
0x2490   :  { %v2947_v27 = vpop.xlane.xlu1 %2946 }
0x2491   :  { %3634 = vrcp.f32 %v2947_v27 }
0x249b   :  { %v3635_v29 = vpop.eup %3634 }
0x249c   :  { %v2949_v30 = vmul.f32 %v3635_v29, %v3633_v22 }
0x249e   :  { %2950 = vst [vmem:[#allocation2] sm:$0x3] %v2949_v30 }
0x249f   :  { %3649 = shalt.err (!%p3646_p4)
}
0x24a0   :  { %s3650_s22 = scalar_lea.hbm %s4420_s20, 32 }
0x24a1   :  { %p3651_p5 = scmp.ne.s32.totalorder %s4420_s20, %s3650_s22  ;;  %p3654_p6 = scmp.lt.u32.totalorder %s3650_s22, %s4420_s20 }
0x24a3   :  { %p3656_p7 = pnand %p3654_p6, %p3651_p5 }
0x24a5   :  { %3659 = shalt.err (!%p3656_p7)
}
0x24a6   :  { %2960 = dma.vmem_to_hbm [thread:$0]  %s2958_s18, 32, %s4420_s20, [#allocation3]  }
0x24a7   :  { %3660 = dma.done.wait [#allocation3], 32  }
0x24a8   :  { %3661 = vsyncadd [#allocation3], 4294967264 }
0x24a9   :  { %2964 = vsyncpa [#allocation3], 1 }

</bundles_post_ra>
